<compile_context>
chip_gen: v7x
topology: tpu7x:2x2x1
jax: 0.10.0
libtpu: 0.0.40
codegen_flags: <defaults>
</compile_context>

<pallas_src>
import jax
import jax.numpy as jnp
from jax.experimental import pallas as pl
from jax.experimental.pallas import tpu as pltpu

K_HOPS = 2          # TAGConv default number of hops
LRP_EPS = 1e-6      # epsilon stabilizer for the z-rule
LANE = 128


def _round_up(x, m):
    return ((x + m - 1) // m) * m


def _default_matmul_dtype():
    """bf16 MXU inputs on v6e/v7x (f32 accumulation); exact f32 elsewhere."""
    try:
        kind = jax.devices()[0].device_kind.lower()
    except Exception:
        return jnp.float32
    if ("v6" in kind) or ("v7" in kind) or ("7x" in kind):
        return jnp.bfloat16
    return jnp.float32


def _vmem_cap_bytes():
    try:
        kind = jax.devices()[0].device_kind.lower()
    except Exception:
        kind = ""
    if ("v4" in kind) or ("v5" in kind) or ("v6" in kind):
        return 100 * 1024 * 1024          # 128 MiB physical per core
    return 56 * 1024 * 1024               # v7x (64 MiB physical) / unknown


# ---------------------------------------------------------------------------
# Fused kernel: 3-layer TAGConv forward + 3-layer LRP backward, all in VMEM.
# ---------------------------------------------------------------------------
def _make_fused_kernel(mm_dtype, feat, packed_fwd, packed_bwd):
    f32 = jnp.float32

    def kernel(a_ref, x_ref,
               w0f_ref, w0b_ref, b0_ref, w0cs_ref,
               w1f_ref, w1b_ref, b1_ref,
               w2f_ref, w2b_ref, b2_ref,
               y_ref, r2_ref, r1_ref, r0_ref):
        A = a_ref[...]                     # (Np, Np), already in mm_dtype
        X = x_ref[...]                     # (Np, F0p), already in mm_dtype

        def mm(a, b):                      # MXU matmul, f32 accumulation
            return jnp.dot(a, b, preferred_element_type=f32)

        def hop(h):                        # one A-hop; carry stays in mm_dtype
            return mm(A, h).astype(mm_dtype)

        def hops(h0):
            hs = [h0]
            for _ in range(K_HOPS):
                hs.append(hop(hs[-1]))
            return hs

        def pack(hs, width):
            # Lane-pack hop k into lanes [k*width, (k+1)*width).  Valid lanes of
            # each hop are [0, width) and the rest are zero, so the rolled
            # copies simply sum (XLU rolls + VPU adds, MXU untouched).
            pk = hs[0]
            for k in range(1, K_HOPS + 1):
                pk = pk + pltpu.roll(hs[k], shift=k * width, axis=1)
            return pk

        def tag_forward(h0, wf_ref, b_ref, fin, packed):
            hs = hops(h0)
            if packed:                     # single (Np,128)@(128,Fout_p) matmul
                y = mm(pack(hs, fin), wf_ref[...])
            else:                          # per-hop fallback, accumulated in f32
                y = mm(hs[0], wf_ref[0])
                for k in range(1, K_HOPS + 1):
                    y = y + mm(hs[k], wf_ref[k])
            return y + b_ref[...]          # f32

        def lrp_backward(rel, z, wb_ref, fout, packed):
            # LRP-eps z-rule; gradient through TAGConv taken analytically
            # (A_hat symmetric, weights pre-transposed host-side).
            s = rel / (z + LRP_EPS)        # f32 division
            gs = hops(s.astype(mm_dtype))
            if packed:
                c = mm(pack(gs, fout), wb_ref[...])
            else:
                c = mm(gs[0], wb_ref[0])
                for k in range(1, K_HOPS + 1):
                    c = c + mm(gs[k], wb_ref[k])
            return c                       # caller multiplies by the activation

        # ----- forward (activations stay resident) -----
        y1 = tag_forward(X, w0f_ref, b0_ref, feat[0], packed_fwd[0])
        y1m = y1.astype(mm_dtype)          # one cast per activation (hoisted)
        y2 = tag_forward(y1m, w1f_ref, b1_ref, feat[1], packed_fwd[1])
        y2m = y2.astype(mm_dtype)
        y3 = tag_forward(y2m, w2f_ref, b2_ref, feat[2], packed_fwd[2])
        y_ref[...] = y3.astype(y_ref.dtype)        # relevance seed = model output

        # ----- LRP backward (reverse layer order), z reused from forward -----
        r = y2 * lrp_backward(y3, y3, w2b_ref, feat[3], packed_bwd[2])
        r2_ref[...] = r.astype(r2_ref.dtype)
        r = y1 * lrp_backward(r, y2, w1b_ref, feat[2], packed_bwd[1])
        r1_ref[...] = r.astype(r1_ref.dtype)

        # layer 0: the PyTorch LRPModel feeds ones_like(x) as this layer's
        # activation.  z0 = TAGConv(ones) is rank-1 in the node dimension:
        #   z0 = colsum(W_0)+b + (A@1) * colsum(W_1) + (A@(A@1)) * colsum(W_2)
        # so it is computed with row-sum algebra on XLU/VPU (no MXU hops), and
        # R0 = ones * c == c.
        Af = A.astype(f32)                 # no-op in f32 mode; single cast in bf16 mode
        cs = w0cs_ref[...]                 # (K+1, F1p) f32 host-precomputed colsums
        v_col = jnp.sum(Af, axis=1, keepdims=True)          # A @ 1        (Np, 1)
        v_row = jnp.sum(Af, axis=0, keepdims=True)          # same values, row layout
        z0 = cs[0:1, :] + v_col * cs[1:2, :]
        for k in range(2, K_HOPS + 1):
            v_col = jnp.sum(Af * v_row, axis=1, keepdims=True)   # A @ v (A symmetric)
            z0 = z0 + v_col * cs[k:k + 1, :]
            if k < K_HOPS:
                v_row = jnp.sum(Af * v_col, axis=0, keepdims=True)
        r = lrp_backward(r, z0, w0b_ref, feat[1], packed_bwd[0])
        r0_ref[...] = r.astype(r0_ref.dtype)

    return kernel


# ---------------------------------------------------------------------------
# One-time parameter preparation (padding, casting, pre-transposition).
# ---------------------------------------------------------------------------
def prepare_lrp_params(params, matmul_dtype=None):
    """params: list of (W, b) for the 3 TAGConv layers, W: ((K+1)*Fin, Fout)."""
    assert len(params) == 3
    if matmul_dtype is None:
        matmul_dtype = _default_matmul_dtype()

    feat = [params[0][0].shape[0] // (K_HOPS + 1)]
    for (W, _) in params:
        assert W.shape[0] == (K_HOPS + 1) * feat[-1]
        feat.append(W.shape[1])
    fp = [_round_up(f, LANE) for f in feat]

    packed_fwd = [(K_HOPS + 1) * feat[l] <= LANE for l in range(3)]
    packed_bwd = [(K_HOPS + 1) * feat[l + 1] <= LANE for l in range(3)]

    wf_list, wb_list, b_list = [], [], []
    for l, (W, b) in enumerate(params):
        fin, fout = feat[l], feat[l + 1]
        W = jnp.asarray(W, jnp.float32)
        b = jnp.asarray(b, jnp.float32)
        Wk = W.reshape(K_HOPS + 1, fin, fout)        # hop-major, like DGL

        if packed_fwd[l]:                            # one (128, Fout_p) block
            wf = jnp.zeros((LANE, fp[l + 1]), jnp.float32)
            wf = wf.at[:(K_HOPS + 1) * fin, :fout].set(W)
        else:                                        # per-hop (K+1, Fin_p, Fout_p)
            wf = jnp.zeros((K_HOPS + 1, fp[l], fp[l + 1]), jnp.float32)
            wf = wf.at[:, :fin, :fout].set(Wk)

        if packed_bwd[l]:                            # one (128, Fin_p) block of Wk^T
            wb = jnp.zeros((LANE, fp[l]), jnp.float32)
            for k in range(K_HOPS + 1):
                wb = wb.at[k * fout:(k + 1) * fout, :fin].set(Wk[k].T)
        else:                                        # per-hop (K+1, Fout_p, Fin_p)
            wb = jnp.zeros((K_HOPS + 1, fp[l + 1], fp[l]), jnp.float32)
            wb = wb.at[:, :fout, :fin].set(jnp.transpose(Wk, (0, 2, 1)))

        bp = jnp.zeros((1, fp[l + 1]), jnp.float32).at[0, :fout].set(b)
        wf_list.append(wf.astype(matmul_dtype))
        wb_list.append(wb.astype(matmul_dtype))
        b_list.append(bp)

    # z0 rank-1 constants: per-hop column sums of layer-0 weights (+ bias on hop 0)
    W0 = jnp.asarray(params[0][0], jnp.float32)
    b0 = jnp.asarray(params[0][1], jnp.float32)
    cs = W0.reshape(K_HOPS + 1, feat[0], feat[1]).sum(axis=1)     # (K+1, F1)
    cs = cs.at[0].add(b0)
    w0cs = jnp.zeros((K_HOPS + 1, fp[1]), jnp.float32).at[:, :feat[1]].set(cs)

    return {
        "matmul_dtype": matmul_dtype,
        "feat": feat, "fp": fp,
        "packed_fwd": packed_fwd, "packed_bwd": packed_bwd,
        "wf": wf_list, "wb": wb_list, "b": b_list, "w0cs": w0cs,
    }


# ---------------------------------------------------------------------------
# Wrapper: pad A/x, single pallas_call, unpad outputs.
# ---------------------------------------------------------------------------
def lrp_model_forward(A, x, prep):
    mmdt = prep["matmul_dtype"]
    feat, fp = prep["feat"], prep["fp"]
    N, F0 = x.shape
    assert F0 == feat[0]
    Np = _round_up(N, LANE)      # lane-dense A rows, clean MXU contraction dim

    A_p = jnp.pad(jnp.asarray(A, jnp.float32).astype(mmdt),
                  ((0, Np - N), (0, Np - N)))
    X_p = jnp.pad(jnp.asarray(x, jnp.float32).astype(mmdt),
                  ((0, Np - N), (0, fp[0] - F0)))

    # VMEM residency estimate -> vmem_limit_bytes (with per-generation cap)
    itm = jnp.dtype(mmdt).itemsize
    w_bytes = sum(int(w.size) * itm for w in prep["wf"] + prep["wb"])
    w_bytes += sum(int(b.size) * 4 for b in prep["b"]) + int(prep["w0cs"].size) * 4
    in_bytes = Np * Np * itm + Np * fp[0] * itm + w_bytes
    out_bytes = 4 * Np * (fp[0] + fp[1] + fp[2] + fp[3])
    act_bytes = (4 + itm) * Np * (fp[1] + fp[2] + fp[3])      # f32 acts + mm copies
    tmp_bytes = 4 * Np * max(fp) * 4 + (0 if itm == 4 else 4 * Np * Np)
    resident = in_bytes + out_bytes + act_bytes + tmp_bytes
    vmem_limit = int(min(_vmem_cap_bytes(), max(32 << 20, int(1.8 * resident))))

    flops = 0
    for l in range(3):
        flops += 2 * K_HOPS * Np * Np * fp[l]                 # forward A-hops
        flops += 2 * (K_HOPS + 1) * Np * fp[l] * fp[l + 1]    # forward weights
        flops += 2 * K_HOPS * Np * Np * fp[l + 1]             # backward A-hops
        flops += 2 * (K_HOPS + 1) * Np * fp[l + 1] * fp[l]    # backward weights
    flops += 4 * Np * Np                                      # z0 row-sum algebra

    vmem_spec = pl.BlockSpec(memory_space=pltpu.MemorySpace.VMEM)
    out_shapes = (
        jax.ShapeDtypeStruct((Np, fp[3]), jnp.float32),       # network output (seed)
        jax.ShapeDtypeStruct((Np, fp[2]), jnp.float32),       # R after LRP layer 2
        jax.ShapeDtypeStruct((Np, fp[1]), jnp.float32),       # R after LRP layer 1
        jax.ShapeDtypeStruct((Np, fp[0]), jnp.float32),       # R after LRP layer 0
    )

    kernel = _make_fused_kernel(mmdt, tuple(feat),
                                tuple(prep["packed_fwd"]), tuple(prep["packed_bwd"]))
    outs = pl.pallas_call(
        kernel,
        out_shape=out_shapes,
        in_specs=[vmem_spec] * 12,
        out_specs=(vmem_spec,) * 4,
        compiler_params=pltpu.CompilerParams(vmem_limit_bytes=vmem_limit),
        cost_estimate=pl.CostEstimate(flops=int(flops), transcendentals=0,
                                      bytes_accessed=int(in_bytes + out_bytes)),
    )(A_p, X_p,
      prep["wf"][0], prep["wb"][0], prep["b"][0], prep["w0cs"],
      prep["wf"][1], prep["wb"][1], prep["b"][1],
      prep["wf"][2], prep["wb"][2], prep["b"][2])

    y3, r2, r1, r0 = outs
    return [y3[:N, :feat[3]], r2[:N, :feat[2]], r1[:N, :feat[1]], r0[:N, :feat[0]]]


# ---------------------------------------------------------------------------
# Plain-JAX reference (same math, unpadded) for a sanity check only.
# ---------------------------------------------------------------------------
def _ref_tag_forward(A, h, W, b):
    fin = h.shape[1]
    Wk = W.reshape(K_HOPS + 1, fin, -1)
    y = h @ Wk[0] + b[None, :]
    hk = h
    for k in range(1, K_HOPS + 1):
        hk = A @ hk
        y = y + hk @ Wk[k]
    return y


def _ref_lrp(A, a, R, z, W):
    fin = a.shape[1]
    Wk = W.reshape(K_HOPS + 1, fin, -1)
    s = R / (z + LRP_EPS)
    g = s
    c = g @ Wk[0].T
    for k in range(1, K_HOPS + 1):
        g = A @ g
        c = c + g @ Wk[k].T
    return a * c


def _ref_lrp_model(A, x, params):
    y1 = _ref_tag_forward(A, x, params[0][0], params[0][1])
    y2 = _ref_tag_forward(A, y1, params[1][0], params[1][1])
    y3 = _ref_tag_forward(A, y2, params[2][0], params[2][1])
    out = [y3]
    r = _ref_lrp(A, y2, y3, y3, params[2][0])
    out.append(r)
    r = _ref_lrp(A, y1, r, y2, params[1][0])
    out.append(r)
    ones = jnp.ones_like(x)
    z0 = _ref_tag_forward(A, ones, params[0][0], params[0][1])
    r = _ref_lrp(A, ones, r, z0, params[0][0])
    out.append(r)
    return out


if __name__ == "__main__":
    # small shapes: N=8 nodes, in_feats=16, hidden=32, out_feats=8
    N, FIN, HID, FOUT = 8, 16, 32, 8
    key = jax.random.PRNGKey(0)
    k_adj, k_x, k_w0, k_b0, k_w1, k_b1, k_w2, k_b2 = jax.random.split(key, 8)

    # deterministic random graph: symmetric 0/1 adjacency with self loops,
    # symmetric normalization A_hat = D^{-1/2} A D^{-1/2}
    A_rand = (jax.random.uniform(k_adj, (N, N)) > 0.6).astype(jnp.float32)
    A_bin = jnp.clip(A_rand + A_rand.T + jnp.eye(N, dtype=jnp.float32), 0.0, 1.0)
    deg = A_bin.sum(axis=1)
    dinv_sqrt = 1.0 / jnp.sqrt(deg)
    A_hat = (A_bin * dinv_sqrt[:, None]) * dinv_sqrt[None, :]

    # node features (graph.ndata['h'])
    x = jax.random.normal(k_x, (N, FIN), dtype=jnp.float32)

    # deterministic TAGConv parameters: W_l of shape ((K+1)*in, out), hop-major rows
    params = [
        (0.1 * jax.random.normal(k_w0, ((K_HOPS + 1) * FIN, HID), jnp.float32),
         0.1 * jax.random.normal(k_b0, (HID,), jnp.float32)),
        (0.1 * jax.random.normal(k_w1, ((K_HOPS + 1) * HID, HID), jnp.float32),
         0.1 * jax.random.normal(k_b1, (HID,), jnp.float32)),
        (0.1 * jax.random.normal(k_w2, ((K_HOPS + 1) * HID, FOUT), jnp.float32),
         0.1 * jax.random.normal(k_b2, (FOUT,), jnp.float32)),
    ]

    # plain-JAX reference (full f32 matmuls)
    with jax.default_matmul_precision("highest"):
        ref_rel = _ref_lrp_model(A_hat, x, params)
        ref_rel = [jax.block_until_ready(r) for r in ref_rel]

    # --- exact f32 path: strict check ---
    prep_f32 = prepare_lrp_params(params, matmul_dtype=jnp.float32)
    rel_f32 = lrp_model_forward(A_hat, x, prep_f32)
    rel_f32 = [jax.block_until_ready(r) for r in rel_f32]
    for got, ref in zip(rel_f32, ref_rel):
        assert got.shape == ref.shape, "shape mismatch vs reference"
        assert jnp.allclose(got, ref, rtol=1e-3, atol=1e-4), "f32 mismatch vs reference"

    # --- default path (bf16 MXU inputs on v6e/v7x): looser sanity check ---
    prep_auto = prepare_lrp_params(params)
    rel_auto = lrp_model_forward(A_hat, x, prep_auto)
    rel_auto = [jax.block_until_ready(r) for r in rel_auto]
    if jnp.dtype(prep_auto["matmul_dtype"]) == jnp.dtype(jnp.float32):
        for got, ref in zip(rel_auto, ref_rel):
            assert jnp.allclose(got, ref, rtol=1e-3, atol=1e-4), "auto-path mismatch"
    else:
        for got, ref in zip(rel_auto, ref_rel):
            assert got.shape == ref.shape, "shape mismatch vs reference (auto path)"
            assert bool(jnp.all(jnp.isfinite(got))), "non-finite relevance (auto path)"
        # forward output (no LRP-division amplification) must track the reference
        assert jnp.allclose(rel_auto[0], ref_rel[0], rtol=1e-1, atol=1e-1), \
            "bf16 forward output mismatch vs reference"

    print("KERNEL_OK")
</pallas_src>

<mosaic_0001>
module attributes {stable_mosaic.version = 11 : i64} {
  func.func @kernel(%arg0: memref<128x128xf32, #tpu.memory_space<vmem>>, %arg1: memref<128x128xf32, #tpu.memory_space<vmem>>, %arg2: memref<128x128xf32, #tpu.memory_space<vmem>>, %arg3: memref<128x128xf32, #tpu.memory_space<vmem>>, %arg4: memref<1x128xf32, #tpu.memory_space<vmem>>, %arg5: memref<3x128xf32, #tpu.memory_space<vmem>>, %arg6: memref<128x128xf32, #tpu.memory_space<vmem>>, %arg7: memref<128x128xf32, #tpu.memory_space<vmem>>, %arg8: memref<1x128xf32, #tpu.memory_space<vmem>>, %arg9: memref<128x128xf32, #tpu.memory_space<vmem>>, %arg10: memref<128x128xf32, #tpu.memory_space<vmem>>, %arg11: memref<1x128xf32, #tpu.memory_space<vmem>>, %arg12: memref<128x128xf32, #tpu.memory_space<vmem>>, %arg13: memref<128x128xf32, #tpu.memory_space<vmem>>, %arg14: memref<128x128xf32, #tpu.memory_space<vmem>>, %arg15: memref<128x128xf32, #tpu.memory_space<vmem>>) attributes {dimension_semantics = [], scalar_prefetch = 0 : i64, scratch_operands = 0 : i64, tpu.core_type = #tpu.core_type<tc>} {
    %c0 = arith.constant 0 : index
    %c0_0 = arith.constant 0 : index
    %0 = vector.load %arg0[%c0, %c0_0] : memref<128x128xf32, #tpu.memory_space<vmem>>, vector<128x128xf32>
    %c0_1 = arith.constant 0 : index
    %c0_2 = arith.constant 0 : index
    %1 = vector.load %arg1[%c0_1, %c0_2] : memref<128x128xf32, #tpu.memory_space<vmem>>, vector<128x128xf32>
    %cst = arith.constant dense<0.000000e+00> : vector<128x128xf32>
    %2 = tpu.matmul %0, %1, %cst {dimension_numbers = #tpu.dot_dimension_numbers<[1], [0], [0], [1], [0, 0, 1, 1], [], []>} : vector<128x128xf32>, vector<128x128xf32>, vector<128x128xf32> -> vector<128x128xf32>
    %cst_3 = arith.constant dense<0.000000e+00> : vector<128x128xf32>
    %3 = tpu.matmul %0, %2, %cst_3 {dimension_numbers = #tpu.dot_dimension_numbers<[1], [0], [0], [1], [0, 0, 1, 1], [], []>} : vector<128x128xf32>, vector<128x128xf32>, vector<128x128xf32> -> vector<128x128xf32>
    %c16_i32 = arith.constant 16 : i32
    %4 = tpu.dynamic_rotate %2 by %c16_i32 dim 1 : vector<128x128xf32>, i32 -> vector<128x128xf32>
    %5 = arith.addf %1, %4 : vector<128x128xf32>
    %c32_i32 = arith.constant 32 : i32
    %6 = tpu.dynamic_rotate %3 by %c32_i32 dim 1 : vector<128x128xf32>, i32 -> vector<128x128xf32>
    %7 = arith.addf %5, %6 : vector<128x128xf32>
    %c0_4 = arith.constant 0 : index
    %c0_5 = arith.constant 0 : index
    %8 = vector.load %arg2[%c0_4, %c0_5] : memref<128x128xf32, #tpu.memory_space<vmem>>, vector<128x128xf32>
    %cst_6 = arith.constant dense<0.000000e+00> : vector<128x128xf32>
    %9 = tpu.matmul %7, %8, %cst_6 {dimension_numbers = #tpu.dot_dimension_numbers<[1], [0], [0], [1], [0, 0, 1, 1], [], []>} : vector<128x128xf32>, vector<128x128xf32>, vector<128x128xf32> -> vector<128x128xf32>
    %c0_7 = arith.constant 0 : index
    %c0_8 = arith.constant 0 : index
    %10 = vector.load %arg4[%c0_7, %c0_8] : memref<1x128xf32, #tpu.memory_space<vmem>>, vector<1x128xf32>
    %11 = vector.broadcast %10 : vector<1x128xf32> to vector<128x128xf32>
    %12 = arith.addf %9, %11 : vector<128x128xf32>
    %cst_9 = arith.constant dense<0.000000e+00> : vector<128x128xf32>
    %13 = tpu.matmul %0, %12, %cst_9 {dimension_numbers = #tpu.dot_dimension_numbers<[1], [0], [0], [1], [0, 0, 1, 1], [], []>} : vector<128x128xf32>, vector<128x128xf32>, vector<128x128xf32> -> vector<128x128xf32>
    %cst_10 = arith.constant dense<0.000000e+00> : vector<128x128xf32>
    %14 = tpu.matmul %0, %13, %cst_10 {dimension_numbers = #tpu.dot_dimension_numbers<[1], [0], [0], [1], [0, 0, 1, 1], [], []>} : vector<128x128xf32>, vector<128x128xf32>, vector<128x128xf32> -> vector<128x128xf32>
    %c32_i32_11 = arith.constant 32 : i32
    %15 = tpu.dynamic_rotate %13 by %c32_i32_11 dim 1 : vector<128x128xf32>, i32 -> vector<128x128xf32>
    %16 = arith.addf %12, %15 : vector<128x128xf32>
    %c64_i32 = arith.constant 64 : i32
    %17 = tpu.dynamic_rotate %14 by %c64_i32 dim 1 : vector<128x128xf32>, i32 -> vector<128x128xf32>
    %18 = arith.addf %16, %17 : vector<128x128xf32>
    %c0_12 = arith.constant 0 : index
    %c0_13 = arith.constant 0 : index
    %19 = vector.load %arg6[%c0_12, %c0_13] : memref<128x128xf32, #tpu.memory_space<vmem>>, vector<128x128xf32>
    %cst_14 = arith.constant dense<0.000000e+00> : vector<128x128xf32>
    %20 = tpu.matmul %18, %19, %cst_14 {dimension_numbers = #tpu.dot_dimension_numbers<[1], [0], [0], [1], [0, 0, 1, 1], [], []>} : vector<128x128xf32>, vector<128x128xf32>, vector<128x128xf32> -> vector<128x128xf32>
    %c0_15 = arith.constant 0 : index
    %c0_16 = arith.constant 0 : index
    %21 = vector.load %arg8[%c0_15, %c0_16] : memref<1x128xf32, #tpu.memory_space<vmem>>, vector<1x128xf32>
    %22 = vector.broadcast %21 : vector<1x128xf32> to vector<128x128xf32>
    %23 = arith.addf %20, %22 : vector<128x128xf32>
    %cst_17 = arith.constant dense<0.000000e+00> : vector<128x128xf32>
    %24 = tpu.matmul %0, %23, %cst_17 {dimension_numbers = #tpu.dot_dimension_numbers<[1], [0], [0], [1], [0, 0, 1, 1], [], []>} : vector<128x128xf32>, vector<128x128xf32>, vector<128x128xf32> -> vector<128x128xf32>
    %cst_18 = arith.constant dense<0.000000e+00> : vector<128x128xf32>
    %25 = tpu.matmul %0, %24, %cst_18 {dimension_numbers = #tpu.dot_dimension_numbers<[1], [0], [0], [1], [0, 0, 1, 1], [], []>} : vector<128x128xf32>, vector<128x128xf32>, vector<128x128xf32> -> vector<128x128xf32>
    %c32_i32_19 = arith.constant 32 : i32
    %26 = tpu.dynamic_rotate %24 by %c32_i32_19 dim 1 : vector<128x128xf32>, i32 -> vector<128x128xf32>
    %27 = arith.addf %23, %26 : vector<128x128xf32>
    %c64_i32_20 = arith.constant 64 : i32
    %28 = tpu.dynamic_rotate %25 by %c64_i32_20 dim 1 : vector<128x128xf32>, i32 -> vector<128x128xf32>
    %29 = arith.addf %27, %28 : vector<128x128xf32>
    %c0_21 = arith.constant 0 : index
    %c0_22 = arith.constant 0 : index
    %30 = vector.load %arg9[%c0_21, %c0_22] : memref<128x128xf32, #tpu.memory_space<vmem>>, vector<128x128xf32>
    %cst_23 = arith.constant dense<0.000000e+00> : vector<128x128xf32>
    %31 = tpu.matmul %29, %30, %cst_23 {dimension_numbers = #tpu.dot_dimension_numbers<[1], [0], [0], [1], [0, 0, 1, 1], [], []>} : vector<128x128xf32>, vector<128x128xf32>, vector<128x128xf32> -> vector<128x128xf32>
    %c0_24 = arith.constant 0 : index
    %c0_25 = arith.constant 0 : index
    %32 = vector.load %arg11[%c0_24, %c0_25] : memref<1x128xf32, #tpu.memory_space<vmem>>, vector<1x128xf32>
    %33 = vector.broadcast %32 : vector<1x128xf32> to vector<128x128xf32>
    %34 = arith.addf %31, %33 : vector<128x128xf32>
    %c0_26 = arith.constant 0 : index
    %c0_27 = arith.constant 0 : index
    %35 = vector.load %arg12[%c0_26, %c0_27] : memref<128x128xf32, #tpu.memory_space<vmem>>, vector<128x128xf32>
    tpu.vector_store %arg12[%c0_26, %c0_27], %34 {strides = array<i32>} : memref<128x128xf32, #tpu.memory_space<vmem>>, vector<128x128xf32>,
    %cst_28 = arith.constant 9.99999997E-7 : f32
    %36 = vector.broadcast %cst_28 : f32 to vector<128x128xf32>
    %37 = arith.addf %34, %36 : vector<128x128xf32>
    %38 = arith.divf %34, %37 : vector<128x128xf32>
    %cst_29 = arith.constant dense<0.000000e+00> : vector<128x128xf32>
    %39 = tpu.matmul %0, %38, %cst_29 {dimension_numbers = #tpu.dot_dimension_numbers<[1], [0], [0], [1], [0, 0, 1, 1], [], []>} : vector<128x128xf32>, vector<128x128xf32>, vector<128x128xf32> -> vector<128x128xf32>
    %cst_30 = arith.constant dense<0.000000e+00> : vector<128x128xf32>
    %40 = tpu.matmul %0, %39, %cst_30 {dimension_numbers = #tpu.dot_dimension_numbers<[1], [0], [0], [1], [0, 0, 1, 1], [], []>} : vector<128x128xf32>, vector<128x128xf32>, vector<128x128xf32> -> vector<128x128xf32>
    %c8_i32 = arith.constant 8 : i32
    %41 = tpu.dynamic_rotate %39 by %c8_i32 dim 1 : vector<128x128xf32>, i32 -> vector<128x128xf32>
    %42 = arith.addf %38, %41 : vector<128x128xf32>
    %c16_i32_31 = arith.constant 16 : i32
    %43 = tpu.dynamic_rotate %40 by %c16_i32_31 dim 1 : vector<128x128xf32>, i32 -> vector<128x128xf32>
    %44 = arith.addf %42, %43 : vector<128x128xf32>
    %c0_32 = arith.constant 0 : index
    %c0_33 = arith.constant 0 : index
    %45 = vector.load %arg10[%c0_32, %c0_33] : memref<128x128xf32, #tpu.memory_space<vmem>>, vector<128x128xf32>
    %cst_34 = arith.constant dense<0.000000e+00> : vector<128x128xf32>
    %46 = tpu.matmul %44, %45, %cst_34 {dimension_numbers = #tpu.dot_dimension_numbers<[1], [0], [0], [1], [0, 0, 1, 1], [], []>} : vector<128x128xf32>, vector<128x128xf32>, vector<128x128xf32> -> vector<128x128xf32>
    %47 = arith.mulf %23, %46 : vector<128x128xf32>
    %c0_35 = arith.constant 0 : index
    %c0_36 = arith.constant 0 : index
    %48 = vector.load %arg13[%c0_35, %c0_36] : memref<128x128xf32, #tpu.memory_space<vmem>>, vector<128x128xf32>
    tpu.vector_store %arg13[%c0_35, %c0_36], %47 {strides = array<i32>} : memref<128x128xf32, #tpu.memory_space<vmem>>, vector<128x128xf32>,
    %cst_37 = arith.constant 9.99999997E-7 : f32
    %49 = vector.broadcast %cst_37 : f32 to vector<128x128xf32>
    %50 = arith.addf %23, %49 : vector<128x128xf32>
    %51 = arith.divf %47, %50 : vector<128x128xf32>
    %cst_38 = arith.constant dense<0.000000e+00> : vector<128x128xf32>
    %52 = tpu.matmul %0, %51, %cst_38 {dimension_numbers = #tpu.dot_dimension_numbers<[1], [0], [0], [1], [0, 0, 1, 1], [], []>} : vector<128x128xf32>, vector<128x128xf32>, vector<128x128xf32> -> vector<128x128xf32>
    %cst_39 = arith.constant dense<0.000000e+00> : vector<128x128xf32>
    %53 = tpu.matmul %0, %52, %cst_39 {dimension_numbers = #tpu.dot_dimension_numbers<[1], [0], [0], [1], [0, 0, 1, 1], [], []>} : vector<128x128xf32>, vector<128x128xf32>, vector<128x128xf32> -> vector<128x128xf32>
    %c32_i32_40 = arith.constant 32 : i32
    %54 = tpu.dynamic_rotate %52 by %c32_i32_40 dim 1 : vector<128x128xf32>, i32 -> vector<128x128xf32>
    %55 = arith.addf %51, %54 : vector<128x128xf32>
    %c64_i32_41 = arith.constant 64 : i32
    %56 = tpu.dynamic_rotate %53 by %c64_i32_41 dim 1 : vector<128x128xf32>, i32 -> vector<128x128xf32>
    %57 = arith.addf %55, %56 : vector<128x128xf32>
    %c0_42 = arith.constant 0 : index
    %c0_43 = arith.constant 0 : index
    %58 = vector.load %arg7[%c0_42, %c0_43] : memref<128x128xf32, #tpu.memory_space<vmem>>, vector<128x128xf32>
    %cst_44 = arith.constant dense<0.000000e+00> : vector<128x128xf32>
    %59 = tpu.matmul %57, %58, %cst_44 {dimension_numbers = #tpu.dot_dimension_numbers<[1], [0], [0], [1], [0, 0, 1, 1], [], []>} : vector<128x128xf32>, vector<128x128xf32>, vector<128x128xf32> -> vector<128x128xf32>
    %60 = arith.mulf %12, %59 : vector<128x128xf32>
    %c0_45 = arith.constant 0 : index
    %c0_46 = arith.constant 0 : index
    %61 = vector.load %arg14[%c0_45, %c0_46] : memref<128x128xf32, #tpu.memory_space<vmem>>, vector<128x128xf32>
    tpu.vector_store %arg14[%c0_45, %c0_46], %60 {strides = array<i32>} : memref<128x128xf32, #tpu.memory_space<vmem>>, vector<128x128xf32>,
    %c0_47 = arith.constant 0 : index
    %c0_48 = arith.constant 0 : index
    %62 = vector.load %arg5[%c0_47, %c0_48] : memref<3x128xf32, #tpu.memory_space<vmem>>, vector<3x128xf32>
    %cst_49 = arith.constant dense<0.000000e+00> : vector<128xf32>
    %63 = vector.multi_reduction <add>, %0, %cst_49 [1] : vector<128x128xf32> to vector<128xf32>
    %64 = vector.shape_cast %63 : vector<128xf32> to vector<128x1xf32>
    %cst_50 = arith.constant dense<0.000000e+00> : vector<128xf32>
    %65 = vector.multi_reduction <add>, %0, %cst_50 [0] : vector<128x128xf32> to vector<128xf32>
    %66 = vector.shape_cast %65 : vector<128xf32> to vector<1x128xf32>
    %67 = vector.extract_strided_slice %62 {offsets = [0, 0], sizes = [1, 128], strides = [1, 1]} : vector<3x128xf32> to vector<1x128xf32>
    %68 = vector.extract_strided_slice %62 {offsets = [1, 0], sizes = [1, 128], strides = [1, 1]} : vector<3x128xf32> to vector<1x128xf32>
    %69 = vector.broadcast %64 : vector<128x1xf32> to vector<128x128xf32>
    %70 = vector.broadcast %68 : vector<1x128xf32> to vector<128x128xf32>
    %71 = arith.mulf %69, %70 : vector<128x128xf32>
    %72 = vector.broadcast %67 : vector<1x128xf32> to vector<128x128xf32>
    %73 = arith.addf %72, %71 : vector<128x128xf32>
    %74 = vector.broadcast %66 : vector<1x128xf32> to vector<128x128xf32>
    %75 = arith.mulf %0, %74 : vector<128x128xf32>
    %cst_51 = arith.constant dense<0.000000e+00> : vector<128xf32>
    %76 = vector.multi_reduction <add>, %75, %cst_51 [1] : vector<128x128xf32> to vector<128xf32>
    %77 = vector.shape_cast %76 : vector<128xf32> to vector<128x1xf32>
    %78 = vector.extract_strided_slice %62 {offsets = [2, 0], sizes = [1, 128], strides = [1, 1]} : vector<3x128xf32> to vector<1x128xf32>
    %79 = vector.broadcast %77 : vector<128x1xf32> to vector<128x128xf32>
    %80 = vector.broadcast %78 : vector<1x128xf32> to vector<128x128xf32>
    %81 = arith.mulf %79, %80 : vector<128x128xf32>
    %82 = arith.addf %73, %81 : vector<128x128xf32>
    %cst_52 = arith.constant 9.99999997E-7 : f32
    %83 = vector.broadcast %cst_52 : f32 to vector<128x128xf32>
    %84 = arith.addf %82, %83 : vector<128x128xf32>
    %85 = arith.divf %60, %84 : vector<128x128xf32>
    %cst_53 = arith.constant dense<0.000000e+00> : vector<128x128xf32>
    %86 = tpu.matmul %0, %85, %cst_53 {dimension_numbers = #tpu.dot_dimension_numbers<[1], [0], [0], [1], [0, 0, 1, 1], [], []>} : vector<128x128xf32>, vector<128x128xf32>, vector<128x128xf32> -> vector<128x128xf32>
    %cst_54 = arith.constant dense<0.000000e+00> : vector<128x128xf32>
    %87 = tpu.matmul %0, %86, %cst_54 {dimension_numbers = #tpu.dot_dimension_numbers<[1], [0], [0], [1], [0, 0, 1, 1], [], []>} : vector<128x128xf32>, vector<128x128xf32>, vector<128x128xf32> -> vector<128x128xf32>
    %c32_i32_55 = arith.constant 32 : i32
    %88 = tpu.dynamic_rotate %86 by %c32_i32_55 dim 1 : vector<128x128xf32>, i32 -> vector<128x128xf32>
    %89 = arith.addf %85, %88 : vector<128x128xf32>
    %c64_i32_56 = arith.constant 64 : i32
    %90 = tpu.dynamic_rotate %87 by %c64_i32_56 dim 1 : vector<128x128xf32>, i32 -> vector<128x128xf32>
    %91 = arith.addf %89, %90 : vector<128x128xf32>
    %c0_57 = arith.constant 0 : index
    %c0_58 = arith.constant 0 : index
    %92 = vector.load %arg3[%c0_57, %c0_58] : memref<128x128xf32, #tpu.memory_space<vmem>>, vector<128x128xf32>
    %cst_59 = arith.constant dense<0.000000e+00> : vector<128x128xf32>
    %93 = tpu.matmul %91, %92, %cst_59 {dimension_numbers = #tpu.dot_dimension_numbers<[1], [0], [0], [1], [0, 0, 1, 1], [], []>} : vector<128x128xf32>, vector<128x128xf32>, vector<128x128xf32> -> vector<128x128xf32>
    %c0_60 = arith.constant 0 : index
    %c0_61 = arith.constant 0 : index
    %94 = vector.load %arg15[%c0_60, %c0_61] : memref<128x128xf32, #tpu.memory_space<vmem>>, vector<128x128xf32>
    tpu.vector_store %arg15[%c0_60, %c0_61], %93 {strides = array<i32>} : memref<128x128xf32, #tpu.memory_space<vmem>>, vector<128x128xf32>,
    return
  }
}

</mosaic_0001>

<bundles_post_ra>
// kernel: tpu_custom_call.1
= control target key start
LH: loop header
LB: loop body
LE: loop exit
PB: predicated region body
PF: predicated region fallthrough
CT: control target
= control target key end

     0   :  { %21 = vsyncpa [#allocation3], 0  ;;  %s8007_s0 = inlined_call_operand.hbm [shape: f32[128,128], index: 0, kind: input, shape index: {}]   ;;  %s8008_s1 = inlined_call_operand.hbm [shape: f32[128,128], index: 1, kind: input, shape index: {}]   ;;  %s8009_s2 = inlined_call_operand.hbm [shape: f32[128,128], index: 2, kind: input, shape index: {}]   ;;  %s8010_s3 = inlined_call_operand.hbm [shape: f32[128,128], index: 3, kind: input, shape index: {}]   ;;  %s8011_s4 = inlined_call_operand.vmem [shape: f32[1,128], index: 4, kind: input, shape index: {}]   ;;  %s8012_s5 = inlined_call_operand.vmem [shape: f32[3,128], index: 5, kind: input, shape index: {}]   ;;  %s8013_s6 = inlined_call_operand.hbm [shape: f32[128,128], index: 6, kind: input, shape index: {}]   ;;  %s8014_s7 = inlined_call_operand.hbm [shape: f32[128,128], index: 7, kind: input, shape index: {}]   ;;  %s8015_s8 = inlined_call_operand.vmem [shape: f32[1,128], index: 8, kind: input, shape index: {}]   ;;  %s8016_s9 = inlined_call_operand.hbm [shape: f32[128,128], index: 9, kind: input, shape index: {}]   ;;  %s8017_s10 = inlined_call_operand.hbm [shape: f32[128,128], index: 10, kind: input, shape index: {}]   ;;  %s8018_s11 = inlined_call_operand.vmem [shape: f32[1,128], index: 11, kind: input, shape index: {}]   ;;  %s8019_s12 = inlined_call_operand.hbm [shape: f32[128,128], index: 12, kind: output, shape index: {0}]   ;;  %s8020_s13 = inlined_call_operand.hbm [shape: f32[128,128], index: 13, kind: output, shape index: {1}]   ;;  %s8021_s14 = inlined_call_operand.hbm [shape: f32[128,128], index: 14, kind: output, shape index: {2}]   ;;  %s8022_s15 = inlined_call_operand.hbm [shape: f32[128,128], index: 15, kind: output, shape index: {3}]  }
   0x1   :  { %22 = vsyncpa [#allocation6], 0 }
   0x2   :  { %23 = vsyncpa [#allocation9], 0 }
   0x3   :  { %24 = vsyncpa [#allocation12], 0 }
   0x4   :  { %25 = vsyncpa [#allocation15], 0 }
   0x5   :  { %26 = vsyncpa [#allocation4], 0 }
   0x6   :  { %27 = vsyncpa [#allocation18], 0 }
   0x7   :  { %28 = vsyncpa [#allocation21], 0  ;;  %s6582_s18 = smov [#allocation5]   ;;  %s6583_s20 = smov [#allocation8]  }
   0x8   :  { %s46_s19 = sshll.u32 %s6582_s18, 4  ;;  %s70_s21 = sshll.u32 %s6583_s20, 4  ;;  %s47_s19 = int_to_ptr.vmem [resolvable:$true] %s46_s19  ;;  %s6679_s21 = int_to_ptr.vmem [resolvable:$true] %s70_s21 }
   0x9   :  { %s6302_s24 = scalar_lea.hbm %s8008_s1, 2048 }
   0xa   :  { %p6303_p0 = scmp.ne.s32.totalorder %s8008_s1, %s6302_s24  ;;  %p6306_p1 = scmp.lt.u32.totalorder %s6302_s24, %s8008_s1 }
   0xc   :  { %p6308_p2 = pnand %p6306_p1, %p6303_p0 }
   0xe   :  { %6311 = shalt.err (!%p6308_p2)
}
   0xf   :  { %s6312_s29 = scalar_lea.vmem %s47_s19, 2048  ;;  %p6317_p4 = scmp.lt.s32.totalorder %s47_s19, %s47_s19 }
  0x10   :  { %p6313_p3 = scmp.ne.s32.totalorder %s47_s19, %s6312_s29  ;;  %p6318_p5 = scmp.lt.s32.totalorder %s6312_s29, %s6312_s29 }
  0x12   :  { %p6319_p6 = por %p6318_p5, %p6317_p4 }
  0x14   :  { %p6320_p7 = pnand %p6319_p6, %p6313_p3 }
  0x16   :  { %6323 = shalt.err (!%p6320_p7)
}
  0x17   :  { %s6584_s30 = smov 128   ;;  %s6585_s16 = smov 8  }
  0x18   :  { %52 = dma.hbm_to_vmem [thread:$0]  %s8008_s1, 2048, %s47_s19, [#allocation6], %s6584_s30, %s6584_s30, %s6585_s16  }
  0x19   :  { %s6324_s23 = scalar_lea.hbm %s8010_s3, 2048 }
  0x1a   :  { %p6325_p8 = scmp.ne.s32.totalorder %s8010_s3, %s6324_s23  ;;  %p6328_p9 = scmp.lt.u32.totalorder %s6324_s23, %s8010_s3 }
  0x1c   :  { %p6330_p10 = pnand %p6328_p9, %p6325_p8 }
  0x1e   :  { %6333 = shalt.err (!%p6330_p10)
}
  0x1f   :  { %s6334_s28 = scalar_lea.vmem %s6679_s21, 2048  ;;  %p6339_p12 = scmp.lt.s32.totalorder %s6679_s21, %s6679_s21 }
  0x20   :  { %p6335_p11 = scmp.ne.s32.totalorder %s6679_s21, %s6334_s28  ;;  %p6340_p13 = scmp.lt.s32.totalorder %s6334_s28, %s6334_s28 }
  0x22   :  { %p6341_p0 = por %p6340_p13, %p6339_p12 }
  0x24   :  { %p6342_p1 = pnand %p6341_p0, %p6335_p11 }
  0x26   :  { %6345 = shalt.err (!%p6342_p1)
}
  0x27   :  { %76 = dma.hbm_to_vmem [thread:$0]  %s8010_s3, 2048, %s6679_s21, [#allocation9], %s6584_s30, %s6584_s30, %s6585_s16  }
  0x28   :  { %s6586_s29 = smov [#allocation11]   ;;  %s6587_s18 = smov [#allocation2]  }
  0x29   :  { %s98_s17 = sshll.u32 %s6586_s29, 4  ;;  %s34_s20 = sshll.u32 %s6587_s18, 4  ;;  %s99_s17 = int_to_ptr.vmem [resolvable:$true] %s98_s17  ;;  %s6716_s20 = int_to_ptr.vmem [resolvable:$true] %s34_s20 }
  0x2a   :  { %s6346_s24 = scalar_lea.hbm %s8014_s7, 2048 }
  0x2b   :  { %p6347_p2 = scmp.ne.s32.totalorder %s8014_s7, %s6346_s24  ;;  %p6350_p3 = scmp.lt.u32.totalorder %s6346_s24, %s8014_s7 }
  0x2d   :  { %p6352_p4 = pnand %p6350_p3, %p6347_p2 }
  0x2f   :  { %6355 = shalt.err (!%p6352_p4)
}
  0x30   :  { %s6356_s3 = scalar_lea.vmem %s99_s17, 2048  ;;  %p6361_p6 = scmp.lt.s32.totalorder %s99_s17, %s99_s17 }
  0x31   :  { %p6357_p5 = scmp.ne.s32.totalorder %s99_s17, %s6356_s3  ;;  %p6362_p7 = scmp.lt.s32.totalorder %s6356_s3, %s6356_s3 }
  0x33   :  { %p6363_p8 = por %p6362_p7, %p6361_p6 }
  0x35   :  { %p6364_p9 = pnand %p6363_p8, %p6357_p5 }
  0x37   :  { %6367 = shalt.err (!%p6364_p9)
}
  0x38   :  { %104 = dma.hbm_to_vmem [thread:$0]  %s8014_s7, 2048, %s99_s17, [#allocation12], %s6584_s30, %s6584_s30, %s6585_s16  }
  0x39   :  { %s6368_s18 = scalar_lea.hbm %s8007_s0, 2048 }
  0x3a   :  { %p6369_p10 = scmp.ne.s32.totalorder %s8007_s0, %s6368_s18  ;;  %p6372_p11 = scmp.lt.u32.totalorder %s6368_s18, %s8007_s0 }
  0x3c   :  { %p6374_p12 = pnand %p6372_p11, %p6369_p10 }
  0x3e   :  { %6377 = shalt.err (!%p6374_p12)
}
  0x3f   :  { %s6378_s26 = scalar_lea.vmem %s6716_s20, 2048  ;;  %p6383_p0 = scmp.lt.s32.totalorder %s6716_s20, %s6716_s20 }
  0x40   :  { %p6379_p13 = scmp.ne.s32.totalorder %s6716_s20, %s6378_s26  ;;  %p6384_p1 = scmp.lt.s32.totalorder %s6378_s26, %s6378_s26 }
  0x42   :  { %p6385_p2 = por %p6384_p1, %p6383_p0 }
  0x44   :  { %p6386_p3 = pnand %p6385_p2, %p6379_p13 }
  0x46   :  { %6389 = shalt.err (!%p6386_p3)
}
  0x47   :  { %40 = dma.hbm_to_vmem [thread:$0]  %s8007_s0, 2048, %s6716_s20, [#allocation3], %s6584_s30, %s6584_s30, %s6585_s16  }
  0x48   :  { %s6588_s27 = smov [#allocation7]   ;;  %s6589_s3 = smov [#allocation10]  }
  0x49   :  { %s58_s28 = sshll.u32 %s6588_s27, 4  ;;  %s86_s21 = sshll.u32 %s6589_s3, 4  ;;  %s59_s28 = int_to_ptr.vmem [resolvable:$true] %s58_s28  ;;  %s6753_s21 = int_to_ptr.vmem [resolvable:$true] %s86_s21 }
  0x4a   :  { %s6390_s29 = scalar_lea.hbm %s8009_s2, 2048 }
  0x4b   :  { %p6391_p4 = scmp.ne.s32.totalorder %s8009_s2, %s6390_s29  ;;  %p6394_p5 = scmp.lt.u32.totalorder %s6390_s29, %s8009_s2 }
  0x4d   :  { %p6396_p6 = pnand %p6394_p5, %p6391_p4 }
  0x4f   :  { %6399 = shalt.err (!%p6396_p6)
}
  0x50   :  { %s6400_s0 = scalar_lea.vmem %s59_s28, 2048  ;;  %p6405_p8 = scmp.lt.s32.totalorder %s59_s28, %s59_s28 }
  0x51   :  { %p6401_p7 = scmp.ne.s32.totalorder %s59_s28, %s6400_s0  ;;  %p6406_p9 = scmp.lt.s32.totalorder %s6400_s0, %s6400_s0 }
  0x53   :  { %p6407_p10 = por %p6406_p9, %p6405_p8 }
  0x55   :  { %p6408_p11 = pnand %p6407_p10, %p6401_p7 }
  0x57   :  { %6411 = shalt.err (!%p6408_p11)
}
  0x58   :  { %64 = dma.hbm_to_vmem [thread:$0]  %s8009_s2, 2048, %s59_s28, [#allocation6], %s6584_s30, %s6584_s30, %s6585_s16  }
  0x59   :  { %s6412_s17 = scalar_lea.hbm %s8013_s6, 2048 }
  0x5a   :  { %p6413_p12 = scmp.ne.s32.totalorder %s8013_s6, %s6412_s17  ;;  %p6416_p13 = scmp.lt.u32.totalorder %s6412_s17, %s8013_s6 }
  0x5c   :  { %p6418_p0 = pnand %p6416_p13, %p6413_p12 }
  0x5e   :  { %6421 = shalt.err (!%p6418_p0)
}
  0x5f   :  { %s6422_s29 = scalar_lea.vmem %s6753_s21, 2048  ;;  %p6427_p2 = scmp.lt.s32.totalorder %s6753_s21, %s6753_s21 }
  0x60   :  { %p6423_p1 = scmp.ne.s32.totalorder %s6753_s21, %s6422_s29  ;;  %p6428_p3 = scmp.lt.s32.totalorder %s6422_s29, %s6422_s29 }
  0x62   :  { %p6429_p4 = por %p6428_p3, %p6427_p2 }
  0x64   :  { %p6430_p5 = pnand %p6429_p4, %p6423_p1 }
  0x66   :  { %6433 = shalt.err (!%p6430_p5)
}
  0x67   :  { %92 = dma.hbm_to_vmem [thread:$0]  %s8013_s6, 2048, %s6753_s21, [#allocation9], %s6584_s30, %s6584_s30, %s6585_s16  }
  0x68   :  { %s6590_s18 = smov [#allocation13]   ;;  %s6591_s23 = smov [#allocation14]  }
  0x69   :  { %s112_s22 = sshll.u32 %s6590_s18, 4  ;;  %s124_s24 = sshll.u32 %s6591_s23, 4  ;;  %s113_s22 = int_to_ptr.vmem [resolvable:$true] %s112_s22  ;;  %s6790_s24 = int_to_ptr.vmem [resolvable:$true] %s124_s24 }
  0x6a   :  { %s6434_s25 = scalar_lea.hbm %s8016_s9, 2048 }
  0x6b   :  { %p6435_p6 = scmp.ne.s32.totalorder %s8016_s9, %s6434_s25  ;;  %p6438_p7 = scmp.lt.u32.totalorder %s6434_s25, %s8016_s9 }
  0x6d   :  { %p6440_p8 = pnand %p6438_p7, %p6435_p6 }
  0x6f   :  { %6443 = shalt.err (!%p6440_p8)
}
  0x70   :  { %s6444_s6 = scalar_lea.vmem %s113_s22, 2048  ;;  %p6449_p10 = scmp.lt.s32.totalorder %s113_s22, %s113_s22 }
  0x71   :  { %p6445_p9 = scmp.ne.s32.totalorder %s113_s22, %s6444_s6  ;;  %p6450_p11 = scmp.lt.s32.totalorder %s6444_s6, %s6444_s6 }
  0x73   :  { %p6451_p12 = por %p6450_p11, %p6449_p10 }
  0x75   :  { %p6452_p13 = pnand %p6451_p12, %p6445_p9 }
  0x77   :  { %6455 = shalt.err (!%p6452_p13)
}
  0x78   :  { %118 = dma.hbm_to_vmem [thread:$0]  %s8016_s9, 2048, %s113_s22, [#allocation12], %s6584_s30, %s6584_s30, %s6585_s16  }
  0x79   :  { %s6456_s29 = scalar_lea.hbm %s8017_s10, 2048 }
  0x7a   :  { %p6457_p0 = scmp.ne.s32.totalorder %s8017_s10, %s6456_s29  ;;  %p6460_p1 = scmp.lt.u32.totalorder %s6456_s29, %s8017_s10 }
  0x7c   :  { %p6462_p2 = pnand %p6460_p1, %p6457_p0 }
  0x7e   :  { %6465 = shalt.err (!%p6462_p2)
}
  0x7f   :  { %s6466_s0 = scalar_lea.vmem %s6790_s24, 2048  ;;  %p6471_p4 = scmp.lt.s32.totalorder %s6790_s24, %s6790_s24 }
  0x80   :  { %p6467_p3 = scmp.ne.s32.totalorder %s6790_s24, %s6466_s0  ;;  %p6472_p5 = scmp.lt.s32.totalorder %s6466_s0, %s6466_s0 }
  0x82   :  { %p6473_p6 = por %p6472_p5, %p6471_p4 }
  0x84   :  { %p6474_p7 = pnand %p6473_p6, %p6467_p3 }
  0x86   :  { %6477 = shalt.err (!%p6474_p7)
}
  0x87   :  { %130 = dma.hbm_to_vmem [thread:$0]  %s8017_s10, 2048, %s6790_s24, [#allocation15], %s6584_s30, %s6584_s30, %s6585_s16  }
  0x88   :  { %6566 = dma.done.wait [#allocation3], 2048  }
  0x89   :  { %6567 = vsyncadd [#allocation3], 4294965248 }
  0x8a   :  { %6568 = dma.done.wait [#allocation6], 4096  }
  0x8b   :  { %6569 = vsyncadd [#allocation6], 4294963200 }
  0x8c   :  { %6570 = dma.done.wait [#allocation9], 4096  }
  0x8d   :  { %6571 = vsyncadd [#allocation9], 4294963200 }
  0x8e   :  { %6572 = dma.done.wait [#allocation12], 4096  }
  0x8f   :  { %6573 = vsyncadd [#allocation12], 4294963200 }
  0x90   :  { %6574 = dma.done.wait [#allocation15], 2048  }
  0x91   :  { %6575 = vsyncadd [#allocation15], 4294965248  ;;  %v6827_v0 = vld [vmem:[#allocation5] sm:$0xff]  ;;  %v6829_v1 = vld [vmem:[#allocation5 + $0x8] sm:$0xff]  ;;  %s6592_s10 = smov 16   ;;  %s6593_s24 = smov 32  }
  0x92   :  { %v6831_v2 = vld [vmem:[#allocation5 + $0x10] sm:$0xff]  ;;  %v5565_v3 = vpack.c.bf16 %v6829_v1, %v6827_v0  ;;  %v6835_v4 = vld [vmem:[#allocation5 + $0x18] sm:$0xff]  ;;  %v6839_v6 = vld [vmem:[#allocation5 + $0x20] sm:$0xff]  ;;  %s6596_s21 = smov [#allocation16]  }
  0x93   :  { %v5569_v5 = vpack.c.bf16 %v6835_v4, %v6831_v2  ;;  %v6841_v7 = vld [vmem:[#allocation5 + $0x28] sm:$0xff]  ;;  %v6845_v9 = vld [vmem:[#allocation2] sm:$0xff]  ;;  %v6847_v10 = vld [vmem:[#allocation5 + $0x30] sm:$0xff]  ;;  %s3915_s3 = sshll.u32 %s6596_s21, 4  ;;  %s3916_s3 = int_to_ptr.vmem [resolvable:$true] %s3915_s3 }
  0x94   :  { %5566 = vmatprep.subr.bf16.mxu0 %v5565_v3  ;;  %v5573_v8 = vpack.c.bf16 %v6841_v7, %v6839_v6  ;;  %v6849_v11 = vld [vmem:[#allocation5 + $0x38] sm:$0xff]  ;;  %4589 = vmatprep.mubr.f32.mxu0 %v6845_v9  ;;  %v6855_v13 = vld [vmem:[#allocation5 + $0x40] sm:$0xff]  ;;  %v6857_v14 = vld [vmem:[#allocation5 + $0x48] sm:$0xff] }
  0x95   :  { %5568 = vmatpush3.bf16.msra.mxu0 %v5565_v3  ;;  %4645 = vmatprep.mubr.f32.mxu1 %v6845_v9  ;;  %v5577_v12 = vpack.c.bf16 %v6849_v11, %v6847_v10  ;;  %v5581_v15 = vpack.c.bf16 %v6857_v14, %v6855_v13  ;;  %v6861_v16 = vld [vmem:[#allocation5 + $0x50] sm:$0xff]  ;;  %v6863_v17 = vld [vmem:[#allocation5 + $0x58] sm:$0xff]  ;;  %v6867_v19 = vld [vmem:[#allocation5 + $0x60] sm:$0xff] }
  0x96   :  { %5570 = vmatprep.subr.bf16.mxu0 %v5569_v5  ;;  %v5585_v18 = vpack.c.bf16 %v6863_v17, %v6861_v16  ;;  %v6869_v20 = vld [vmem:[#allocation5 + $0x68] sm:$0xff]  ;;  %v6873_v22 = vld [vmem:[#allocation5 + $0x70] sm:$0xff]  ;;  %v6875_v23 = vld [vmem:[#allocation5 + $0x78] sm:$0xff] }
  0x97   :  { %v5589_v21 = vpack.c.bf16 %v6869_v20, %v6867_v19  ;;  %v5593_v24 = vpack.c.bf16 %v6875_v23, %v6873_v22  ;;  %v6879_v25 = vld [vmem:[#allocation2 + $0x8] sm:$0xff]  ;;  %v6881_v26 = vld [vmem:[#allocation2 + $0x10] sm:$0xff]  ;;  %v6885_v27 = vld [vmem:[#allocation2 + $0x18] sm:$0xff] }
  0x98   :  { %v6887_v28 = vld [vmem:[#allocation2 + $0x20] sm:$0xff]  ;;  %v6891_v29 = vld [vmem:[#allocation2 + $0x28] sm:$0xff]  ;;  %v6893_v30 = vld [vmem:[#allocation2 + $0x30] sm:$0xff] }
  0x99   :  { %5572 = vmatpush3.bf16.msra.mxu0 %v5569_v5  ;;  %v6897_v31 = vld [vmem:[#allocation2 + $0x38] sm:$0xff]  ;;  %v6899_v32 = vld [vmem:[#allocation2 + $0x40] sm:$0xff]  ;;  %v6903_v33 = vld [vmem:[#allocation2 + $0x48] sm:$0xff] }
  0x9a   :  { %5574 = vmatprep.subr.bf16.mxu0 %v5573_v8  ;;  %v6905_v34 = vld [vmem:[#allocation2 + $0x50] sm:$0xff]  ;;  %v6909_v35 = vld [vmem:[#allocation2 + $0x58] sm:$0xff]  ;;  %v6911_v36 = vld [vmem:[#allocation2 + $0x60] sm:$0xff] }
  0x9b   :  { %v6915_v37 = vld [vmem:[#allocation2 + $0x68] sm:$0xff]  ;;  %v6917_v38 = vld [vmem:[#allocation2 + $0x70] sm:$0xff]  ;;  %v6921_v39 = vld [vmem:[#allocation2 + $0x78] sm:$0xff] }
  0x9c   :  { %v575_v3 = vld [vmem:[#allocation7] sm:$0xff]  ;;  %v576_v5 = vld [vmem:[#allocation7 + $0x8] sm:$0xff] }
  0x9d   :  { %5576 = vmatpush3.bf16.msra.mxu0 %v5573_v8  ;;  %v577_v8 = vld [vmem:[#allocation7 + $0x10] sm:$0xff] }
  0x9e   :  { %5578 = vmatprep.subr.bf16.mxu0 %v5577_v12 }
  0xa1   :  { %5580 = vmatpush3.bf16.msra.mxu0 %v5577_v12  ;;  %v5629_v12 = vpack.c.bf16 %v576_v5, %v575_v3 }
  0xa2   :  { %5582 = vmatprep.subr.bf16.mxu0 %v5581_v15 }
  0xa5   :  { %5584 = vmatpush3.bf16.msra.mxu0 %v5581_v15  ;;  %v578_v15 = vld [vmem:[#allocation7 + $0x18] sm:$0xff] }
  0xa6   :  { %5586 = vmatprep.subr.bf16.mxu0 %v5585_v18 }
  0xa9   :  { %5588 = vmatpush3.bf16.msra.mxu0 %v5585_v18  ;;  %v5633_v18 = vpack.c.bf16 %v578_v15, %v577_v8 }
  0xaa   :  { %5590 = vmatprep.subr.bf16.mxu0 %v5589_v21 }
  0xad   :  { %5592 = vmatpush3.bf16.msra.mxu0 %v5589_v21  ;;  %v579_v21 = vld [vmem:[#allocation7 + $0x20] sm:$0xff] }
  0xae   :  { %5594 = vmatprep.subr.bf16.mxu0 %v5593_v24 }
  0xb1   :  { %5596 = vmatpush3.bf16.msra.mxu0 %v5593_v24  ;;  %v580_v24 = vld [vmem:[#allocation7 + $0x28] sm:$0xff] }
  0xb2   :  { %5630 = vmatprep.subr.bf16.mxu0 %v5629_v12 }
  0xb4   :  { %4590 = vmatmul.mubr.f32.vlgmr.msra.gmra.mrb[0].mxu0 %v6879_v25 }
  0xb5   :  { %4592 = vmatprep.mubr.f32.mxu0 %v6881_v26  ;;  %5632 = vmatpush3.bf16.msra.mxu0 %v5629_v12 }
  0xb6   :  { %5634 = vmatprep.subr.bf16.mxu0 %v5633_v18 }
  0xb8   :  { %4593 = vmatmul.mubr.f32.gmra.mrb[2].mxu0 %v6885_v27 }
  0xb9   :  { %4595 = vmatprep.mubr.f32.mxu0 %v6887_v28  ;;  %5636 = vmatpush3.bf16.msra.mxu0 %v5633_v18 }
  0xbc   :  { %4596 = vmatmul.mubr.f32.gmra.mrb[4].mxu0 %v6891_v29 }
  0xbd   :  { %4598 = vmatprep.mubr.f32.mxu0 %v6893_v30 }
  0xc0   :  { %4599 = vmatmul.mubr.f32.gmra.mrb[6].mxu0 %v6897_v31 }
  0xc1   :  { %4601 = vmatprep.mubr.f32.mxu0 %v6899_v32 }
  0xc4   :  { %4602 = vmatmul.mubr.f32.gmra.mrb[8].mxu0 %v6903_v33 }
  0xc5   :  { %4604 = vmatprep.mubr.f32.mxu0 %v6905_v34 }
  0xc8   :  { %4605 = vmatmul.mubr.f32.gmra.mrb[10].mxu0 %v6909_v35 }
  0xc9   :  { %4607 = vmatprep.mubr.f32.mxu0 %v6911_v36 }
  0xcc   :  { %4608 = vmatmul.mubr.f32.gmra.mrb[12].mxu0 %v6915_v37 }
  0xcd   :  { %4610 = vmatprep.mubr.f32.mxu0 %v6917_v38 }
  0xd0   :  { %4611 = vmatmul.mubr.f32.gmra.mrb[14].mxu0 %v6921_v39 }
 0x187   :  { %v4591_v40 = vpop.f32.mrb[0].mxu0 }
 0x188   :  { %481 = vrot.lane.b32.xlu0 %v4591_v40, %s6592_s10  ;;  %v255_v41 = vpop.f32.mrb[1].mxu0 }
 0x189   :  { %v5597_v42 = vpack.c.bf16 %v4591_v40, %v255_v41  ;;  %v5637_v40 = vpack.c.bf16 %v580_v24, %v579_v21 }
 0x18b   :  { %v4594_v43 = vpop.f32.mrb[2].mxu0  ;;  %5598 = vmatprep.subr.bf16.mxu1 %v5597_v42  ;;  %5638 = vmatprep.subr.bf16.mxu0 %v5637_v40 }
 0x18c   :  { %479 = vrot.lane.b32.xlu0 %v255_v41, %s6592_s10  ;;  %5600 = vmatpush3.bf16.msra.mxu1 %v5597_v42  ;;  %v265_v44 = vpop.f32.mrb[3].mxu0  ;;  %v581_v41 = vld [vmem:[#allocation7 + $0x30] sm:$0xff]  ;;  %v582_v42 = vld [vmem:[#allocation7 + $0x38] sm:$0xff] }
 0x18d   :  { %485 = vrot.lane.b32.xlu1 %v4594_v43, %s6592_s10  ;;  %v5601_v45 = vpack.c.bf16 %v4594_v43, %v265_v44  ;;  %v5641_v43 = vpack.c.bf16 %v582_v42, %v581_v41  ;;  %5640 = vmatpush3.bf16.msra.mxu0 %v5637_v40 }
 0x18f   :  { %v4597_v46 = vpop.f32.mrb[4].mxu0  ;;  %5602 = vmatprep.subr.bf16.mxu1 %v5601_v45  ;;  %5642 = vmatprep.subr.bf16.mxu0 %v5641_v43 }
 0x190   :  { %483 = vrot.lane.b32.xlu0 %v265_v44, %s6592_s10  ;;  %5604 = vmatpush3.bf16.msra.mxu1 %v5601_v45  ;;  %v275_v47 = vpop.f32.mrb[5].mxu0  ;;  %v583_v44 = vld [vmem:[#allocation7 + $0x40] sm:$0xff]  ;;  %v584_v45 = vld [vmem:[#allocation7 + $0x48] sm:$0xff] }
 0x191   :  { %489 = vrot.lane.b32.xlu1 %v4597_v46, %s6592_s10  ;;  %v5605_v48 = vpack.c.bf16 %v4597_v46, %v275_v47  ;;  %v5645_v46 = vpack.c.bf16 %v584_v45, %v583_v44  ;;  %5644 = vmatpush3.bf16.msra.mxu0 %v5641_v43 }
 0x193   :  { %v4600_v49 = vpop.f32.mrb[6].mxu0  ;;  %5606 = vmatprep.subr.bf16.mxu1 %v5605_v48  ;;  %5646 = vmatprep.subr.bf16.mxu0 %v5645_v46 }
 0x194   :  { %487 = vrot.lane.b32.xlu0 %v275_v47, %s6592_s10  ;;  %5608 = vmatpush3.bf16.msra.mxu1 %v5605_v48  ;;  %v285_v50 = vpop.f32.mrb[7].mxu0  ;;  %v585_v47 = vld [vmem:[#allocation7 + $0x50] sm:$0xff]  ;;  %v586_v48 = vld [vmem:[#allocation7 + $0x58] sm:$0xff] }
 0x195   :  { %493 = vrot.lane.b32.xlu1 %v4600_v49, %s6592_s10  ;;  %v5609_v51 = vpack.c.bf16 %v4600_v49, %v285_v50  ;;  %v5649_v49 = vpack.c.bf16 %v586_v48, %v585_v47  ;;  %5648 = vmatpush3.bf16.msra.mxu0 %v5645_v46 }
 0x197   :  { %v4603_v52 = vpop.f32.mrb[8].mxu0  ;;  %5610 = vmatprep.subr.bf16.mxu1 %v5609_v51  ;;  %5650 = vmatprep.subr.bf16.mxu0 %v5649_v49 }
 0x198   :  { %491 = vrot.lane.b32.xlu0 %v285_v50, %s6592_s10  ;;  %5612 = vmatpush3.bf16.msra.mxu1 %v5609_v51  ;;  %v295_v53 = vpop.f32.mrb[9].mxu0  ;;  %v587_v50 = vld [vmem:[#allocation7 + $0x60] sm:$0xff]  ;;  %v588_v51 = vld [vmem:[#allocation7 + $0x68] sm:$0xff] }
 0x199   :  { %497 = vrot.lane.b32.xlu1 %v4603_v52, %s6592_s10  ;;  %v5613_v54 = vpack.c.bf16 %v4603_v52, %v295_v53  ;;  %v5653_v52 = vpack.c.bf16 %v588_v51, %v587_v50  ;;  %5652 = vmatpush3.bf16.msra.mxu0 %v5649_v49 }
 0x19b   :  { %v4606_v55 = vpop.f32.mrb[10].mxu0  ;;  %5614 = vmatprep.subr.bf16.mxu1 %v5613_v54  ;;  %5654 = vmatprep.subr.bf16.mxu0 %v5653_v52 }
 0x19c   :  { %495 = vrot.lane.b32.xlu0 %v295_v53, %s6592_s10  ;;  %5616 = vmatpush3.bf16.msra.mxu1 %v5613_v54  ;;  %v305_v56 = vpop.f32.mrb[11].mxu0  ;;  %v589_v53 = vld [vmem:[#allocation7 + $0x70] sm:$0xff]  ;;  %v590_v54 = vld [vmem:[#allocation7 + $0x78] sm:$0xff] }
 0x19d   :  { %501 = vrot.lane.b32.xlu1 %v4606_v55, %s6592_s10  ;;  %v5617_v57 = vpack.c.bf16 %v4606_v55, %v305_v56  ;;  %5656 = vmatpush3.bf16.msra.mxu0 %v5653_v52  ;;  %v5657_v55 = vpack.c.bf16 %v590_v54, %v589_v53 }
 0x19f   :  { %v4609_v58 = vpop.f32.mrb[12].mxu0  ;;  %5618 = vmatprep.subr.bf16.mxu1 %v5617_v57  ;;  %5658 = vmatprep.subr.bf16.mxu0 %v5657_v55 }
 0x1a0   :  { %499 = vrot.lane.b32.xlu0 %v305_v56, %s6592_s10  ;;  %5620 = vmatpush3.bf16.msra.mxu1 %v5617_v57  ;;  %v315_v59 = vpop.f32.mrb[13].mxu0 }
 0x1a1   :  { %505 = vrot.lane.b32.xlu1 %v4609_v58, %s6592_s10  ;;  %v5621_v60 = vpack.c.bf16 %v4609_v58, %v315_v59  ;;  %5660 = vmatpush3.bf16.msra.mxu0 %v5657_v55 }
 0x1a3   :  { %v6937_v61 = vpop.f32.mrb[14].mxu0  ;;  %5622 = vmatprep.subr.bf16.mxu1 %v5621_v60 }
 0x1a4   :  { %503 = vrot.lane.b32.xlu0 %v315_v59, %s6592_s10  ;;  %v325_v62 = vpop.f32.mrb[15].mxu0  ;;  %5624 = vmatpush3.bf16.msra.mxu1 %v5621_v60 }
 0x1a5   :  { %v5625_v63 = vpack.c.bf16 %v6937_v61, %v325_v62 }
 0x1a7   :  { %5626 = vmatprep.subr.bf16.mxu1 %v5625_v63 }
 0x1a8   :  { %507 = vrot.lane.b32.xlu0 %v325_v62, %s6592_s10  ;;  %5628 = vmatpush3.bf16.msra.mxu1 %v5625_v63 }
 0x1ab   :  { %4646 = vmatmul.mubr.f32.vlgmr.msra.gmra.mrb[0].mxu1 %v6879_v25 }
 0x1ac   :  { %4648 = vmatprep.mubr.f32.mxu1 %v6881_v26 }
 0x1af   :  { %4649 = vmatmul.mubr.f32.gmra.mrb[2].mxu1 %v6885_v27 }
 0x1b0   :  { %4651 = vmatprep.mubr.f32.mxu1 %v6887_v28 }
 0x1b3   :  { %4652 = vmatmul.mubr.f32.gmra.mrb[4].mxu1 %v6891_v29 }
 0x1b4   :  { %4654 = vmatprep.mubr.f32.mxu1 %v6893_v30 }
 0x1b7   :  { %4655 = vmatmul.mubr.f32.gmra.mrb[6].mxu1 %v6897_v31 }
 0x1b8   :  { %4657 = vmatprep.mubr.f32.mxu1 %v6899_v32 }
 0x1bb   :  { %4658 = vmatmul.mubr.f32.gmra.mrb[8].mxu1 %v6903_v33 }
 0x1bc   :  { %4660 = vmatprep.mubr.f32.mxu1 %v6905_v34 }
 0x1bf   :  { %4661 = vmatmul.mubr.f32.gmra.mrb[10].mxu1 %v6909_v35 }
 0x1c0   :  { %4663 = vmatprep.mubr.f32.mxu1 %v6911_v36 }
 0x1c3   :  { %4664 = vmatmul.mubr.f32.gmra.mrb[12].mxu1 %v6915_v37 }
 0x1c4   :  { %4666 = vmatprep.mubr.f32.mxu1 %v6917_v38 }
 0x1c7   :  { %4667 = vmatmul.mubr.f32.gmra.mrb[14].mxu1 %v6921_v39 }
 0x1c8   :  { %4757 = vmatprep.mubr.f32.mxu1 %v6845_v9 }
 0x1fa   :  { %v482_v40 = vpop.permute.xlu0 %481 }
 0x1fe   :  { %v480_v41 = vpop.permute.xlu0 %479 }
 0x1ff   :  { %v486_v43 = vpop.permute.xlu1 %485 }
 0x202   :  { %v484_v42 = vpop.permute.xlu0 %483 }
 0x203   :  { %v490_v45 = vpop.permute.xlu1 %489 }
 0x206   :  { %v488_v44 = vpop.permute.xlu0 %487 }
 0x207   :  { %v494_v47 = vpop.permute.xlu1 %493 }
 0x20a   :  { %v492_v46 = vpop.permute.xlu0 %491 }
 0x20b   :  { %v498_v49 = vpop.permute.xlu1 %497 }
 0x20e   :  { %v496_v48 = vpop.permute.xlu0 %495 }
 0x20f   :  { %v502_v51 = vpop.permute.xlu1 %501 }
 0x212   :  { %v500_v50 = vpop.permute.xlu0 %499 }
 0x213   :  { %v506_v53 = vpop.permute.xlu1 %505 }
 0x216   :  { %v504_v52 = vpop.permute.xlu0 %503 }
 0x21a   :  { %v508_v55 = vpop.permute.xlu0 %507 }
 0x27e   :  { %v4647_v56 = vpop.f32.mrb[0].mxu1 }
 0x27f   :  { %529 = vrot.lane.b32.xlu1 %v4647_v56, %s6593_s24  ;;  %v400_v57 = vpop.f32.mrb[1].mxu1  ;;  %v511_v56 = vadd.f32 %v480_v41, %v6827_v0 }
 0x282   :  { %v4650_v58 = vpop.f32.mrb[2].mxu1 }
 0x283   :  { %527 = vrot.lane.b32.xlu1 %v400_v57, %s6593_s24  ;;  %v410_v59 = vpop.f32.mrb[3].mxu1  ;;  %v512_v57 = vadd.f32 %v482_v40, %v6829_v1 }
 0x284   :  { %531 = vrot.lane.b32.xlu0 %v410_v59, %s6593_s24 }
 0x286   :  { %v4653_v60 = vpop.f32.mrb[4].mxu1 }
 0x287   :  { %509 = vrot.lane.b32.xlu1 %v6937_v61, %s6592_s10  ;;  %v420_v62 = vpop.f32.mrb[5].mxu1 }
 0x288   :  { %535 = vrot.lane.b32.xlu0 %v420_v62, %s6593_s24 }
 0x28a   :  { %v4656_v63 = vpop.f32.mrb[6].mxu1 }
 0x28b   :  { %533 = vrot.lane.b32.xlu1 %v4650_v58, %s6593_s24  ;;  %v430_v3 = vpop.f32.mrb[7].mxu1  ;;  %v513_v58 = vadd.f32 %v484_v42, %v6831_v2  ;;  %v516_v2 = vadd.f32 %v490_v45, %v6841_v7  ;;  %v520_v7 = vadd.f32 %v498_v49, %v6857_v14 }
 0x28c   :  { %539 = vrot.lane.b32.xlu0 %v430_v3, %s6593_s24 }
 0x28e   :  { %v4659_v5 = vpop.f32.mrb[8].mxu1 }
 0x28f   :  { %537 = vrot.lane.b32.xlu1 %v4653_v60, %s6593_s24  ;;  %v440_v8 = vpop.f32.mrb[9].mxu1 }
 0x290   :  { %543 = vrot.lane.b32.xlu0 %v440_v8, %s6593_s24 }
 0x292   :  { %v4662_v12 = vpop.f32.mrb[10].mxu1 }
 0x293   :  { %541 = vrot.lane.b32.xlu1 %v4656_v63, %s6593_s24  ;;  %v450_v15 = vpop.f32.mrb[11].mxu1 }
 0x294   :  { %547 = vrot.lane.b32.xlu0 %v450_v15, %s6593_s24  ;;  %v515_v15 = vadd.f32 %v488_v44, %v6839_v6 }
 0x296   :  { %v4665_v61 = vpop.f32.mrb[12].mxu1 }
 0x297   :  { %545 = vrot.lane.b32.xlu1 %v4659_v5, %s6593_s24  ;;  %v460_v18 = vpop.f32.mrb[13].mxu1 }
 0x298   :  { %551 = vrot.lane.b32.xlu0 %v460_v18, %s6593_s24 }
 0x29a   :  { %v4668_v21 = vpop.f32.mrb[14].mxu1 }
 0x29b   :  { %549 = vrot.lane.b32.xlu1 %v4662_v12, %s6593_s24  ;;  %v470_v24 = vpop.f32.mrb[15].mxu1  ;;  %v514_v12 = vadd.f32 %v486_v43, %v6835_v4  ;;  %v519_v4 = vadd.f32 %v496_v48, %v6855_v13  ;;  %v523_v13 = vadd.f32 %v504_v52, %v6867_v19 }
 0x29c   :  { %555 = vrot.lane.b32.xlu0 %v470_v24, %s6593_s24 }
 0x29f   :  { %553 = vrot.lane.b32.xlu1 %v4665_v61, %s6593_s24 }
 0x2a3   :  { %557 = vrot.lane.b32.xlu1 %v4668_v21, %s6593_s24  ;;  %v517_v21 = vadd.f32 %v492_v46, %v6847_v10  ;;  %v521_v10 = vadd.f32 %v500_v50, %v6861_v16  ;;  %v525_v16 = vadd.f32 %v508_v55, %v6873_v22 }
 0x2f1   :  { %v530_v54 = vpop.permute.xlu1 %529 }
 0x2f2   :  { %v560_v63 = vadd.f32 %v530_v54, %v512_v57  ;;  %v518_v54 = vadd.f32 %v494_v47, %v6849_v11  ;;  %v522_v11 = vadd.f32 %v502_v51, %v6863_v17 }
 0x2f5   :  { %v528_v59 = vpop.permute.xlu1 %527 }
 0x2f6   :  { %v559_v60 = vadd.f32 %v528_v59, %v511_v56  ;;  %v532_v62 = vpop.permute.xlu0 %531 }
 0x2f7   :  { %v561_v3 = vadd.f32 %v532_v62, %v513_v58 }
 0x2f8   :  { %4701 = vmatprep.mubr.f32.mxu0 %v559_v60  ;;  %v524_v60 = vadd.f32 %v506_v53, %v6869_v20  ;;  %v3978_v20 = vld [vmem:[%s8011_s4] ss:$0 sm:$0xff]  ;;  %s6594_s4 = smov 64  }
 0x2f9   :  { %4702 = vmatmul.mubr.f32.vlgmr.msra.gmra.mrb[16].mxu0 %v560_v63  ;;  %v510_v5 = vpop.permute.xlu1 %509 }
 0x2fa   :  { %4704 = vmatprep.mubr.f32.mxu0 %v561_v3  ;;  %v536_v8 = vpop.permute.xlu0 %535  ;;  %v526_v63 = vadd.f32 %v510_v5, %v6875_v23 }
 0x2fb   :  { %v563_v1 = vadd.f32 %v536_v8, %v515_v15 }
 0x2fd   :  { %v534_v61 = vpop.permute.xlu1 %533 }
 0x2fe   :  { %v562_v0 = vadd.f32 %v534_v61, %v514_v12  ;;  %v540_v18 = vpop.permute.xlu0 %539 }
 0x2ff   :  { %v565_v42 = vadd.f32 %v540_v18, %v517_v21 }
 0x300   :  { %4705 = vmatmul.mubr.f32.gmra.mrb[18].mxu0 %v562_v0 }
 0x301   :  { %v538_v24 = vpop.permute.xlu1 %537  ;;  %4707 = vmatprep.mubr.f32.mxu0 %v563_v1 }
 0x302   :  { %v564_v40 = vadd.f32 %v538_v24, %v516_v2  ;;  %v544_v41 = vpop.permute.xlu0 %543 }
 0x303   :  { %v567_v56 = vadd.f32 %v544_v41, %v519_v4 }
 0x304   :  { %4708 = vmatmul.mubr.f32.gmra.mrb[20].mxu0 %v564_v40 }
 0x305   :  { %v542_v6 = vpop.permute.xlu1 %541  ;;  %4710 = vmatprep.mubr.f32.mxu0 %v565_v42 }
 0x306   :  { %v566_v43 = vadd.f32 %v542_v6, %v518_v54  ;;  %v548_v44 = vpop.permute.xlu0 %547 }
 0x307   :  { %v569_v58 = vadd.f32 %v548_v44, %v521_v10 }
 0x308   :  { %4711 = vmatmul.mubr.f32.gmra.mrb[22].mxu0 %v566_v43 }
 0x309   :  { %v546_v45 = vpop.permute.xlu1 %545  ;;  %4713 = vmatprep.mubr.f32.mxu0 %v567_v56 }
 0x30a   :  { %v568_v46 = vadd.f32 %v546_v45, %v520_v7  ;;  %v552_v57 = vpop.permute.xlu0 %551 }
 0x30b   :  { %v571_v59 = vadd.f32 %v552_v57, %v523_v13 }
 0x30c   :  { %4714 = vmatmul.mubr.f32.gmra.mrb[24].mxu0 %v568_v46 }
 0x30d   :  { %v550_v47 = vpop.permute.xlu1 %549  ;;  %4716 = vmatprep.mubr.f32.mxu0 %v569_v58 }
 0x30e   :  { %v570_v48 = vadd.f32 %v550_v47, %v522_v11  ;;  %v556_v14 = vpop.permute.xlu0 %555 }
 0x30f   :  { %v573_v62 = vadd.f32 %v556_v14, %v525_v16 }
 0x310   :  { %4717 = vmatmul.mubr.f32.gmra.mrb[26].mxu0 %v570_v48 }
 0x311   :  { %v554_v49 = vpop.permute.xlu1 %553  ;;  %4719 = vmatprep.mubr.f32.mxu0 %v571_v59 }
 0x312   :  { %v572_v50 = vadd.f32 %v554_v49, %v524_v60 }
 0x314   :  { %4720 = vmatmul.mubr.f32.gmra.mrb[28].mxu0 %v572_v50 }
 0x315   :  { %v558_v17 = vpop.permute.xlu1 %557  ;;  %4722 = vmatprep.mubr.f32.mxu0 %v573_v62 }
 0x316   :  { %v574_v19 = vadd.f32 %v558_v17, %v526_v63 }
 0x318   :  { %4723 = vmatmul.mubr.f32.gmra.mrb[30].mxu0 %v574_v19 }
 0x319   :  { %4813 = vmatprep.mubr.f32.mxu0 %v6845_v9 }
 0x3cc   :  { %v4703_v51 = vpop.f32.mrb[16].mxu0 }
 0x3cd   :  { %v6996_v52 = vadd.f32 %v4703_v51, %v3978_v20  ;;  %v664_v22 = vpop.f32.mrb[17].mxu0 }
 0x3ce   :  { %v6998_v53 = vadd.f32 %v3978_v20, %v664_v22 }
 0x3d0   :  { %v5661_v23 = vpack.c.bf16 %v6996_v52, %v6998_v53 }
 0x3d2   :  { %5662 = vmatprep.subr.bf16.mxu1 %v5661_v23 }
 0x3d3   :  { %v4706_v55 = vpop.f32.mrb[18].mxu0  ;;  %5664 = vmatpush3.bf16.msra.mxu1 %v5661_v23 }
 0x3d4   :  { %v7002_v3 = vadd.f32 %v4706_v55, %v3978_v20  ;;  %v674_v5 = vpop.f32.mrb[19].mxu0 }
 0x3d5   :  { %v7004_v8 = vadd.f32 %v3978_v20, %v674_v5 }
 0x3d6   :  { %8037 = vst [vmem:[#allocation30_spill] sm:$0xff] %v7002_v3 }
 0x3d7   :  { %8038 = vst [vmem:[#allocation31_spill] sm:$0xff] %v7004_v8  ;;  %v4709_v12 = vpop.f32.mrb[20].mxu0  ;;  %v5665_v15 = vpack.c.bf16 %v7002_v3, %v7004_v8 }
 0x3d8   :  { %v7008_v61 = vadd.f32 %v4709_v12, %v3978_v20  ;;  %v684_v0 = vpop.f32.mrb[21].mxu0 }
 0x3d9   :  { %v7010_v18 = vadd.f32 %v3978_v20, %v684_v0  ;;  %5666 = vmatprep.subr.bf16.mxu1 %v5665_v15 }
 0x3da   :  { %8039 = vst [vmem:[#allocation32_spill] sm:$0xff] %v7008_v61  ;;  %5668 = vmatpush3.bf16.msra.mxu1 %v5665_v15 }
 0x3db   :  { %8040 = vst [vmem:[#allocation33_spill] sm:$0xff] %v7010_v18  ;;  %v4712_v1 = vpop.f32.mrb[22].mxu0  ;;  %v5669_v2 = vpack.c.bf16 %v7008_v61, %v7010_v18 }
 0x3dc   :  { %v7014_v21 = vadd.f32 %v4712_v1, %v3978_v20  ;;  %v694_v24 = vpop.f32.mrb[23].mxu0 }
 0x3dd   :  { %v7016_v40 = vadd.f32 %v3978_v20, %v694_v24  ;;  %5670 = vmatprep.subr.bf16.mxu1 %v5669_v2 }
 0x3de   :  { %8041 = vst [vmem:[#allocation34_spill] sm:$0xff] %v7014_v21  ;;  %5672 = vmatpush3.bf16.msra.mxu1 %v5669_v2 }
 0x3df   :  { %8042 = vst [vmem:[#allocation35_spill] sm:$0xff] %v7016_v40  ;;  %v4715_v41 = vpop.f32.mrb[24].mxu0  ;;  %v5673_v42 = vpack.c.bf16 %v7014_v21, %v7016_v40 }
 0x3e0   :  { %v7020_v54 = vadd.f32 %v4715_v41, %v3978_v20  ;;  %v704_v4 = vpop.f32.mrb[25].mxu0 }
 0x3e1   :  { %v7022_v6 = vadd.f32 %v3978_v20, %v704_v4  ;;  %5674 = vmatprep.subr.bf16.mxu1 %v5673_v42 }
 0x3e2   :  { %8043 = vst [vmem:[#allocation36_spill] sm:$0xff] %v7020_v54  ;;  %5676 = vmatpush3.bf16.msra.mxu1 %v5673_v42 }
 0x3e3   :  { %8044 = vst [vmem:[#allocation37_spill] sm:$0xff] %v7022_v6  ;;  %v4718_v43 = vpop.f32.mrb[26].mxu0  ;;  %v5677_v44 = vpack.c.bf16 %v7020_v54, %v7022_v6 }
 0x3e4   :  { %v7026_v56 = vadd.f32 %v4718_v43, %v3978_v20  ;;  %v714_v7 = vpop.f32.mrb[27].mxu0 }
 0x3e5   :  { %v7028_v10 = vadd.f32 %v3978_v20, %v714_v7  ;;  %5678 = vmatprep.subr.bf16.mxu1 %v5677_v44  ;;  %v1140_v7 = vld [vmem:[#allocation10 + $0x58] sm:$0xff] }
 0x3e6   :  { %8045 = vst [vmem:[#allocation38_spill] sm:$0xff] %v7026_v56  ;;  %5680 = vmatpush3.bf16.msra.mxu1 %v5677_v44 }
 0x3e7   :  { %8046 = vst [vmem:[#allocation39_spill] sm:$0xff] %v7028_v10  ;;  %v4721_v45 = vpop.f32.mrb[28].mxu0  ;;  %v5681_v46 = vpack.c.bf16 %v7026_v56, %v7028_v10 }
 0x3e8   :  { %v7032_v57 = vadd.f32 %v4721_v45, %v3978_v20  ;;  %v724_v58 = vpop.f32.mrb[29].mxu0 }
 0x3e9   :  { %v7034_v11 = vadd.f32 %v3978_v20, %v724_v58  ;;  %5682 = vmatprep.subr.bf16.mxu1 %v5681_v46  ;;  %v1142_v58 = vld [vmem:[#allocation10 + $0x68] sm:$0xff] }
 0x3ea   :  { %8047 = vst [vmem:[#allocation40_spill] sm:$0xff] %v7032_v57  ;;  %5684 = vmatpush3.bf16.msra.mxu1 %v5681_v46  ;;  %v1141_v46 = vld [vmem:[#allocation10 + $0x60] sm:$0xff] }
 0x3eb   :  { %8048 = vst [vmem:[#allocation41_spill] sm:$0xff] %v7034_v11  ;;  %v4724_v13 = vpop.f32.mrb[30].mxu0  ;;  %v5685_v47 = vpack.c.bf16 %v7032_v57, %v7034_v11 }
 0x3ec   :  { %v7038_v48 = vadd.f32 %v4724_v13, %v3978_v20  ;;  %v734_v59 = vpop.f32.mrb[31].mxu0  ;;  %v5749_v13 = vpack.c.bf16 %v1142_v58, %v1141_v46 }
 0x3ed   :  { %v7040_v60 = vadd.f32 %v3978_v20, %v734_v59  ;;  %5686 = vmatprep.subr.bf16.mxu1 %v5685_v47  ;;  %v1144_v59 = vld [vmem:[#allocation10 + $0x78] sm:$0xff] }
 0x3ee   :  { %8049 = vst [vmem:[#allocation42_spill] sm:$0xff] %v7038_v48  ;;  %5688 = vmatpush3.bf16.msra.mxu1 %v5685_v47  ;;  %v1143_v47 = vld [vmem:[#allocation10 + $0x70] sm:$0xff] }
 0x3ef   :  { %8050 = vst [vmem:[#allocation43_spill] sm:$0xff] %v7040_v60  ;;  %v5689_v14 = vpack.c.bf16 %v7038_v48, %v7040_v60 }
 0x3f1   :  { %5690 = vmatprep.subr.bf16.mxu1 %v5689_v14 }
 0x3f2   :  { %5692 = vmatpush3.bf16.msra.mxu1 %v5689_v14  ;;  %v5753_v14 = vpack.c.bf16 %v1144_v59, %v1143_v47 }
 0x3f5   :  { %4758 = vmatmul.mubr.f32.vlgmr.msra.gmra.mrb[16].mxu1 %v6879_v25 }
 0x3f6   :  { %4760 = vmatprep.mubr.f32.mxu1 %v6881_v26 }
 0x3f9   :  { %4761 = vmatmul.mubr.f32.gmra.mrb[18].mxu1 %v6885_v27 }
 0x3fa   :  { %4763 = vmatprep.mubr.f32.mxu1 %v6887_v28 }
 0x3fd   :  { %4764 = vmatmul.mubr.f32.gmra.mrb[20].mxu1 %v6891_v29 }
 0x3fe   :  { %4766 = vmatprep.mubr.f32.mxu1 %v6893_v30 }
 0x401   :  { %4767 = vmatmul.mubr.f32.gmra.mrb[22].mxu1 %v6897_v31 }
 0x402   :  { %4769 = vmatprep.mubr.f32.mxu1 %v6899_v32 }
 0x405   :  { %4770 = vmatmul.mubr.f32.gmra.mrb[24].mxu1 %v6903_v33 }
 0x406   :  { %4772 = vmatprep.mubr.f32.mxu1 %v6905_v34 }
 0x409   :  { %4773 = vmatmul.mubr.f32.gmra.mrb[26].mxu1 %v6909_v35 }
 0x40a   :  { %4775 = vmatprep.mubr.f32.mxu1 %v6911_v36 }
 0x40d   :  { %4776 = vmatmul.mubr.f32.gmra.mrb[28].mxu1 %v6915_v37 }
 0x40e   :  { %4778 = vmatprep.mubr.f32.mxu1 %v6917_v38 }
 0x411   :  { %4779 = vmatmul.mubr.f32.gmra.mrb[30].mxu1 %v6921_v39 }
 0x4c8   :  { %v4759_v16 = vpop.f32.mrb[16].mxu1 }
 0x4c9   :  { %1035 = vrot.lane.b32.xlu1 %v4759_v16, %s6593_s24  ;;  %v809_v49 = vpop.f32.mrb[17].mxu1 }
 0x4ca   :  { %v5693_v50 = vpack.c.bf16 %v4759_v16, %v809_v49  ;;  %1033 = vrot.lane.b32.xlu0 %v809_v49, %s6593_s24 }
 0x4cc   :  { %v4762_v62 = vpop.f32.mrb[18].mxu1  ;;  %5694 = vmatprep.subr.bf16.mxu0 %v5693_v50 }
 0x4cd   :  { %5696 = vmatpush3.bf16.msra.mxu0 %v5693_v50  ;;  %1039 = vrot.lane.b32.xlu1 %v4762_v62, %s6593_s24  ;;  %v819_v63 = vpop.f32.mrb[19].mxu1 }
 0x4ce   :  { %v5697_v17 = vpack.c.bf16 %v4762_v62, %v819_v63  ;;  %1037 = vrot.lane.b32.xlu0 %v819_v63, %s6593_s24 }
 0x4d0   :  { %v4765_v19 = vpop.f32.mrb[20].mxu1  ;;  %5698 = vmatprep.subr.bf16.mxu0 %v5697_v17 }
 0x4d1   :  { %5700 = vmatpush3.bf16.msra.mxu0 %v5697_v17  ;;  %1043 = vrot.lane.b32.xlu1 %v4765_v19, %s6593_s24  ;;  %v829_v20 = vpop.f32.mrb[21].mxu1 }
 0x4d2   :  { %v5701_v51 = vpack.c.bf16 %v4765_v19, %v829_v20  ;;  %1041 = vrot.lane.b32.xlu0 %v829_v20, %s6593_s24 }
 0x4d4   :  { %v4768_v22 = vpop.f32.mrb[22].mxu1  ;;  %5702 = vmatprep.subr.bf16.mxu0 %v5701_v51 }
 0x4d5   :  { %5704 = vmatpush3.bf16.msra.mxu0 %v5701_v51  ;;  %1047 = vrot.lane.b32.xlu1 %v4768_v22, %s6593_s24  ;;  %v839_v23 = vpop.f32.mrb[23].mxu1 }
 0x4d6   :  { %v5705_v55 = vpack.c.bf16 %v4768_v22, %v839_v23  ;;  %1045 = vrot.lane.b32.xlu0 %v839_v23, %s6593_s24 }
 0x4d8   :  { %v4771_v5 = vpop.f32.mrb[24].mxu1  ;;  %5706 = vmatprep.subr.bf16.mxu0 %v5705_v55 }
 0x4d9   :  { %5708 = vmatpush3.bf16.msra.mxu0 %v5705_v55  ;;  %1051 = vrot.lane.b32.xlu1 %v4771_v5, %s6593_s24  ;;  %v849_v12 = vpop.f32.mrb[25].mxu1 }
 0x4da   :  { %v5709_v15 = vpack.c.bf16 %v4771_v5, %v849_v12  ;;  %1049 = vrot.lane.b32.xlu0 %v849_v12, %s6593_s24 }
 0x4dc   :  { %v4774_v0 = vpop.f32.mrb[26].mxu1  ;;  %5710 = vmatprep.subr.bf16.mxu0 %v5709_v15 }
 0x4dd   :  { %5712 = vmatpush3.bf16.msra.mxu0 %v5709_v15  ;;  %1055 = vrot.lane.b32.xlu1 %v4774_v0, %s6593_s24  ;;  %v859_v1 = vpop.f32.mrb[27].mxu1 }
 0x4de   :  { %v5713_v2 = vpack.c.bf16 %v4774_v0, %v859_v1  ;;  %1053 = vrot.lane.b32.xlu0 %v859_v1, %s6593_s24 }
 0x4e0   :  { %v4777_v24 = vpop.f32.mrb[28].mxu1  ;;  %5714 = vmatprep.subr.bf16.mxu0 %v5713_v2 }
 0x4e1   :  { %5716 = vmatpush3.bf16.msra.mxu0 %v5713_v2  ;;  %1059 = vrot.lane.b32.xlu1 %v4777_v24, %s6593_s24  ;;  %v869_v41 = vpop.f32.mrb[29].mxu1 }
 0x4e2   :  { %v5717_v42 = vpack.c.bf16 %v4777_v24, %v869_v41  ;;  %1057 = vrot.lane.b32.xlu0 %v869_v41, %s6593_s24 }
 0x4e4   :  { %v4780_v4 = vpop.f32.mrb[30].mxu1  ;;  %5718 = vmatprep.subr.bf16.mxu0 %v5717_v42 }
 0x4e5   :  { %5720 = vmatpush3.bf16.msra.mxu0 %v5717_v42  ;;  %1063 = vrot.lane.b32.xlu1 %v4780_v4, %s6593_s24  ;;  %v879_v43 = vpop.f32.mrb[31].mxu1 }
 0x4e6   :  { %v5721_v44 = vpack.c.bf16 %v4780_v4, %v879_v43  ;;  %1061 = vrot.lane.b32.xlu0 %v879_v43, %s6593_s24 }
 0x4e8   :  { %5722 = vmatprep.subr.bf16.mxu0 %v5721_v44 }
 0x4e9   :  { %5724 = vmatpush3.bf16.msra.mxu0 %v5721_v44 }
 0x4ec   :  { %4814 = vmatmul.mubr.f32.vlgmr.msra.gmra.mrb[32].mxu0 %v6879_v25  ;;  %v1129_v25 = vld [vmem:[#allocation10] sm:$0xff] }
 0x4ed   :  { %4816 = vmatprep.mubr.f32.mxu0 %v6881_v26  ;;  %v1130_v26 = vld [vmem:[#allocation10 + $0x8] sm:$0xff] }
 0x4f0   :  { %4817 = vmatmul.mubr.f32.gmra.mrb[34].mxu0 %v6885_v27  ;;  %v1131_v27 = vld [vmem:[#allocation10 + $0x10] sm:$0xff] }
 0x4f1   :  { %4819 = vmatprep.mubr.f32.mxu0 %v6887_v28  ;;  %v5725_v28 = vpack.c.bf16 %v1130_v26, %v1129_v25 }
 0x4f3   :  { %5726 = vmatprep.subr.bf16.mxu1 %v5725_v28 }
 0x4f4   :  { %4820 = vmatmul.mubr.f32.gmra.mrb[36].mxu0 %v6891_v29  ;;  %v1132_v29 = vld [vmem:[#allocation10 + $0x18] sm:$0xff]  ;;  %5728 = vmatpush3.bf16.msra.mxu1 %v5725_v28 }
 0x4f5   :  { %4822 = vmatprep.mubr.f32.mxu0 %v6893_v30  ;;  %v5729_v30 = vpack.c.bf16 %v1132_v29, %v1131_v27 }
 0x4f7   :  { %5730 = vmatprep.subr.bf16.mxu1 %v5729_v30 }
 0x4f8   :  { %4823 = vmatmul.mubr.f32.gmra.mrb[38].mxu0 %v6897_v31  ;;  %v1133_v31 = vld [vmem:[#allocation10 + $0x20] sm:$0xff]  ;;  %5732 = vmatpush3.bf16.msra.mxu1 %v5729_v30 }
 0x4f9   :  { %4825 = vmatprep.mubr.f32.mxu0 %v6899_v32  ;;  %v1134_v32 = vld [vmem:[#allocation10 + $0x28] sm:$0xff] }
 0x4fc   :  { %4826 = vmatmul.mubr.f32.gmra.mrb[40].mxu0 %v6903_v33  ;;  %v5733_v33 = vpack.c.bf16 %v1134_v32, %v1133_v31 }
 0x4fd   :  { %4828 = vmatprep.mubr.f32.mxu0 %v6905_v34  ;;  %v1135_v34 = vld [vmem:[#allocation10 + $0x30] sm:$0xff] }
 0x4fe   :  { %5734 = vmatprep.subr.bf16.mxu1 %v5733_v33 }
 0x4ff   :  { %5736 = vmatpush3.bf16.msra.mxu1 %v5733_v33 }
 0x500   :  { %4829 = vmatmul.mubr.f32.gmra.mrb[42].mxu0 %v6909_v35  ;;  %v1136_v35 = vld [vmem:[#allocation10 + $0x38] sm:$0xff] }
 0x501   :  { %4831 = vmatprep.mubr.f32.mxu0 %v6911_v36  ;;  %v5737_v36 = vpack.c.bf16 %v1136_v35, %v1135_v34 }
 0x503   :  { %5738 = vmatprep.subr.bf16.mxu1 %v5737_v36 }
 0x504   :  { %4832 = vmatmul.mubr.f32.gmra.mrb[44].mxu0 %v6915_v37  ;;  %v1137_v37 = vld [vmem:[#allocation10 + $0x40] sm:$0xff]  ;;  %5740 = vmatpush3.bf16.msra.mxu1 %v5737_v36 }
 0x505   :  { %4834 = vmatprep.mubr.f32.mxu0 %v6917_v38  ;;  %v1138_v38 = vld [vmem:[#allocation10 + $0x48] sm:$0xff] }
 0x508   :  { %4835 = vmatmul.mubr.f32.gmra.mrb[46].mxu0 %v6921_v39  ;;  %v1139_v39 = vld [vmem:[#allocation10 + $0x50] sm:$0xff] }
 0x509   :  { %4925 = vmatprep.mubr.f32.mxu0 %v6845_v9  ;;  %v5741_v9 = vpack.c.bf16 %v1138_v38, %v1137_v37  ;;  %v5745_v45 = vpack.c.bf16 %v1140_v7, %v1139_v39 }
 0x50b   :  { %5742 = vmatprep.subr.bf16.mxu1 %v5741_v9 }
 0x50c   :  { %5744 = vmatpush3.bf16.msra.mxu1 %v5741_v9 }
 0x50d   :  { %5746 = vmatprep.subr.bf16.mxu1 %v5745_v45 }
 0x510   :  { %5748 = vmatpush3.bf16.msra.mxu1 %v5745_v45 }
 0x511   :  { %5750 = vmatprep.subr.bf16.mxu1 %v5749_v13 }
 0x514   :  { %5752 = vmatpush3.bf16.msra.mxu1 %v5749_v13 }
 0x515   :  { %5754 = vmatprep.subr.bf16.mxu1 %v5753_v14 }
 0x518   :  { %5756 = vmatpush3.bf16.msra.mxu1 %v5753_v14 }
 0x53b   :  { %v1036_v1 = vpop.permute.xlu1 %1035 }
 0x53c   :  { %v1034_v2 = vpop.permute.xlu0 %1033  ;;  %v1066_v35 = vadd.f32 %v1036_v1, %v6996_v52 }
 0x53d   :  { %v1065_v33 = vadd.f32 %v1034_v2, %v6998_v53 }
 0x53f   :  { %v1040_v24 = vpop.permute.xlu1 %1039 }
 0x540   :  { %v1038_v41 = vpop.permute.xlu0 %1037  ;;  %v1068_v7 = vadd.f32 %v1040_v24, %v7002_v3 }
 0x541   :  { %v1067_v9 = vadd.f32 %v1038_v41, %v7004_v8 }
 0x543   :  { %v1044_v42 = vpop.permute.xlu1 %1043 }
 0x544   :  { %v1042_v4 = vpop.permute.xlu0 %1041  ;;  %v1070_v59 = vadd.f32 %v1044_v42, %v7008_v61 }
 0x545   :  { %v1069_v13 = vadd.f32 %v1042_v4, %v7010_v18 }
 0x547   :  { %v1048_v43 = vpop.permute.xlu1 %1047 }
 0x548   :  { %v1046_v44 = vpop.permute.xlu0 %1045 }
 0x54b   :  { %v1052_v25 = vpop.permute.xlu1 %1051 }
 0x54c   :  { %v1050_v26 = vpop.permute.xlu0 %1049 }
 0x54f   :  { %v1056_v27 = vpop.permute.xlu1 %1055 }
 0x550   :  { %v1054_v28 = vpop.permute.xlu0 %1053  ;;  %v1076_v1 = vadd.f32 %v1056_v27, %v7026_v56 }
 0x553   :  { %v1060_v29 = vpop.permute.xlu1 %1059 }
 0x554   :  { %v1058_v30 = vpop.permute.xlu0 %1057 }
 0x555   :  { %v1077_v42 = vadd.f32 %v1058_v30, %v7034_v11  ;;  %v7123_v30 = vld [vmem:[#allocation2] sm:$0xff] }
 0x557   :  { %v1064_v31 = vpop.permute.xlu1 %1063 }
 0x558   :  { %v1062_v32 = vpop.permute.xlu0 %1061  ;;  %v1080_v27 = vadd.f32 %v1064_v31, %v7038_v48 }
 0x5bf   :  { %v4815_v16 = vpop.f32.mrb[32].mxu0 }
 0x5c0   :  { %1083 = vrot.lane.b32.xlu1 %v4815_v16, %s6594_s4  ;;  %v954_v49 = vpop.f32.mrb[33].mxu0 }
 0x5c1   :  { %1081 = vrot.lane.b32.xlu0 %v954_v49, %s6594_s4 }
 0x5c3   :  { %v4818_v50 = vpop.f32.mrb[34].mxu0 }
 0x5c4   :  { %1087 = vrot.lane.b32.xlu1 %v4818_v50, %s6594_s4  ;;  %v964_v62 = vpop.f32.mrb[35].mxu0  ;;  %v1071_v50 = vadd.f32 %v1046_v44, %v7016_v40 }
 0x5c5   :  { %1085 = vrot.lane.b32.xlu0 %v964_v62, %s6594_s4 }
 0x5c7   :  { %v4821_v63 = vpop.f32.mrb[36].mxu0 }
 0x5c8   :  { %1091 = vrot.lane.b32.xlu1 %v4821_v63, %s6594_s4  ;;  %v974_v17 = vpop.f32.mrb[37].mxu0  ;;  %v1072_v63 = vadd.f32 %v1048_v43, %v7014_v21  ;;  %v1078_v43 = vadd.f32 %v1060_v29, %v7032_v57  ;;  %v3979_v29 = vld [vmem:[%s8015_s8] ss:$0 sm:$0xff] }
 0x5c9   :  { %1089 = vrot.lane.b32.xlu0 %v974_v17, %s6594_s4 }
 0x5cb   :  { %v4824_v19 = vpop.f32.mrb[38].mxu0 }
 0x5cc   :  { %1095 = vrot.lane.b32.xlu1 %v4824_v19, %s6594_s4  ;;  %v984_v20 = vpop.f32.mrb[39].mxu0 }
 0x5cd   :  { %1093 = vrot.lane.b32.xlu0 %v984_v20, %s6594_s4 }
 0x5cf   :  { %v4827_v51 = vpop.f32.mrb[40].mxu0 }
 0x5d0   :  { %1099 = vrot.lane.b32.xlu1 %v4827_v51, %s6594_s4  ;;  %v994_v22 = vpop.f32.mrb[41].mxu0  ;;  %v1073_v51 = vadd.f32 %v1050_v26, %v7022_v6 }
 0x5d1   :  { %1097 = vrot.lane.b32.xlu0 %v994_v22, %s6594_s4 }
 0x5d3   :  { %v4830_v23 = vpop.f32.mrb[42].mxu0 }
 0x5d4   :  { %1103 = vrot.lane.b32.xlu1 %v4830_v23, %s6594_s4  ;;  %v1004_v55 = vpop.f32.mrb[43].mxu0  ;;  %v1074_v23 = vadd.f32 %v1052_v25, %v7020_v54 }
 0x5d5   :  { %1101 = vrot.lane.b32.xlu0 %v1004_v55, %s6594_s4 }
 0x5d7   :  { %v4833_v5 = vpop.f32.mrb[44].mxu0 }
 0x5d8   :  { %1107 = vrot.lane.b32.xlu1 %v4833_v5, %s6594_s4  ;;  %v1014_v12 = vpop.f32.mrb[45].mxu0 }
 0x5d9   :  { %1105 = vrot.lane.b32.xlu0 %v1014_v12, %s6594_s4 }
 0x5db   :  { %v4836_v15 = vpop.f32.mrb[46].mxu0 }
 0x5dc   :  { %1111 = vrot.lane.b32.xlu1 %v4836_v15, %s6594_s4  ;;  %v1024_v0 = vpop.f32.mrb[47].mxu0  ;;  %v1075_v15 = vadd.f32 %v1054_v28, %v7028_v10  ;;  %v1079_v28 = vadd.f32 %v1062_v32, %v7040_v60 }
 0x5dd   :  { %1109 = vrot.lane.b32.xlu0 %v1024_v0, %s6594_s4 }
 0x632   :  { %v1084_v34 = vpop.permute.xlu1 %1083 }
 0x633   :  { %v1082_v36 = vpop.permute.xlu0 %1081  ;;  %v1114_v38 = vadd.f32 %v1084_v34, %v1066_v35 }
 0x634   :  { %v1113_v37 = vadd.f32 %v1082_v36, %v1065_v33 }
 0x636   :  { %4869 = vmatprep.mubr.f32.mxu1 %v1113_v37  ;;  %v1088_v39 = vpop.permute.xlu1 %1087 }
 0x637   :  { %4870 = vmatmul.mubr.f32.vlgmr.msra.gmra.mrb[32].mxu1 %v1114_v38  ;;  %v1086_v45 = vpop.permute.xlu0 %1085  ;;  %v1116_v58 = vadd.f32 %v1088_v39, %v1068_v7 }
 0x638   :  { %v1115_v46 = vadd.f32 %v1086_v45, %v1067_v9 }
 0x63a   :  { %4872 = vmatprep.mubr.f32.mxu1 %v1115_v46  ;;  %v1092_v47 = vpop.permute.xlu1 %1091 }
 0x63b   :  { %4873 = vmatmul.mubr.f32.gmra.mrb[34].mxu1 %v1116_v58  ;;  %v1090_v14 = vpop.permute.xlu0 %1089  ;;  %v1118_v49 = vadd.f32 %v1092_v47, %v1070_v59 }
 0x63c   :  { %v1117_v16 = vadd.f32 %v1090_v14, %v1069_v13 }
 0x63e   :  { %4875 = vmatprep.mubr.f32.mxu1 %v1117_v16  ;;  %v1096_v62 = vpop.permute.xlu1 %1095 }
 0x63f   :  { %4876 = vmatmul.mubr.f32.gmra.mrb[36].mxu1 %v1118_v49  ;;  %v1094_v17 = vpop.permute.xlu0 %1093  ;;  %v1120_v20 = vadd.f32 %v1096_v62, %v1072_v63 }
 0x640   :  { %v1119_v19 = vadd.f32 %v1094_v17, %v1071_v50 }
 0x642   :  { %4878 = vmatprep.mubr.f32.mxu1 %v1119_v19  ;;  %v1100_v22 = vpop.permute.xlu1 %1099 }
 0x643   :  { %4879 = vmatmul.mubr.f32.gmra.mrb[38].mxu1 %v1120_v20  ;;  %v1098_v55 = vpop.permute.xlu0 %1097  ;;  %v1122_v12 = vadd.f32 %v1100_v22, %v1074_v23 }
 0x644   :  { %v1121_v5 = vadd.f32 %v1098_v55, %v1073_v51 }
 0x646   :  { %4881 = vmatprep.mubr.f32.mxu1 %v1121_v5  ;;  %v1104_v0 = vpop.permute.xlu1 %1103 }
 0x647   :  { %4882 = vmatmul.mubr.f32.gmra.mrb[40].mxu1 %v1122_v12  ;;  %v1102_v2 = vpop.permute.xlu0 %1101  ;;  %v1124_v41 = vadd.f32 %v1104_v0, %v1076_v1 }
 0x648   :  { %v1123_v24 = vadd.f32 %v1102_v2, %v1075_v15 }
 0x64a   :  { %4884 = vmatprep.mubr.f32.mxu1 %v1123_v24  ;;  %v1108_v4 = vpop.permute.xlu1 %1107 }
 0x64b   :  { %4885 = vmatmul.mubr.f32.gmra.mrb[42].mxu1 %v1124_v41  ;;  %v1106_v44 = vpop.permute.xlu0 %1105  ;;  %v1126_v26 = vadd.f32 %v1108_v4, %v1078_v43 }
 0x64c   :  { %v1125_v25 = vadd.f32 %v1106_v44, %v1077_v42 }
 0x64e   :  { %4887 = vmatprep.mubr.f32.mxu1 %v1125_v25  ;;  %v1112_v33 = vpop.permute.xlu1 %1111 }
 0x64f   :  { %4888 = vmatmul.mubr.f32.gmra.mrb[44].mxu1 %v1126_v26  ;;  %v1110_v34 = vpop.permute.xlu0 %1109  ;;  %v1128_v36 = vadd.f32 %v1112_v33, %v1080_v27  ;;  %v7180_v33 = vld [vmem:[#allocation2 + $0x10] sm:$0xff]  ;;  %v7183_v27 = vld [vmem:[#allocation2 + $0x18] sm:$0xff] }
 0x650   :  { %v1127_v35 = vadd.f32 %v1110_v34, %v1079_v28  ;;  %v7177_v28 = vld [vmem:[#allocation2 + $0x8] sm:$0xff]  ;;  %v7186_v34 = vld [vmem:[#allocation2 + $0x20] sm:$0xff] }
 0x652   :  { %4890 = vmatprep.mubr.f32.mxu1 %v1127_v35  ;;  %v7189_v35 = vld [vmem:[#allocation2 + $0x28] sm:$0xff] }
 0x653   :  { %4891 = vmatmul.mubr.f32.gmra.mrb[46].mxu1 %v1128_v36  ;;  %v7192_v36 = vld [vmem:[#allocation2 + $0x30] sm:$0xff] }
 0x654   :  { %4981 = vmatprep.mubr.f32.mxu1 %v7123_v30 }
 0x70a   :  { %v4871_v37 = vpop.f32.mrb[32].mxu1 }
 0x70b   :  { %v7129_v32 = vadd.f32 %v4871_v37, %v3979_v29  ;;  %v1218_v38 = vpop.f32.mrb[33].mxu1  ;;  %v7198_v37 = vld [vmem:[#allocation2 + $0x40] sm:$0xff] }
 0x70c   :  { %v7131_v9 = vadd.f32 %v3979_v29, %v1218_v38  ;;  %v7201_v38 = vld [vmem:[#allocation2 + $0x48] sm:$0xff] }
 0x70e   :  { %v4874_v31 = vpop.f32.mrb[34].mxu1  ;;  %v5757_v39 = vpack.c.bf16 %v7129_v32, %v7131_v9 }
 0x70f   :  { %v7135_v7 = vadd.f32 %v4874_v31, %v3979_v29  ;;  %v1228_v45 = vpop.f32.mrb[35].mxu1  ;;  %v7204_v31 = vld [vmem:[#allocation2 + $0x50] sm:$0xff] }
 0x710   :  { %v7137_v46 = vadd.f32 %v3979_v29, %v1228_v45  ;;  %5758 = vmatprep.subr.bf16.mxu0 %v5757_v39  ;;  %v7210_v45 = vld [vmem:[#allocation2 + $0x60] sm:$0xff] }
 0x711   :  { %5760 = vmatpush3.bf16.msra.mxu0 %v5757_v39  ;;  %v7207_v39 = vld [vmem:[#allocation2 + $0x58] sm:$0xff] }
 0x712   :  { %v4877_v58 = vpop.f32.mrb[36].mxu1  ;;  %v5761_v13 = vpack.c.bf16 %v7135_v7, %v7137_v46 }
 0x713   :  { %v7141_v47 = vadd.f32 %v4877_v58, %v3979_v29  ;;  %v1238_v59 = vpop.f32.mrb[37].mxu1  ;;  %v7213_v58 = vld [vmem:[#allocation2 + $0x68] sm:$0xff] }
 0x714   :  { %v7143_v14 = vadd.f32 %v3979_v29, %v1238_v59  ;;  %5762 = vmatprep.subr.bf16.mxu0 %v5761_v13  ;;  %v7219_v59 = vld [vmem:[#allocation2 + $0x78] sm:$0xff] }
 0x715   :  { %5764 = vmatpush3.bf16.msra.mxu0 %v5761_v13  ;;  %v7216_v13 = vld [vmem:[#allocation2 + $0x70] sm:$0xff] }
 0x716   :  { %v4880_v16 = vpop.f32.mrb[38].mxu1  ;;  %v5765_v49 = vpack.c.bf16 %v7141_v47, %v7143_v14 }
 0x717   :  { %v7147_v50 = vadd.f32 %v4880_v16, %v3979_v29  ;;  %v1248_v62 = vpop.f32.mrb[39].mxu1 }
 0x718   :  { %v7149_v63 = vadd.f32 %v3979_v29, %v1248_v62  ;;  %5766 = vmatprep.subr.bf16.mxu0 %v5765_v49 }
 0x719   :  { %5768 = vmatpush3.bf16.msra.mxu0 %v5765_v49 }
 0x71a   :  { %v4883_v17 = vpop.f32.mrb[40].mxu1  ;;  %v5769_v19 = vpack.c.bf16 %v7147_v50, %v7149_v63 }
 0x71b   :  { %v7153_v20 = vadd.f32 %v4883_v17, %v3979_v29  ;;  %v1258_v51 = vpop.f32.mrb[41].mxu1 }
 0x71c   :  { %v7155_v22 = vadd.f32 %v3979_v29, %v1258_v51  ;;  %5770 = vmatprep.subr.bf16.mxu0 %v5769_v19 }
 0x71d   :  { %5772 = vmatpush3.bf16.msra.mxu0 %v5769_v19 }
 0x71e   :  { %v4886_v23 = vpop.f32.mrb[42].mxu1  ;;  %v5773_v55 = vpack.c.bf16 %v7153_v20, %v7155_v22 }
 0x71f   :  { %v7159_v5 = vadd.f32 %v4886_v23, %v3979_v29  ;;  %v1268_v12 = vpop.f32.mrb[43].mxu1 }
 0x720   :  { %v7161_v15 = vadd.f32 %v3979_v29, %v1268_v12  ;;  %5774 = vmatprep.subr.bf16.mxu0 %v5773_v55 }
 0x721   :  { %5776 = vmatpush3.bf16.msra.mxu0 %v5773_v55 }
 0x722   :  { %v4889_v0 = vpop.f32.mrb[44].mxu1  ;;  %v5777_v1 = vpack.c.bf16 %v7159_v5, %v7161_v15 }
 0x723   :  { %v7165_v2 = vadd.f32 %v4889_v0, %v3979_v29  ;;  %v1278_v24 = vpop.f32.mrb[45].mxu1 }
 0x724   :  { %v7167_v41 = vadd.f32 %v3979_v29, %v1278_v24  ;;  %5778 = vmatprep.subr.bf16.mxu0 %v5777_v1 }
 0x725   :  { %5780 = vmatpush3.bf16.msra.mxu0 %v5777_v1 }
 0x726   :  { %v4892_v42 = vpop.f32.mrb[46].mxu1  ;;  %v5781_v4 = vpack.c.bf16 %v7165_v2, %v7167_v41 }
 0x727   :  { %v7171_v43 = vadd.f32 %v4892_v42, %v3979_v29  ;;  %v1288_v44 = vpop.f32.mrb[47].mxu1 }
 0x728   :  { %v7173_v25 = vadd.f32 %v3979_v29, %v1288_v44  ;;  %5782 = vmatprep.subr.bf16.mxu0 %v5781_v4  ;;  %v7195_v29 = vld [vmem:[#allocation2 + $0x38] sm:$0xff] }
 0x729   :  { %5784 = vmatpush3.bf16.msra.mxu0 %v5781_v4 }
 0x72a   :  { %v5785_v26 = vpack.c.bf16 %v7171_v43, %v7173_v25 }
 0x72c   :  { %5786 = vmatprep.subr.bf16.mxu0 %v5785_v26 }
 0x72d   :  { %5788 = vmatpush3.bf16.msra.mxu0 %v5785_v26 }
 0x730   :  { %4926 = vmatmul.mubr.f32.vlgmr.msra.gmra.mrb[48].mxu0 %v7177_v28 }
 0x731   :  { %4928 = vmatprep.mubr.f32.mxu0 %v7180_v33 }
 0x734   :  { %4929 = vmatmul.mubr.f32.gmra.mrb[50].mxu0 %v7183_v27 }
 0x735   :  { %4931 = vmatprep.mubr.f32.mxu0 %v7186_v34 }
 0x738   :  { %4932 = vmatmul.mubr.f32.gmra.mrb[52].mxu0 %v7189_v35 }
 0x739   :  { %4934 = vmatprep.mubr.f32.mxu0 %v7192_v36 }
 0x73c   :  { %4935 = vmatmul.mubr.f32.gmra.mrb[54].mxu0 %v7195_v29 }
 0x73d   :  { %4937 = vmatprep.mubr.f32.mxu0 %v7198_v37 }
 0x740   :  { %4938 = vmatmul.mubr.f32.gmra.mrb[56].mxu0 %v7201_v38 }
 0x741   :  { %4940 = vmatprep.mubr.f32.mxu0 %v7204_v31 }
 0x744   :  { %4941 = vmatmul.mubr.f32.gmra.mrb[58].mxu0 %v7207_v39 }
 0x745   :  { %4943 = vmatprep.mubr.f32.mxu0 %v7210_v45 }
 0x748   :  { %4944 = vmatmul.mubr.f32.gmra.mrb[60].mxu0 %v7213_v58 }
 0x749   :  { %4946 = vmatprep.mubr.f32.mxu0 %v7216_v13 }
 0x74c   :  { %4947 = vmatmul.mubr.f32.gmra.mrb[62].mxu0 %v7219_v59 }
 0x803   :  { %v4927_v16 = vpop.f32.mrb[48].mxu0 }
 0x804   :  { %1589 = vrot.lane.b32.xlu1 %v4927_v16, %s6593_s24  ;;  %v1363_v49 = vpop.f32.mrb[49].mxu0 }
 0x805   :  { %v5789_v62 = vpack.c.bf16 %v4927_v16, %v1363_v49  ;;  %1587 = vrot.lane.b32.xlu0 %v1363_v49, %s6593_s24 }
 0x807   :  { %v4930_v17 = vpop.f32.mrb[50].mxu0  ;;  %5790 = vmatprep.subr.bf16.mxu1 %v5789_v62 }
 0x808   :  { %5792 = vmatpush3.bf16.msra.mxu1 %v5789_v62  ;;  %1593 = vrot.lane.b32.xlu1 %v4930_v17, %s6593_s24  ;;  %v1373_v19 = vpop.f32.mrb[51].mxu0 }
 0x809   :  { %v5793_v51 = vpack.c.bf16 %v4930_v17, %v1373_v19  ;;  %1591 = vrot.lane.b32.xlu0 %v1373_v19, %s6593_s24 }
 0x80b   :  { %v4933_v23 = vpop.f32.mrb[52].mxu0  ;;  %5794 = vmatprep.subr.bf16.mxu1 %v5793_v51 }
 0x80c   :  { %5796 = vmatpush3.bf16.msra.mxu1 %v5793_v51  ;;  %1597 = vrot.lane.b32.xlu1 %v4933_v23, %s6593_s24  ;;  %v1383_v55 = vpop.f32.mrb[53].mxu0 }
 0x80d   :  { %v5797_v12 = vpack.c.bf16 %v4933_v23, %v1383_v55  ;;  %1595 = vrot.lane.b32.xlu0 %v1383_v55, %s6593_s24 }
 0x80f   :  { %v4936_v0 = vpop.f32.mrb[54].mxu0  ;;  %5798 = vmatprep.subr.bf16.mxu1 %v5797_v12 }
 0x810   :  { %5800 = vmatpush3.bf16.msra.mxu1 %v5797_v12  ;;  %1601 = vrot.lane.b32.xlu1 %v4936_v0, %s6593_s24  ;;  %v1393_v1 = vpop.f32.mrb[55].mxu0  ;;  %v1683_v12 = vld [vmem:[#allocation13] sm:$0xff] }
 0x811   :  { %v5801_v24 = vpack.c.bf16 %v4936_v0, %v1393_v1  ;;  %1599 = vrot.lane.b32.xlu0 %v1393_v1, %s6593_s24  ;;  %v1684_v0 = vld [vmem:[#allocation13 + $0x8] sm:$0xff]  ;;  %v1685_v1 = vld [vmem:[#allocation13 + $0x10] sm:$0xff] }
 0x813   :  { %v4939_v42 = vpop.f32.mrb[56].mxu0  ;;  %5802 = vmatprep.subr.bf16.mxu1 %v5801_v24 }
 0x814   :  { %5804 = vmatpush3.bf16.msra.mxu1 %v5801_v24  ;;  %1605 = vrot.lane.b32.xlu1 %v4939_v42, %s6593_s24  ;;  %v1403_v4 = vpop.f32.mrb[57].mxu0  ;;  %v5821_v24 = vpack.c.bf16 %v1684_v0, %v1683_v12  ;;  %v1694_v12 = vld [vmem:[#allocation13 + $0x58] sm:$0xff] }
 0x815   :  { %v5805_v44 = vpack.c.bf16 %v4939_v42, %v1403_v4  ;;  %1603 = vrot.lane.b32.xlu0 %v1403_v4, %s6593_s24  ;;  %v1686_v42 = vld [vmem:[#allocation13 + $0x18] sm:$0xff] }
 0x816   :  { %v5825_v4 = vpack.c.bf16 %v1686_v42, %v1685_v1  ;;  %5822 = vmatprep.subr.bf16.mxu0 %v5821_v24  ;;  %v1695_v1 = vld [vmem:[#allocation13 + $0x60] sm:$0xff]  ;;  %v1696_v42 = vld [vmem:[#allocation13 + $0x68] sm:$0xff] }
 0x817   :  { %v4942_v26 = vpop.f32.mrb[58].mxu0  ;;  %5806 = vmatprep.subr.bf16.mxu1 %v5805_v44  ;;  %5824 = vmatpush3.bf16.msra.mxu0 %v5821_v24  ;;  %v5845_v24 = vpack.c.bf16 %v1696_v42, %v1695_v1 }
 0x818   :  { %5808 = vmatpush3.bf16.msra.mxu1 %v5805_v44  ;;  %1609 = vrot.lane.b32.xlu1 %v4942_v26, %s6593_s24  ;;  %v1413_v16 = vpop.f32.mrb[59].mxu0  ;;  %v1687_v44 = vld [vmem:[#allocation13 + $0x20] sm:$0xff] }
 0x819   :  { %v5809_v49 = vpack.c.bf16 %v4942_v26, %v1413_v16  ;;  %1607 = vrot.lane.b32.xlu0 %v1413_v16, %s6593_s24  ;;  %v1688_v26 = vld [vmem:[#allocation13 + $0x28] sm:$0xff]  ;;  %5826 = vmatprep.subr.bf16.mxu0 %v5825_v4 }
 0x81a   :  { %v5829_v16 = vpack.c.bf16 %v1688_v26, %v1687_v44  ;;  %v1698_v44 = vld [vmem:[#allocation13 + $0x78] sm:$0xff] }
 0x81b   :  { %v4945_v62 = vpop.f32.mrb[60].mxu0  ;;  %5810 = vmatprep.subr.bf16.mxu1 %v5809_v49  ;;  %5828 = vmatpush3.bf16.msra.mxu0 %v5825_v4  ;;  %v1697_v4 = vld [vmem:[#allocation13 + $0x70] sm:$0xff] }
 0x81c   :  { %5812 = vmatpush3.bf16.msra.mxu1 %v5809_v49  ;;  %1613 = vrot.lane.b32.xlu1 %v4945_v62, %s6593_s24  ;;  %v1423_v17 = vpop.f32.mrb[61].mxu0  ;;  %v1689_v49 = vld [vmem:[#allocation13 + $0x30] sm:$0xff]  ;;  %v5849_v26 = vpack.c.bf16 %v1698_v44, %v1697_v4 }
 0x81d   :  { %v5813_v19 = vpack.c.bf16 %v4945_v62, %v1423_v17  ;;  %1611 = vrot.lane.b32.xlu0 %v1423_v17, %s6593_s24  ;;  %v1690_v62 = vld [vmem:[#allocation13 + $0x38] sm:$0xff]  ;;  %5830 = vmatprep.subr.bf16.mxu0 %v5829_v16 }
 0x81e   :  { %v5833_v17 = vpack.c.bf16 %v1690_v62, %v1689_v49 }
 0x81f   :  { %v4948_v51 = vpop.f32.mrb[62].mxu0  ;;  %5814 = vmatprep.subr.bf16.mxu1 %v5813_v19  ;;  %5832 = vmatpush3.bf16.msra.mxu0 %v5829_v16 }
 0x820   :  { %5816 = vmatpush3.bf16.msra.mxu1 %v5813_v19  ;;  %1617 = vrot.lane.b32.xlu1 %v4948_v51, %s6593_s24  ;;  %v1433_v23 = vpop.f32.mrb[63].mxu0  ;;  %v1691_v19 = vld [vmem:[#allocation13 + $0x40] sm:$0xff] }
 0x821   :  { %v5817_v55 = vpack.c.bf16 %v4948_v51, %v1433_v23  ;;  %1615 = vrot.lane.b32.xlu0 %v1433_v23, %s6593_s24  ;;  %v1692_v51 = vld [vmem:[#allocation13 + $0x48] sm:$0xff]  ;;  %5834 = vmatprep.subr.bf16.mxu0 %v5833_v17 }
 0x822   :  { %v5837_v23 = vpack.c.bf16 %v1692_v51, %v1691_v19 }
 0x823   :  { %5818 = vmatprep.subr.bf16.mxu1 %v5817_v55  ;;  %5836 = vmatpush3.bf16.msra.mxu0 %v5833_v17 }
 0x824   :  { %5820 = vmatpush3.bf16.msra.mxu1 %v5817_v55  ;;  %v1693_v55 = vld [vmem:[#allocation13 + $0x50] sm:$0xff]  ;;  %5838 = vmatprep.subr.bf16.mxu0 %v5837_v23 }
 0x825   :  { %v5841_v0 = vpack.c.bf16 %v1694_v12, %v1693_v55 }
 0x827   :  { %4982 = vmatmul.mubr.f32.vlgmr.msra.gmra.mrb[48].mxu1 %v7177_v28  ;;  %5840 = vmatpush3.bf16.msra.mxu0 %v5837_v23 }
 0x828   :  { %4984 = vmatprep.mubr.f32.mxu1 %v7180_v33  ;;  %5842 = vmatprep.subr.bf16.mxu0 %v5841_v0 }
 0x82b   :  { %4985 = vmatmul.mubr.f32.gmra.mrb[50].mxu1 %v7183_v27  ;;  %5844 = vmatpush3.bf16.msra.mxu0 %v5841_v0 }
 0x82c   :  { %4987 = vmatprep.mubr.f32.mxu1 %v7186_v34  ;;  %5846 = vmatprep.subr.bf16.mxu0 %v5845_v24 }
 0x82f   :  { %4988 = vmatmul.mubr.f32.gmra.mrb[52].mxu1 %v7189_v35  ;;  %5848 = vmatpush3.bf16.msra.mxu0 %v5845_v24 }
 0x830   :  { %4990 = vmatprep.mubr.f32.mxu1 %v7192_v36  ;;  %5850 = vmatprep.subr.bf16.mxu0 %v5849_v26 }
 0x833   :  { %4991 = vmatmul.mubr.f32.gmra.mrb[54].mxu1 %v7195_v29  ;;  %5852 = vmatpush3.bf16.msra.mxu0 %v5849_v26 }
 0x834   :  { %4993 = vmatprep.mubr.f32.mxu1 %v7198_v37 }
 0x837   :  { %4994 = vmatmul.mubr.f32.gmra.mrb[56].mxu1 %v7201_v38 }
 0x838   :  { %4996 = vmatprep.mubr.f32.mxu1 %v7204_v31 }
 0x83b   :  { %4997 = vmatmul.mubr.f32.gmra.mrb[58].mxu1 %v7207_v39 }
 0x83c   :  { %4999 = vmatprep.mubr.f32.mxu1 %v7210_v45 }
 0x83f   :  { %5000 = vmatmul.mubr.f32.gmra.mrb[60].mxu1 %v7213_v58 }
 0x840   :  { %5002 = vmatprep.mubr.f32.mxu1 %v7216_v13 }
 0x843   :  { %5003 = vmatmul.mubr.f32.gmra.mrb[62].mxu1 %v7219_v59 }
 0x844   :  { %5093 = vmatprep.mubr.f32.mxu1 %v7123_v30 }
 0x8fa   :  { %v4983_v16 = vpop.f32.mrb[48].mxu1 }
 0x8fb   :  { %1637 = vrot.lane.b32.xlu1 %v4983_v16, %s6594_s4  ;;  %v1508_v49 = vpop.f32.mrb[49].mxu1  ;;  %v1590_v16 = vpop.permute.xlu1 %1589 }
 0x8fc   :  { %1635 = vrot.lane.b32.xlu0 %v1508_v49, %s6594_s4  ;;  %v1588_v49 = vpop.permute.xlu0 %1587 }
 0x8fe   :  { %v4986_v62 = vpop.f32.mrb[50].mxu1 }
 0x8ff   :  { %1641 = vrot.lane.b32.xlu1 %v4986_v62, %s6594_s4  ;;  %v1518_v17 = vpop.f32.mrb[51].mxu1  ;;  %v1594_v62 = vpop.permute.xlu1 %1593 }
 0x900   :  { %1639 = vrot.lane.b32.xlu0 %v1518_v17, %s6594_s4  ;;  %v1592_v17 = vpop.permute.xlu0 %1591  ;;  %v1622_v40 = vadd.f32 %v1594_v62, %v7135_v7 }
 0x901   :  { %v1621_v6 = vadd.f32 %v1592_v17, %v7137_v46 }
 0x902   :  { %v4989_v19 = vpop.f32.mrb[52].mxu1 }
 0x903   :  { %1645 = vrot.lane.b32.xlu1 %v4989_v19, %s6594_s4  ;;  %v1528_v51 = vpop.f32.mrb[53].mxu1  ;;  %v1598_v19 = vpop.permute.xlu1 %1597 }
 0x904   :  { %1643 = vrot.lane.b32.xlu0 %v1528_v51, %s6594_s4  ;;  %v1596_v51 = vpop.permute.xlu0 %1595  ;;  %v1624_v3 = vadd.f32 %v1598_v19, %v7141_v47 }
 0x905   :  { %v1623_v8 = vadd.f32 %v1596_v51, %v7143_v14 }
 0x906   :  { %v4992_v23 = vpop.f32.mrb[54].mxu1 }
 0x907   :  { %1649 = vrot.lane.b32.xlu1 %v4992_v23, %s6594_s4  ;;  %v1538_v55 = vpop.f32.mrb[55].mxu1  ;;  %v1602_v23 = vpop.permute.xlu1 %1601 }
 0x908   :  { %1647 = vrot.lane.b32.xlu0 %v1538_v55, %s6594_s4  ;;  %v1600_v55 = vpop.permute.xlu0 %1599  ;;  %v1626_v62 = vadd.f32 %v1602_v23, %v7147_v50 }
 0x909   :  { %v1625_v17 = vadd.f32 %v1600_v55, %v7149_v63 }
 0x90a   :  { %v4995_v12 = vpop.f32.mrb[56].mxu1 }
 0x90b   :  { %1653 = vrot.lane.b32.xlu1 %v4995_v12, %s6594_s4  ;;  %v1548_v0 = vpop.f32.mrb[57].mxu1  ;;  %v1606_v12 = vpop.permute.xlu1 %1605 }
 0x90c   :  { %1651 = vrot.lane.b32.xlu0 %v1548_v0, %s6594_s4  ;;  %v1604_v0 = vpop.permute.xlu0 %1603 }
 0x90e   :  { %v4998_v1 = vpop.f32.mrb[58].mxu1 }
 0x90f   :  { %1657 = vrot.lane.b32.xlu1 %v4998_v1, %s6594_s4  ;;  %v1558_v42 = vpop.f32.mrb[59].mxu1  ;;  %v1610_v1 = vpop.permute.xlu1 %1609 }
 0x910   :  { %1655 = vrot.lane.b32.xlu0 %v1558_v42, %s6594_s4  ;;  %v1608_v42 = vpop.permute.xlu0 %1607  ;;  %v1630_v23 = vadd.f32 %v1610_v1, %v7159_v5 }
 0x911   :  { %v1629_v19 = vadd.f32 %v1608_v42, %v7161_v15 }
 0x912   :  { %v5001_v24 = vpop.f32.mrb[60].mxu1 }
 0x913   :  { %1661 = vrot.lane.b32.xlu1 %v5001_v24, %s6594_s4  ;;  %v1568_v4 = vpop.f32.mrb[61].mxu1  ;;  %v1614_v24 = vpop.permute.xlu1 %1613 }
 0x914   :  { %1659 = vrot.lane.b32.xlu0 %v1568_v4, %s6594_s4  ;;  %v1612_v4 = vpop.permute.xlu0 %1611 }
 0x916   :  { %v5004_v44 = vpop.f32.mrb[62].mxu1 }
 0x917   :  { %1665 = vrot.lane.b32.xlu1 %v5004_v44, %s6594_s4  ;;  %v1578_v26 = vpop.f32.mrb[63].mxu1  ;;  %v1618_v60 = vpop.permute.xlu1 %1617  ;;  %v1619_v44 = vadd.f32 %v1588_v49, %v7131_v9 }
 0x918   :  { %1663 = vrot.lane.b32.xlu0 %v1578_v26, %s6594_s4  ;;  %v1616_v48 = vpop.permute.xlu0 %1615  ;;  %v1620_v26 = vadd.f32 %v1590_v16, %v7129_v32  ;;  %v1634_v1 = vadd.f32 %v1618_v60, %v7171_v43 }
 0x919   :  { %v1633_v42 = vadd.f32 %v1616_v48, %v7173_v25 }
 0x96d   :  { %v1638_v11 = vpop.permute.xlu1 %1637 }
 0x96e   :  { %v1636_v57 = vpop.permute.xlu0 %1635  ;;  %v1668_v56 = vadd.f32 %v1638_v11, %v1620_v26 }
 0x96f   :  { %v1667_v10 = vadd.f32 %v1636_v57, %v1619_v44 }
 0x971   :  { %5037 = vmatprep.mubr.f32.mxu0 %v1667_v10  ;;  %v1642_v54 = vpop.permute.xlu1 %1641 }
 0x972   :  { %5038 = vmatmul.mubr.f32.vlgmr.msra.gmra.mrb[64].mxu0 %v1668_v56  ;;  %v1640_v21 = vpop.permute.xlu0 %1639  ;;  %v1670_v61 = vadd.f32 %v1642_v54, %v1622_v40  ;;  %v1627_v54 = vadd.f32 %v1604_v0, %v7155_v22  ;;  %v1631_v0 = vadd.f32 %v1612_v4, %v7167_v41 }
 0x973   :  { %v1669_v18 = vadd.f32 %v1640_v21, %v1621_v6  ;;  %v1628_v6 = vadd.f32 %v1606_v12, %v7153_v20  ;;  %v1632_v12 = vadd.f32 %v1614_v24, %v7165_v2  ;;  %v7290_v24 = vld [vmem:[%s8018_s11] ss:$0 sm:$0xff] }
 0x975   :  { %5040 = vmatprep.mubr.f32.mxu0 %v1669_v18  ;;  %v1646_v49 = vpop.permute.xlu1 %1645 }
 0x976   :  { %5041 = vmatmul.mubr.f32.gmra.mrb[66].mxu0 %v1670_v61  ;;  %v1644_v16 = vpop.permute.xlu0 %1643  ;;  %v1672_v11 = vadd.f32 %v1646_v49, %v1624_v3 }
 0x977   :  { %v1671_v57 = vadd.f32 %v1644_v16, %v1623_v8 }
 0x979   :  { %5043 = vmatprep.mubr.f32.mxu0 %v1671_v57  ;;  %v1650_v10 = vpop.permute.xlu1 %1649 }
 0x97a   :  { %5044 = vmatmul.mubr.f32.gmra.mrb[68].mxu0 %v1672_v11  ;;  %v1648_v56 = vpop.permute.xlu0 %1647  ;;  %v1674_v40 = vadd.f32 %v1650_v10, %v1626_v62 }
 0x97b   :  { %v1673_v21 = vadd.f32 %v1648_v56, %v1625_v17 }
 0x97d   :  { %5046 = vmatprep.mubr.f32.mxu0 %v1673_v21  ;;  %v1654_v18 = vpop.permute.xlu1 %1653 }
 0x97e   :  { %5047 = vmatmul.mubr.f32.gmra.mrb[70].mxu0 %v1674_v40  ;;  %v1652_v61 = vpop.permute.xlu0 %1651  ;;  %v1676_v3 = vadd.f32 %v1654_v18, %v1628_v6 }
 0x97f   :  { %v1675_v8 = vadd.f32 %v1652_v61, %v1627_v54 }
 0x981   :  { %5049 = vmatprep.mubr.f32.mxu0 %v1675_v8  ;;  %v1658_v51 = vpop.permute.xlu1 %1657 }
 0x982   :  { %5050 = vmatmul.mubr.f32.gmra.mrb[72].mxu0 %v1676_v3  ;;  %v1656_v55 = vpop.permute.xlu0 %1655  ;;  %v1678_v26 = vadd.f32 %v1658_v51, %v1630_v23 }
 0x983   :  { %v1677_v44 = vadd.f32 %v1656_v55, %v1629_v19 }
 0x985   :  { %5052 = vmatprep.mubr.f32.mxu0 %v1677_v44  ;;  %v1662_v49 = vpop.permute.xlu1 %1661 }
 0x986   :  { %5053 = vmatmul.mubr.f32.gmra.mrb[74].mxu0 %v1678_v26  ;;  %v1660_v16 = vpop.permute.xlu0 %1659  ;;  %v1680_v11 = vadd.f32 %v1662_v49, %v1632_v12 }
 0x987   :  { %v1679_v57 = vadd.f32 %v1660_v16, %v1631_v0 }
 0x989   :  { %5055 = vmatprep.mubr.f32.mxu0 %v1679_v57  ;;  %v1666_v17 = vpop.permute.xlu1 %1665 }
 0x98a   :  { %5056 = vmatmul.mubr.f32.gmra.mrb[76].mxu0 %v1680_v11  ;;  %v1664_v10 = vpop.permute.xlu0 %1663  ;;  %v1682_v56 = vadd.f32 %v1666_v17, %v1634_v1 }
 0x98b   :  { %v1681_v62 = vadd.f32 %v1664_v10, %v1633_v42 }
 0x98d   :  { %5058 = vmatprep.mubr.f32.mxu0 %v1681_v62 }
 0x98e   :  { %5059 = vmatmul.mubr.f32.gmra.mrb[78].mxu0 %v1682_v56 }
 0x98f   :  { %5149 = vmatprep.mubr.f32.mxu0 %v7123_v30 }
 0xa45   :  { %v5039_v4 = vpop.f32.mrb[64].mxu0 }
 0xa46   :  { %v1778_v48 = vadd.f32 %v5039_v4, %v7290_v24  ;;  %v1772_v21 = vpop.f32.mrb[65].mxu0 }
 0xa47   :  { %v1773_v40 = vadd.f32 %v7290_v24, %v1772_v21 }
 0xa48   :  { %1852 = vst [vmem:[#allocation16 + $0x8] sm:$0xff] %v1778_v48  ;;  %v1868_v60 = vadd.f32 1e-06, %v1778_v48 }
 0xa49   :  { %1851 = vst [vmem:[#allocation16] sm:$0xff] %v1773_v40  ;;  %v1867_v54 = vadd.f32 1e-06, %v1773_v40  ;;  %v5042_v18 = vpop.f32.mrb[66].mxu0 }
 0xa4a   :  { %6158 = vrcp.f32 %v1868_v60  ;;  %v1788_v6 = vadd.f32 %v5042_v18, %v7290_v24  ;;  %v1782_v30 = vpop.f32.mrb[67].mxu0 }
 0xa4b   :  { %6160 = vrcp.f32 %v1867_v54  ;;  %v1783_v61 = vadd.f32 %v7290_v24, %v1782_v30 }
 0xa4c   :  { %1854 = vst [vmem:[#allocation16 + $0x18] sm:$0xff] %v1788_v6  ;;  %v1870_v8 = vadd.f32 1e-06, %v1788_v6 }
 0xa4d   :  { %1853 = vst [vmem:[#allocation16 + $0x10] sm:$0xff] %v1783_v61  ;;  %v1869_v3 = vadd.f32 1e-06, %v1783_v61  ;;  %v5045_v19 = vpop.f32.mrb[68].mxu0 }
 0xa4e   :  { %6162 = vrcp.f32 %v1870_v8  ;;  %v1798_v51 = vadd.f32 %v5045_v19, %v7290_v24  ;;  %v1792_v23 = vpop.f32.mrb[69].mxu0 }
 0xa4f   :  { %6164 = vrcp.f32 %v1869_v3  ;;  %v1793_v55 = vadd.f32 %v7290_v24, %v1792_v23 }
 0xa50   :  { %1856 = vst [vmem:[#allocation16 + $0x28] sm:$0xff] %v1798_v51  ;;  %v1872_v44 = vadd.f32 1e-06, %v1798_v51 }
 0xa51   :  { %1855 = vst [vmem:[#allocation16 + $0x20] sm:$0xff] %v1793_v55  ;;  %v1871_v26 = vadd.f32 1e-06, %v1793_v55  ;;  %v5048_v0 = vpop.f32.mrb[70].mxu0 }
 0xa52   :  { %6166 = vrcp.f32 %v1872_v44  ;;  %v1808_v49 = vadd.f32 %v5048_v0, %v7290_v24  ;;  %v1802_v12 = vpop.f32.mrb[71].mxu0 }
 0xa53   :  { %6168 = vrcp.f32 %v1871_v26  ;;  %v1803_v16 = vadd.f32 %v7290_v24, %v1802_v12 }
 0xa54   :  { %v6159_v57 = vpop.eup %6158  ;;  %1858 = vst [vmem:[#allocation16 + $0x38] sm:$0xff] %v1808_v49  ;;  %v1874_v11 = vadd.f32 1e-06, %v1808_v49 }
 0xa55   :  { %v6161_v42 = vpop.eup %6160  ;;  %v7300_v17 = vmul.f32 %v6159_v57, %v1778_v48  ;;  %1857 = vst [vmem:[#allocation16 + $0x30] sm:$0xff] %v1803_v16  ;;  %v1873_v1 = vadd.f32 1e-06, %v1803_v16  ;;  %v5051_v10 = vpop.f32.mrb[72].mxu0 }
 0xa56   :  { %v7302_v62 = vmul.f32 %v6161_v42, %v1773_v40  ;;  %6170 = vrcp.f32 %v1874_v11  ;;  %v1818_v56 = vadd.f32 %v5051_v10, %v7290_v24  ;;  %v1812_v4 = vpop.f32.mrb[73].mxu0 }
 0xa57   :  { %6172 = vrcp.f32 %v1873_v1  ;;  %v1813_v21 = vadd.f32 %v7290_v24, %v1812_v4 }
 0xa58   :  { %v6163_v60 = vpop.eup %6162  ;;  %1860 = vst [vmem:[#allocation16 + $0x48] sm:$0xff] %v1818_v56  ;;  %v1876_v54 = vadd.f32 1e-06, %v1818_v56  ;;  %v5853_v18 = vpack.c.bf16 %v7300_v17, %v7302_v62 }
 0xa59   :  { %v6165_v48 = vpop.eup %6164  ;;  %v7308_v30 = vmul.f32 %v6163_v60, %v1788_v6  ;;  %1859 = vst [vmem:[#allocation16 + $0x40] sm:$0xff] %v1813_v21  ;;  %v1875_v8 = vadd.f32 1e-06, %v1813_v21  ;;  %v5054_v40 = vpop.f32.mrb[74].mxu0 }
 0xa5a   :  { %v7310_v3 = vmul.f32 %v6165_v48, %v1783_v61  ;;  %6174 = vrcp.f32 %v1876_v54  ;;  %v1828_v19 = vadd.f32 %v5054_v40, %v7290_v24  ;;  %v1822_v23 = vpop.f32.mrb[75].mxu0  ;;  %5854 = vmatprep.subr.bf16.mxu1 %v5853_v18 }
 0xa5b   :  { %6176 = vrcp.f32 %v1875_v8  ;;  %v1823_v44 = vadd.f32 %v7290_v24, %v1822_v23  ;;  %5856 = vmatpush3.bf16.msra.mxu1 %v5853_v18 }
 0xa5c   :  { %v6167_v26 = vpop.eup %6166  ;;  %1862 = vst [vmem:[#allocation16 + $0x58] sm:$0xff] %v1828_v19  ;;  %v1878_v0 = vadd.f32 1e-06, %v1828_v19  ;;  %v5857_v6 = vpack.c.bf16 %v7308_v30, %v7310_v3 }
 0xa5d   :  { %v6169_v12 = vpop.eup %6168  ;;  %v7316_v57 = vmul.f32 %v6167_v26, %v1798_v51  ;;  %1861 = vst [vmem:[#allocation16 + $0x50] sm:$0xff] %v1823_v44  ;;  %v1877_v61 = vadd.f32 1e-06, %v1823_v44  ;;  %v5057_v11 = vpop.f32.mrb[76].mxu0 }
 0xa5e   :  { %v7318_v42 = vmul.f32 %v6169_v12, %v1793_v55  ;;  %6178 = vrcp.f32 %v1878_v0  ;;  %v1838_v1 = vadd.f32 %v5057_v11, %v7290_v24  ;;  %v1832_v10 = vpop.f32.mrb[77].mxu0  ;;  %5858 = vmatprep.subr.bf16.mxu1 %v5857_v6 }
 0xa5f   :  { %6180 = vrcp.f32 %v1877_v61  ;;  %v1833_v4 = vadd.f32 %v7290_v24, %v1832_v10  ;;  %5860 = vmatpush3.bf16.msra.mxu1 %v5857_v6 }
 0xa60   :  { %v6171_v60 = vpop.eup %6170  ;;  %1864 = vst [vmem:[#allocation16 + $0x68] sm:$0xff] %v1838_v1  ;;  %v1880_v54 = vadd.f32 1e-06, %v1838_v1  ;;  %v5861_v51 = vpack.c.bf16 %v7316_v57, %v7318_v42 }
 0xa61   :  { %v6173_v18 = vpop.eup %6172  ;;  %v7324_v48 = vmul.f32 %v6171_v60, %v1808_v49  ;;  %1863 = vst [vmem:[#allocation16 + $0x60] sm:$0xff] %v1833_v4  ;;  %v1879_v55 = vadd.f32 1e-06, %v1833_v4  ;;  %v5060_v8 = vpop.f32.mrb[78].mxu0 }
 0xa62   :  { %v7326_v40 = vmul.f32 %v6173_v18, %v1803_v16  ;;  %6182 = vrcp.f32 %v1880_v54  ;;  %v1848_v23 = vadd.f32 %v5060_v8, %v7290_v24  ;;  %v1842_v26 = vpop.f32.mrb[79].mxu0  ;;  %5862 = vmatprep.subr.bf16.mxu1 %v5861_v51 }
 0xa63   :  { %6184 = vrcp.f32 %v1879_v55  ;;  %v1843_v0 = vadd.f32 %v7290_v24, %v1842_v26  ;;  %5864 = vmatpush3.bf16.msra.mxu1 %v5861_v51 }
 0xa64   :  { %v6175_v6 = vpop.eup %6174  ;;  %1866 = vst [vmem:[#allocation16 + $0x78] sm:$0xff] %v1848_v23  ;;  %v1882_v12 = vadd.f32 1e-06, %v1848_v23  ;;  %v5865_v49 = vpack.c.bf16 %v7324_v48, %v7326_v40 }
 0xa65   :  { %v6177_v61 = vpop.eup %6176  ;;  %v7332_v11 = vmul.f32 %v6175_v6, %v1818_v56  ;;  %1865 = vst [vmem:[#allocation16 + $0x70] sm:$0xff] %v1843_v0  ;;  %v1881_v16 = vadd.f32 1e-06, %v1843_v0 }
 0xa66   :  { %v7334_v10 = vmul.f32 %v6177_v61, %v1813_v21  ;;  %6186 = vrcp.f32 %v1882_v12  ;;  %5866 = vmatprep.subr.bf16.mxu1 %v5865_v49 }
 0xa67   :  { %6188 = vrcp.f32 %v1881_v16  ;;  %5868 = vmatpush3.bf16.msra.mxu1 %v5865_v49 }
 0xa68   :  { %v6179_v60 = vpop.eup %6178  ;;  %v5869_v24 = vpack.c.bf16 %v7332_v11, %v7334_v10 }
 0xa69   :  { %v6181_v54 = vpop.eup %6180  ;;  %v7338_v51 = vmul.f32 %v6179_v60, %v1828_v19 }
 0xa6a   :  { %v7340_v18 = vmul.f32 %v6181_v54, %v1823_v44  ;;  %5870 = vmatprep.subr.bf16.mxu1 %v5869_v24 }
 0xa6b   :  { %5872 = vmatpush3.bf16.msra.mxu1 %v5869_v24 }
 0xa6c   :  { %v6183_v56 = vpop.eup %6182  ;;  %v5873_v21 = vpack.c.bf16 %v7338_v51, %v7340_v18 }
 0xa6d   :  { %v6185_v55 = vpop.eup %6184  ;;  %v7344_v8 = vmul.f32 %v6183_v56, %v1838_v1 }
 0xa6e   :  { %v7346_v26 = vmul.f32 %v6185_v55, %v1833_v4  ;;  %5874 = vmatprep.subr.bf16.mxu1 %v5873_v21 }
 0xa6f   :  { %5876 = vmatpush3.bf16.msra.mxu1 %v5873_v21 }
 0xa70   :  { %v6187_v6 = vpop.eup %6186  ;;  %v5877_v19 = vpack.c.bf16 %v7344_v8, %v7346_v26 }
 0xa71   :  { %v6189_v12 = vpop.eup %6188  ;;  %v7350_v44 = vmul.f32 %v6187_v6, %v1848_v23 }
 0xa72   :  { %v7352_v49 = vmul.f32 %v6189_v12, %v1843_v0  ;;  %5878 = vmatprep.subr.bf16.mxu1 %v5877_v19 }
 0xa73   :  { %5880 = vmatpush3.bf16.msra.mxu1 %v5877_v19 }
 0xa74   :  { %v5881_v61 = vpack.c.bf16 %v7350_v44, %v7352_v49 }
 0xa76   :  { %5882 = vmatprep.subr.bf16.mxu1 %v5881_v61 }
 0xa77   :  { %5884 = vmatpush3.bf16.msra.mxu1 %v5881_v61 }
 0xa7a   :  { %5094 = vmatmul.mubr.f32.vlgmr.msra.gmra.mrb[64].mxu1 %v7177_v28 }
 0xa7b   :  { %5096 = vmatprep.mubr.f32.mxu1 %v7180_v33 }
 0xa7e   :  { %5097 = vmatmul.mubr.f32.gmra.mrb[66].mxu1 %v7183_v27 }
 0xa7f   :  { %5099 = vmatprep.mubr.f32.mxu1 %v7186_v34 }
 0xa82   :  { %5100 = vmatmul.mubr.f32.gmra.mrb[68].mxu1 %v7189_v35 }
 0xa83   :  { %5102 = vmatprep.mubr.f32.mxu1 %v7192_v36 }
 0xa86   :  { %5103 = vmatmul.mubr.f32.gmra.mrb[70].mxu1 %v7195_v29 }
 0xa87   :  { %5105 = vmatprep.mubr.f32.mxu1 %v7198_v37 }
 0xa8a   :  { %5106 = vmatmul.mubr.f32.gmra.mrb[72].mxu1 %v7201_v38 }
 0xa8b   :  { %5108 = vmatprep.mubr.f32.mxu1 %v7204_v31 }
 0xa8e   :  { %5109 = vmatmul.mubr.f32.gmra.mrb[74].mxu1 %v7207_v39 }
 0xa8f   :  { %5111 = vmatprep.mubr.f32.mxu1 %v7210_v45 }
 0xa92   :  { %5112 = vmatmul.mubr.f32.gmra.mrb[76].mxu1 %v7213_v58 }
 0xa93   :  { %5114 = vmatprep.mubr.f32.mxu1 %v7216_v13 }
 0xa96   :  { %5115 = vmatmul.mubr.f32.gmra.mrb[78].mxu1 %v7219_v59 }
 0xb4d   :  { %v5095_v1 = vpop.f32.mrb[64].mxu1 }
 0xb4e   :  { %2207 = vrot.lane.b32.xlu1 %v5095_v1, %s6585_s16  ;;  %v1981_v4 = vpop.f32.mrb[65].mxu1 }
 0xb4f   :  { %v5885_v23 = vpack.c.bf16 %v5095_v1, %v1981_v4  ;;  %2205 = vrot.lane.b32.xlu0 %v1981_v4, %s6585_s16 }
 0xb51   :  { %v5098_v0 = vpop.f32.mrb[66].mxu1  ;;  %5886 = vmatprep.subr.bf16.mxu0 %v5885_v23 }
 0xb52   :  { %5888 = vmatpush3.bf16.msra.mxu0 %v5885_v23  ;;  %2211 = vrot.lane.b32.xlu1 %v5098_v0, %s6585_s16  ;;  %v1991_v16 = vpop.f32.mrb[67].mxu1 }
 0xb53   :  { %v5889_v60 = vpack.c.bf16 %v5098_v0, %v1991_v16  ;;  %2209 = vrot.lane.b32.xlu0 %v1991_v16, %s6585_s16 }
 0xb55   :  { %v5101_v24 = vpop.f32.mrb[68].mxu1  ;;  %5890 = vmatprep.subr.bf16.mxu0 %v5889_v60 }
 0xb56   :  { %5892 = vmatpush3.bf16.msra.mxu0 %v5889_v60  ;;  %2215 = vrot.lane.b32.xlu1 %v5101_v24, %s6585_s16  ;;  %v2001_v54 = vpop.f32.mrb[69].mxu1 }
 0xb57   :  { %v5893_v56 = vpack.c.bf16 %v5101_v24, %v2001_v54  ;;  %2213 = vrot.lane.b32.xlu0 %v2001_v54, %s6585_s16 }
 0xb59   :  { %v5104_v21 = vpop.f32.mrb[70].mxu1  ;;  %5894 = vmatprep.subr.bf16.mxu0 %v5893_v56 }
 0xb5a   :  { %5896 = vmatpush3.bf16.msra.mxu0 %v5893_v56  ;;  %2219 = vrot.lane.b32.xlu1 %v5104_v21, %s6585_s16  ;;  %v2011_v55 = vpop.f32.mrb[71].mxu1 }
 0xb5b   :  { %v5897_v6 = vpack.c.bf16 %v5104_v21, %v2011_v55  ;;  %2217 = vrot.lane.b32.xlu0 %v2011_v55, %s6585_s16  ;;  %v2311_v55 = vld [vmem:[#allocation14 + $0x50] sm:$0xff] }
 0xb5d   :  { %v5107_v19 = vpop.f32.mrb[72].mxu1  ;;  %5898 = vmatprep.subr.bf16.mxu0 %v5897_v6 }
 0xb5e   :  { %5900 = vmatpush3.bf16.msra.mxu0 %v5897_v6  ;;  %2223 = vrot.lane.b32.xlu1 %v5107_v19, %s6585_s16  ;;  %v2021_v12 = vpop.f32.mrb[73].mxu1  ;;  %v2312_v6 = vld [vmem:[#allocation14 + $0x58] sm:$0xff] }
 0xb5f   :  { %v5901_v61 = vpack.c.bf16 %v5107_v19, %v2021_v12  ;;  %2221 = vrot.lane.b32.xlu0 %v2021_v12, %s6585_s16  ;;  %v5937_v19 = vpack.c.bf16 %v2312_v6, %v2311_v55  ;;  %v2313_v12 = vld [vmem:[#allocation14 + $0x60] sm:$0xff] }
 0xb61   :  { %v5110_v1 = vpop.f32.mrb[74].mxu1  ;;  %5902 = vmatprep.subr.bf16.mxu0 %v5901_v61 }
 0xb62   :  { %5904 = vmatpush3.bf16.msra.mxu0 %v5901_v61  ;;  %2227 = vrot.lane.b32.xlu1 %v5110_v1, %s6585_s16  ;;  %v2031_v4 = vpop.f32.mrb[75].mxu1  ;;  %v2314_v61 = vld [vmem:[#allocation14 + $0x68] sm:$0xff] }
 0xb63   :  { %v5905_v23 = vpack.c.bf16 %v5110_v1, %v2031_v4  ;;  %2225 = vrot.lane.b32.xlu0 %v2031_v4, %s6585_s16  ;;  %v5941_v1 = vpack.c.bf16 %v2314_v61, %v2313_v12  ;;  %v2315_v4 = vld [vmem:[#allocation14 + $0x70] sm:$0xff] }
 0xb65   :  { %v5113_v0 = vpop.f32.mrb[76].mxu1  ;;  %5906 = vmatprep.subr.bf16.mxu0 %v5905_v23 }
 0xb66   :  { %5908 = vmatpush3.bf16.msra.mxu0 %v5905_v23  ;;  %2231 = vrot.lane.b32.xlu1 %v5113_v0, %s6585_s16  ;;  %v2041_v16 = vpop.f32.mrb[77].mxu1  ;;  %v2316_v23 = vld [vmem:[#allocation14 + $0x78] sm:$0xff] }
 0xb67   :  { %v5909_v60 = vpack.c.bf16 %v5113_v0, %v2041_v16  ;;  %2229 = vrot.lane.b32.xlu0 %v2041_v16, %s6585_s16  ;;  %v5945_v0 = vpack.c.bf16 %v2316_v23, %v2315_v4 }
 0xb69   :  { %v5116_v24 = vpop.f32.mrb[78].mxu1  ;;  %5910 = vmatprep.subr.bf16.mxu0 %v5909_v60 }
 0xb6a   :  { %5912 = vmatpush3.bf16.msra.mxu0 %v5909_v60  ;;  %2235 = vrot.lane.b32.xlu1 %v5116_v24, %s6585_s16  ;;  %v2051_v54 = vpop.f32.mrb[79].mxu1 }
 0xb6b   :  { %v5913_v56 = vpack.c.bf16 %v5116_v24, %v2051_v54  ;;  %2233 = vrot.lane.b32.xlu0 %v2051_v54, %s6585_s16 }
 0xb6d   :  { %5914 = vmatprep.subr.bf16.mxu0 %v5913_v56 }
 0xb6e   :  { %5916 = vmatpush3.bf16.msra.mxu0 %v5913_v56 }
 0xb71   :  { %5150 = vmatmul.mubr.f32.vlgmr.msra.gmra.mrb[80].mxu0 %v7177_v28  ;;  %v7402_v28 = vld [vmem:[#allocation2] sm:$0xff] }
 0xb72   :  { %5152 = vmatprep.mubr.f32.mxu0 %v7180_v33  ;;  %v2301_v33 = vld [vmem:[#allocation14] sm:$0xff] }
 0xb75   :  { %5153 = vmatmul.mubr.f32.gmra.mrb[82].mxu0 %v7183_v27  ;;  %v2302_v27 = vld [vmem:[#allocation14 + $0x8] sm:$0xff] }
 0xb76   :  { %5155 = vmatprep.mubr.f32.mxu0 %v7186_v34  ;;  %v2303_v34 = vld [vmem:[#allocation14 + $0x10] sm:$0xff] }
 0xb79   :  { %5156 = vmatmul.mubr.f32.gmra.mrb[84].mxu0 %v7189_v35  ;;  %v5917_v35 = vpack.c.bf16 %v2302_v27, %v2301_v33 }
 0xb7a   :  { %5158 = vmatprep.mubr.f32.mxu0 %v7192_v36  ;;  %v2304_v36 = vld [vmem:[#allocation14 + $0x18] sm:$0xff] }
 0xb7b   :  { %5918 = vmatprep.subr.bf16.mxu1 %v5917_v35 }
 0xb7c   :  { %5920 = vmatpush3.bf16.msra.mxu1 %v5917_v35 }
 0xb7d   :  { %5159 = vmatmul.mubr.f32.gmra.mrb[86].mxu0 %v7195_v29  ;;  %v5921_v29 = vpack.c.bf16 %v2304_v36, %v2303_v34 }
 0xb7e   :  { %5161 = vmatprep.mubr.f32.mxu0 %v7198_v37  ;;  %v2305_v37 = vld [vmem:[#allocation14 + $0x20] sm:$0xff] }
 0xb7f   :  { %5922 = vmatprep.subr.bf16.mxu1 %v5921_v29 }
 0xb80   :  { %5924 = vmatpush3.bf16.msra.mxu1 %v5921_v29 }
 0xb81   :  { %5162 = vmatmul.mubr.f32.gmra.mrb[88].mxu0 %v7201_v38  ;;  %v2306_v38 = vld [vmem:[#allocation14 + $0x28] sm:$0xff] }
 0xb82   :  { %5164 = vmatprep.mubr.f32.mxu0 %v7204_v31  ;;  %v5925_v31 = vpack.c.bf16 %v2306_v38, %v2305_v37 }
 0xb84   :  { %5926 = vmatprep.subr.bf16.mxu1 %v5925_v31 }
 0xb85   :  { %5165 = vmatmul.mubr.f32.gmra.mrb[90].mxu0 %v7207_v39  ;;  %v2307_v39 = vld [vmem:[#allocation14 + $0x30] sm:$0xff]  ;;  %5928 = vmatpush3.bf16.msra.mxu1 %v5925_v31 }
 0xb86   :  { %5167 = vmatprep.mubr.f32.mxu0 %v7210_v45  ;;  %v2308_v45 = vld [vmem:[#allocation14 + $0x38] sm:$0xff] }
 0xb89   :  { %5168 = vmatmul.mubr.f32.gmra.mrb[92].mxu0 %v7213_v58  ;;  %v5929_v58 = vpack.c.bf16 %v2308_v45, %v2307_v39 }
 0xb8a   :  { %5170 = vmatprep.mubr.f32.mxu0 %v7216_v13  ;;  %v2309_v13 = vld [vmem:[#allocation14 + $0x40] sm:$0xff] }
 0xb8b   :  { %5930 = vmatprep.subr.bf16.mxu1 %v5929_v58 }
 0xb8c   :  { %5932 = vmatpush3.bf16.msra.mxu1 %v5929_v58 }
 0xb8d   :  { %5171 = vmatmul.mubr.f32.gmra.mrb[94].mxu0 %v7219_v59  ;;  %v2310_v59 = vld [vmem:[#allocation14 + $0x48] sm:$0xff] }
 0xb8e   :  { %5261 = vmatprep.mubr.f32.mxu0 %v7402_v28  ;;  %v5933_v21 = vpack.c.bf16 %v2310_v59, %v2309_v13 }
 0xb90   :  { %5934 = vmatprep.subr.bf16.mxu1 %v5933_v21 }
 0xb91   :  { %5936 = vmatpush3.bf16.msra.mxu1 %v5933_v21 }
 0xb92   :  { %5938 = vmatprep.subr.bf16.mxu1 %v5937_v19 }
 0xb95   :  { %5940 = vmatpush3.bf16.msra.mxu1 %v5937_v19 }
 0xb96   :  { %5942 = vmatprep.subr.bf16.mxu1 %v5941_v1 }
 0xb99   :  { %5944 = vmatpush3.bf16.msra.mxu1 %v5941_v1 }
 0xb9a   :  { %5946 = vmatprep.subr.bf16.mxu1 %v5945_v0 }
 0xb9d   :  { %5948 = vmatpush3.bf16.msra.mxu1 %v5945_v0 }
 0xbc0   :  { %v2208_v58 = vpop.permute.xlu1 %2207 }
 0xbc1   :  { %v2206_v13 = vpop.permute.xlu0 %2205 }
 0xbc4   :  { %v2212_v59 = vpop.permute.xlu1 %2211 }
 0xbc5   :  { %v2210_v21 = vpop.permute.xlu0 %2209 }
 0xbc8   :  { %v2216_v55 = vpop.permute.xlu1 %2215 }
 0xbc9   :  { %v2214_v6 = vpop.permute.xlu0 %2213 }
 0xbcc   :  { %v2220_v19 = vpop.permute.xlu1 %2219 }
 0xbcd   :  { %v2218_v12 = vpop.permute.xlu0 %2217 }
 0xbd0   :  { %v2224_v61 = vpop.permute.xlu1 %2223 }
 0xbd1   :  { %v2222_v1 = vpop.permute.xlu0 %2221 }
 0xbd4   :  { %v2228_v4 = vpop.permute.xlu1 %2227 }
 0xbd5   :  { %v2226_v23 = vpop.permute.xlu0 %2225 }
 0xbd8   :  { %v2232_v0 = vpop.permute.xlu1 %2231 }
 0xc44   :  { %v5151_v16 = vpop.f32.mrb[80].mxu0 }
 0xc45   :  { %2255 = vrot.lane.b32.xlu1 %v5151_v16, %s6592_s10  ;;  %v2126_v60 = vpop.f32.mrb[81].mxu0  ;;  %v2230_v16 = vpop.permute.xlu0 %2229 }
 0xc46   :  { %2253 = vrot.lane.b32.xlu0 %v2126_v60, %s6592_s10  ;;  %v2236_v60 = vpop.permute.xlu1 %2235 }
 0xc48   :  { %v5154_v24 = vpop.f32.mrb[82].mxu0 }
 0xc49   :  { %2259 = vrot.lane.b32.xlu1 %v5154_v24, %s6592_s10  ;;  %v2136_v54 = vpop.f32.mrb[83].mxu0  ;;  %v2234_v24 = vpop.permute.xlu0 %2233 }
 0xc4a   :  { %2257 = vrot.lane.b32.xlu0 %v2136_v54, %s6592_s10  ;;  %v2237_v54 = vadd.f32 %v2206_v13, %v7302_v62  ;;  %v2242_v13 = vadd.f32 %v2216_v55, %v7316_v57  ;;  %v2246_v57 = vadd.f32 %v2224_v61, %v7332_v11  ;;  %v2250_v11 = vadd.f32 %v2232_v0, %v7344_v8 }
 0xc4b   :  { %v2495_v8 = vadd.f32 1e-06, %v7129_v32  ;;  %v2497_v0 = vadd.f32 1e-06, %v7135_v7 }
 0xc4c   :  { %v5157_v56 = vpop.f32.mrb[84].mxu0 }
 0xc4d   :  { %2263 = vrot.lane.b32.xlu1 %v5157_v56, %s6592_s10  ;;  %v2146_v33 = vpop.f32.mrb[85].mxu0  ;;  %6190 = vrcp.f32 %v2495_v8 }
 0xc4e   :  { %2261 = vrot.lane.b32.xlu0 %v2146_v33, %s6592_s10  ;;  %v2238_v33 = vadd.f32 %v2208_v58, %v7300_v17 }
 0xc50   :  { %v5160_v27 = vpop.f32.mrb[86].mxu0 }
 0xc51   :  { %2267 = vrot.lane.b32.xlu1 %v5160_v27, %s6592_s10  ;;  %v2156_v34 = vpop.f32.mrb[87].mxu0 }
 0xc52   :  { %2265 = vrot.lane.b32.xlu0 %v2156_v34, %s6592_s10 }
 0xc54   :  { %v5163_v35 = vpop.f32.mrb[88].mxu0 }
 0xc55   :  { %2271 = vrot.lane.b32.xlu1 %v5163_v35, %s6592_s10  ;;  %v2166_v36 = vpop.f32.mrb[89].mxu0 }
 0xc56   :  { %2269 = vrot.lane.b32.xlu0 %v2166_v36, %s6592_s10  ;;  %v2239_v36 = vadd.f32 %v2210_v21, %v7310_v3  ;;  %v2243_v3 = vadd.f32 %v2218_v12, %v7326_v40  ;;  %v2247_v40 = vadd.f32 %v2226_v23, %v7340_v18  ;;  %v2251_v18 = vadd.f32 %v2234_v24, %v7352_v49 }
 0xc57   :  { %v2496_v49 = vadd.f32 1e-06, %v7137_v46 }
 0xc58   :  { %v5166_v29 = vpop.f32.mrb[90].mxu0 }
 0xc59   :  { %2275 = vrot.lane.b32.xlu1 %v5166_v29, %s6592_s10  ;;  %v2176_v37 = vpop.f32.mrb[91].mxu0 }
 0xc5a   :  { %2273 = vrot.lane.b32.xlu0 %v2176_v37, %s6592_s10  ;;  %v2240_v37 = vadd.f32 %v2212_v59, %v7308_v30  ;;  %v2244_v30 = vadd.f32 %v2220_v19, %v7324_v48  ;;  %v2248_v48 = vadd.f32 %v2228_v4, %v7338_v51  ;;  %v2252_v51 = vadd.f32 %v2236_v60, %v7350_v44 }
 0xc5b   :  { %v2499_v44 = vadd.f32 1e-06, %v7141_v47  ;;  %v2501_v60 = vadd.f32 1e-06, %v7147_v50 }
 0xc5c   :  { %v5169_v38 = vpop.f32.mrb[92].mxu0 }
 0xc5d   :  { %2279 = vrot.lane.b32.xlu1 %v5169_v38, %s6592_s10  ;;  %v2186_v31 = vpop.f32.mrb[93].mxu0 }
 0xc5e   :  { %2277 = vrot.lane.b32.xlu0 %v2186_v31, %s6592_s10 }
 0xc60   :  { %v5172_v39 = vpop.f32.mrb[94].mxu0 }
 0xc61   :  { %2283 = vrot.lane.b32.xlu1 %v5172_v39, %s6592_s10  ;;  %v2196_v45 = vpop.f32.mrb[95].mxu0 }
 0xc62   :  { %2281 = vrot.lane.b32.xlu0 %v2196_v45, %s6592_s10  ;;  %v2241_v45 = vadd.f32 %v2214_v6, %v7318_v42  ;;  %v2245_v42 = vadd.f32 %v2222_v1, %v7334_v10  ;;  %v2249_v10 = vadd.f32 %v2230_v16, %v7346_v26  ;;  %v2494_v26 = vadd.f32 1e-06, %v7131_v9 }
 0xc63   :  { %v2498_v16 = vadd.f32 1e-06, %v7143_v14 }
 0xc64   :  { %6192 = vrcp.f32 %v2494_v26 }
 0xc65   :  { %6194 = vrcp.f32 %v2497_v0 }
 0xc66   :  { %6196 = vrcp.f32 %v2496_v49 }
 0xc67   :  { %6198 = vrcp.f32 %v2499_v44 }
 0xc68   :  { %6200 = vrcp.f32 %v2498_v16 }
 0xc69   :  { %6202 = vrcp.f32 %v2501_v60 }
 0xcb7   :  { %v2256_v56 = vpop.permute.xlu1 %2255 }
 0xcb8   :  { %v2254_v27 = vpop.permute.xlu0 %2253  ;;  %v2286_v35 = vadd.f32 %v2256_v56, %v2238_v33 }
 0xcb9   :  { %v2285_v34 = vadd.f32 %v2254_v27, %v2237_v54 }
 0xcbb   :  { %5205 = vmatprep.mubr.f32.mxu1 %v2285_v34  ;;  %v2260_v29 = vpop.permute.xlu1 %2259 }
 0xcbc   :  { %5206 = vmatmul.mubr.f32.vlgmr.msra.gmra.mrb[80].mxu1 %v2286_v35  ;;  %v2258_v38 = vpop.permute.xlu0 %2257  ;;  %v2288_v39 = vadd.f32 %v2260_v29, %v2240_v37 }
 0xcbd   :  { %v2287_v31 = vadd.f32 %v2258_v38, %v2239_v36 }
 0xcbf   :  { %5208 = vmatprep.mubr.f32.mxu1 %v2287_v31  ;;  %v2264_v62 = vpop.permute.xlu1 %2263 }
 0xcc0   :  { %5209 = vmatmul.mubr.f32.gmra.mrb[82].mxu1 %v2288_v39  ;;  %v2262_v17 = vpop.permute.xlu0 %2261  ;;  %v2290_v54 = vadd.f32 %v2264_v62, %v2242_v13  ;;  %v2500_v39 = vadd.f32 1e-06, %v7149_v63  ;;  %v6191_v13 = vpop.eup %6190 }
 0xcc1   :  { %v2289_v58 = vadd.f32 %v2262_v17, %v2241_v45 }
 0xcc2   :  { %6204 = vrcp.f32 %v2500_v39 }
 0xcc3   :  { %5211 = vmatprep.mubr.f32.mxu1 %v2289_v58  ;;  %v2268_v21 = vpop.permute.xlu1 %2267  ;;  %v6193_v58 = vpop.eup %6192 }
 0xcc4   :  { %5212 = vmatmul.mubr.f32.gmra.mrb[84].mxu1 %v2290_v54  ;;  %v2266_v59 = vpop.permute.xlu0 %2265  ;;  %v2292_v33 = vadd.f32 %v2268_v21, %v2244_v30 }
 0xcc5   :  { %v2291_v56 = vadd.f32 %v2266_v59, %v2243_v3  ;;  %v2503_v3 = vadd.f32 1e-06, %v7153_v20  ;;  %v2502_v59 = vadd.f32 1e-06, %v7155_v22 }
 0xcc7   :  { %5214 = vmatprep.mubr.f32.mxu1 %v2291_v56  ;;  %v2272_v6 = vpop.permute.xlu1 %2271  ;;  %6206 = vrcp.f32 %v2503_v3 }
 0xcc8   :  { %5215 = vmatmul.mubr.f32.gmra.mrb[86].mxu1 %v2292_v33  ;;  %v2270_v55 = vpop.permute.xlu0 %2269  ;;  %v2294_v34 = vadd.f32 %v2272_v6, %v2246_v57  ;;  %v6195_v33 = vpop.eup %6194  ;;  %6208 = vrcp.f32 %v2502_v59 }
 0xcc9   :  { %v2293_v27 = vadd.f32 %v2270_v55, %v2245_v42  ;;  %v6197_v6 = vpop.eup %6196  ;;  %v2505_v55 = vadd.f32 1e-06, %v7159_v5 }
 0xccb   :  { %5217 = vmatprep.mubr.f32.mxu1 %v2293_v27  ;;  %v2276_v12 = vpop.permute.xlu1 %2275  ;;  %6210 = vrcp.f32 %v2505_v55 }
 0xccc   :  { %5218 = vmatmul.mubr.f32.gmra.mrb[88].mxu1 %v2294_v34  ;;  %v2274_v19 = vpop.permute.xlu0 %2273  ;;  %v2296_v36 = vadd.f32 %v2276_v12, %v2248_v48  ;;  %v6199_v12 = vpop.eup %6198 }
 0xccd   :  { %v2295_v35 = vadd.f32 %v2274_v19, %v2247_v40 }
 0xccf   :  { %5220 = vmatprep.mubr.f32.mxu1 %v2295_v35  ;;  %v2280_v1 = vpop.permute.xlu1 %2279  ;;  %v6201_v35 = vpop.eup %6200 }
 0xcd0   :  { %5221 = vmatmul.mubr.f32.gmra.mrb[90].mxu1 %v2296_v36  ;;  %v2278_v61 = vpop.permute.xlu0 %2277  ;;  %v2298_v37 = vadd.f32 %v2280_v1, %v2250_v11 }
 0xcd1   :  { %v2297_v29 = vadd.f32 %v2278_v61, %v2249_v10  ;;  %v2507_v10 = vadd.f32 1e-06, %v7165_v2 }
 0xcd3   :  { %5223 = vmatprep.mubr.f32.mxu1 %v2297_v29  ;;  %v2284_v23 = vpop.permute.xlu1 %2283  ;;  %v6203_v29 = vpop.eup %6202 }
 0xcd4   :  { %5224 = vmatmul.mubr.f32.gmra.mrb[92].mxu1 %v2298_v37  ;;  %v2282_v4 = vpop.permute.xlu0 %2281  ;;  %v2300_v31 = vadd.f32 %v2284_v23, %v2252_v51  ;;  %v6205_v23 = vpop.eup %6204 }
 0xcd5   :  { %v2299_v38 = vadd.f32 %v2282_v4, %v2251_v18  ;;  %v2509_v4 = vadd.f32 1e-06, %v7171_v43  ;;  %v6207_v26 = vpop.eup %6206 }
 0xcd6   :  { %v6209_v44 = vpop.eup %6208 }
 0xcd7   :  { %5226 = vmatprep.mubr.f32.mxu1 %v2299_v38 }
 0xcd8   :  { %5227 = vmatmul.mubr.f32.gmra.mrb[94].mxu1 %v2300_v31 }
 0xcd9   :  { %5317 = vmatprep.mubr.f32.mxu1 %v7402_v28 }
 0xd8f   :  { %v5207_v24 = vpop.f32.mrb[80].mxu1 }
 0xd90   :  { %v2463_v45 = vmul.f32 %v5207_v24, %v7129_v32  ;;  %v2383_v62 = vpop.f32.mrb[81].mxu1 }
 0xd91   :  { %v2462_v17 = vmul.f32 %v2383_v62, %v7131_v9 }
 0xd92   :  { %2479 = vst [vmem:[#allocation17 + $0x8] sm:$0xff] %v2463_v45  ;;  %v7448_v54 = vmul.f32 %v6191_v13, %v2463_v45  ;;  %v6211_v45 = vpop.eup %6210 }
 0xd93   :  { %2478 = vst [vmem:[#allocation17] sm:$0xff] %v2462_v17  ;;  %v7451_v21 = vmul.f32 %v6193_v58, %v2462_v17  ;;  %v5210_v30 = vpop.f32.mrb[82].mxu1 }
 0xd94   :  { %v2465_v32 = vmul.f32 %v5210_v30, %v7135_v7  ;;  %v2393_v56 = vpop.f32.mrb[83].mxu1  ;;  %v2504_v7 = vadd.f32 1e-06, %v7161_v15 }
 0xd95   :  { %v2464_v9 = vmul.f32 %v2393_v56, %v7137_v46  ;;  %v5949_v42 = vpack.c.bf16 %v7448_v54, %v7451_v21 }
 0xd96   :  { %2481 = vst [vmem:[#allocation17 + $0x18] sm:$0xff] %v2465_v32  ;;  %v7458_v57 = vmul.f32 %v6195_v33, %v2465_v32  ;;  %6212 = vrcp.f32 %v2504_v7 }
 0xd97   :  { %2480 = vst [vmem:[#allocation17 + $0x10] sm:$0xff] %v2464_v9  ;;  %v7461_v27 = vmul.f32 %v6197_v6, %v2464_v9  ;;  %v5213_v34 = vpop.f32.mrb[84].mxu1  ;;  %5950 = vmatprep.subr.bf16.mxu0 %v5949_v42  ;;  %6214 = vrcp.f32 %v2507_v10  ;;  %v7533_v10 = vld [vmem:[#allocation2 + $0x30] sm:$0xff] }
 0xd98   :  { %v2467_v46 = vmul.f32 %v5213_v34, %v7141_v47  ;;  %v2403_v40 = vpop.f32.mrb[85].mxu1  ;;  %5952 = vmatpush3.bf16.msra.mxu0 %v5949_v42  ;;  %v2506_v47 = vadd.f32 1e-06, %v7167_v41 }
 0xd99   :  { %v2466_v48 = vmul.f32 %v2403_v40, %v7143_v14  ;;  %v5953_v19 = vpack.c.bf16 %v7458_v57, %v7461_v27 }
 0xd9a   :  { %2483 = vst [vmem:[#allocation17 + $0x28] sm:$0xff] %v2467_v46  ;;  %v7468_v36 = vmul.f32 %v6199_v12, %v2467_v46  ;;  %6216 = vrcp.f32 %v2506_v47  ;;  %v7518_v12 = vld [vmem:[#allocation2 + $0x8] sm:$0xff]  ;;  %v7539_v47 = vld [vmem:[#allocation2 + $0x40] sm:$0xff] }
 0xd9b   :  { %2482 = vst [vmem:[#allocation17 + $0x20] sm:$0xff] %v2466_v48  ;;  %v7471_v1 = vmul.f32 %v6201_v35, %v2466_v48  ;;  %v5216_v11 = vpop.f32.mrb[86].mxu1  ;;  %5954 = vmatprep.subr.bf16.mxu0 %v5953_v19  ;;  %6218 = vrcp.f32 %v2509_v4  ;;  %v7524_v48 = vld [vmem:[#allocation2 + $0x18] sm:$0xff]  ;;  %v7530_v35 = vld [vmem:[#allocation2 + $0x28] sm:$0xff] }
 0xd9c   :  { %v2469_v14 = vmul.f32 %v5216_v11, %v7147_v50  ;;  %v2413_v61 = vpop.f32.mrb[87].mxu1  ;;  %5956 = vmatpush3.bf16.msra.mxu0 %v5953_v19  ;;  %v2508_v50 = vadd.f32 1e-06, %v7173_v25  ;;  %v7527_v19 = vld [vmem:[#allocation2 + $0x20] sm:$0xff]  ;;  %v7536_v11 = vld [vmem:[#allocation2 + $0x38] sm:$0xff] }
 0xd9d   :  { %v2468_v37 = vmul.f32 %v2413_v61, %v7149_v63  ;;  %v5957_v18 = vpack.c.bf16 %v7468_v36, %v7471_v1  ;;  %v7545_v61 = vld [vmem:[#allocation2 + $0x50] sm:$0xff]  ;;  %v7560_v4 = vld [vmem:[#allocation2 + $0x78] sm:$0xff] }
 0xd9e   :  { %2485 = vst [vmem:[#allocation17 + $0x38] sm:$0xff] %v2469_v14  ;;  %v7478_v51 = vmul.f32 %v6203_v29, %v2469_v14  ;;  %6220 = vrcp.f32 %v2508_v50  ;;  %v7542_v14 = vld [vmem:[#allocation2 + $0x48] sm:$0xff]  ;;  %v7548_v29 = vld [vmem:[#allocation2 + $0x58] sm:$0xff] }
 0xd9f   :  { %2484 = vst [vmem:[#allocation17 + $0x30] sm:$0xff] %v2468_v37  ;;  %v7481_v38 = vmul.f32 %v6205_v23, %v2468_v37  ;;  %v5219_v31 = vpop.f32.mrb[88].mxu1  ;;  %5958 = vmatprep.subr.bf16.mxu0 %v5957_v18  ;;  %v7551_v37 = vld [vmem:[#allocation2 + $0x60] sm:$0xff]  ;;  %v7557_v23 = vld [vmem:[#allocation2 + $0x70] sm:$0xff] }
 0xda0   :  { %v2471_v63 = vmul.f32 %v5219_v31, %v7153_v20  ;;  %v2423_v8 = vpop.f32.mrb[89].mxu1  ;;  %5960 = vmatpush3.bf16.msra.mxu0 %v5957_v18  ;;  %v6213_v13 = vpop.eup %6212  ;;  %v7554_v18 = vld [vmem:[#allocation2 + $0x68] sm:$0xff] }
 0xda1   :  { %v2470_v0 = vmul.f32 %v2423_v8, %v7155_v22  ;;  %v5961_v49 = vpack.c.bf16 %v7478_v51, %v7481_v38  ;;  %v6215_v59 = vpop.eup %6214 }
 0xda2   :  { %2487 = vst [vmem:[#allocation17 + $0x48] sm:$0xff] %v2471_v63  ;;  %v7488_v16 = vmul.f32 %v6207_v26, %v2471_v63 }
 0xda3   :  { %2486 = vst [vmem:[#allocation17 + $0x40] sm:$0xff] %v2470_v0  ;;  %v7490_v60 = vmul.f32 %v6209_v44, %v2470_v0  ;;  %v5222_v24 = vpop.f32.mrb[90].mxu1  ;;  %5962 = vmatprep.subr.bf16.mxu0 %v5961_v49 }
 0xda4   :  { %v2473_v20 = vmul.f32 %v5222_v24, %v7159_v5  ;;  %v2433_v39 = vpop.f32.mrb[91].mxu1  ;;  %5964 = vmatpush3.bf16.msra.mxu0 %v5961_v49  ;;  %v6217_v56 = vpop.eup %6216 }
 0xda5   :  { %v2472_v22 = vmul.f32 %v2433_v39, %v7161_v15  ;;  %v5965_v62 = vpack.c.bf16 %v7488_v16, %v7490_v60  ;;  %v6219_v55 = vpop.eup %6218 }
 0xda6   :  { %2489 = vst [vmem:[#allocation17 + $0x58] sm:$0xff] %v2473_v20  ;;  %v7496_v17 = vmul.f32 %v6211_v45, %v2473_v20 }
 0xda7   :  { %2488 = vst [vmem:[#allocation17 + $0x50] sm:$0xff] %v2472_v22  ;;  %v7498_v58 = vmul.f32 %v6213_v13, %v2472_v22  ;;  %v5225_v3 = vpop.f32.mrb[92].mxu1  ;;  %5966 = vmatprep.subr.bf16.mxu0 %v5965_v62 }
 0xda8   :  { %v2475_v30 = vmul.f32 %v5225_v3, %v7165_v2  ;;  %v2443_v5 = vpop.f32.mrb[93].mxu1  ;;  %5968 = vmatpush3.bf16.msra.mxu0 %v5965_v62  ;;  %v6221_v7 = vpop.eup %6220 }
 0xda9   :  { %v2474_v32 = vmul.f32 %v2443_v5, %v7167_v41  ;;  %v5969_v15 = vpack.c.bf16 %v7496_v17, %v7498_v58 }
 0xdaa   :  { %2491 = vst [vmem:[#allocation17 + $0x68] sm:$0xff] %v2475_v30  ;;  %v7504_v33 = vmul.f32 %v6215_v59, %v2475_v30 }
 0xdab   :  { %2490 = vst [vmem:[#allocation17 + $0x60] sm:$0xff] %v2474_v32  ;;  %v7506_v9 = vmul.f32 %v6217_v56, %v2474_v32  ;;  %v5228_v42 = vpop.f32.mrb[94].mxu1  ;;  %5970 = vmatprep.subr.bf16.mxu0 %v5969_v15 }
 0xdac   :  { %v2477_v6 = vmul.f32 %v5228_v42, %v7171_v43  ;;  %v2453_v2 = vpop.f32.mrb[95].mxu1  ;;  %5972 = vmatpush3.bf16.msra.mxu0 %v5969_v15 }
 0xdad   :  { %v2476_v34 = vmul.f32 %v2453_v2, %v7173_v25  ;;  %v5973_v41 = vpack.c.bf16 %v7504_v33, %v7506_v9  ;;  %v7521_v25 = vld [vmem:[#allocation2 + $0x10] sm:$0xff]  ;;  %v2928_v2 = vld [vmem:[#allocation11] sm:$0xff] }
 0xdae   :  { %2493 = vst [vmem:[#allocation17 + $0x78] sm:$0xff] %v2477_v6  ;;  %v7512_v46 = vmul.f32 %v6219_v55, %v2477_v6  ;;  %v2929_v55 = vld [vmem:[#allocation11 + $0x8] sm:$0xff] }
 0xdaf   :  { %2492 = vst [vmem:[#allocation17 + $0x70] sm:$0xff] %v2476_v34  ;;  %v7514_v40 = vmul.f32 %v6221_v7, %v2476_v34  ;;  %5974 = vmatprep.subr.bf16.mxu0 %v5973_v41  ;;  %v2930_v34 = vld [vmem:[#allocation11 + $0x10] sm:$0xff]  ;;  %v2931_v7 = vld [vmem:[#allocation11 + $0x18] sm:$0xff] }
 0xdb0   :  { %5976 = vmatpush3.bf16.msra.mxu0 %v5973_v41  ;;  %v6013_v41 = vpack.c.bf16 %v2929_v55, %v2928_v2 }
 0xdb1   :  { %v5977_v43 = vpack.c.bf16 %v7512_v46, %v7514_v40 }
 0xdb3   :  { %5978 = vmatprep.subr.bf16.mxu0 %v5977_v43 }
 0xdb4   :  { %5980 = vmatpush3.bf16.msra.mxu0 %v5977_v43  ;;  %v6017_v43 = vpack.c.bf16 %v2931_v7, %v2930_v34 }
 0xdb5   :  { %6014 = vmatprep.subr.bf16.mxu0 %v6013_v41 }
 0xdb7   :  { %5262 = vmatmul.mubr.f32.vlgmr.msra.gmra.mrb[96].mxu0 %v7518_v12 }
 0xdb8   :  { %5264 = vmatprep.mubr.f32.mxu0 %v7521_v25  ;;  %6016 = vmatpush3.bf16.msra.mxu0 %v6013_v41 }
 0xdb9   :  { %6018 = vmatprep.subr.bf16.mxu0 %v6017_v43 }
 0xdbb   :  { %5265 = vmatmul.mubr.f32.gmra.mrb[98].mxu0 %v7524_v48 }
 0xdbc   :  { %5267 = vmatprep.mubr.f32.mxu0 %v7527_v19  ;;  %6020 = vmatpush3.bf16.msra.mxu0 %v6017_v43 }
 0xdbf   :  { %5268 = vmatmul.mubr.f32.gmra.mrb[100].mxu0 %v7530_v35 }
 0xdc0   :  { %5270 = vmatprep.mubr.f32.mxu0 %v7533_v10 }
 0xdc3   :  { %5271 = vmatmul.mubr.f32.gmra.mrb[102].mxu0 %v7536_v11 }
 0xdc4   :  { %5273 = vmatprep.mubr.f32.mxu0 %v7539_v47 }
 0xdc7   :  { %5274 = vmatmul.mubr.f32.gmra.mrb[104].mxu0 %v7542_v14 }
 0xdc8   :  { %5276 = vmatprep.mubr.f32.mxu0 %v7545_v61 }
 0xdcb   :  { %5277 = vmatmul.mubr.f32.gmra.mrb[106].mxu0 %v7548_v29 }
 0xdcc   :  { %5279 = vmatprep.mubr.f32.mxu0 %v7551_v37 }
 0xdcf   :  { %5280 = vmatmul.mubr.f32.gmra.mrb[108].mxu0 %v7554_v18 }
 0xdd0   :  { %5282 = vmatprep.mubr.f32.mxu0 %v7557_v23 }
 0xdd3   :  { %5283 = vmatmul.mubr.f32.gmra.mrb[110].mxu0 %v7560_v4 }
 0xe8a   :  { %v5263_v31 = vpop.f32.mrb[96].mxu0 }
 0xe8b   :  { %2834 = vrot.lane.b32.xlu1 %v5263_v31, %s6593_s24  ;;  %v2608_v50 = vpop.f32.mrb[97].mxu0 }
 0xe8c   :  { %v5981_v63 = vpack.c.bf16 %v5263_v31, %v2608_v50  ;;  %2832 = vrot.lane.b32.xlu0 %v2608_v50, %s6593_s24  ;;  %v2932_v31 = vld [vmem:[#allocation11 + $0x20] sm:$0xff]  ;;  %v2933_v50 = vld [vmem:[#allocation11 + $0x28] sm:$0xff] }
 0xe8e   :  { %v5266_v8 = vpop.f32.mrb[98].mxu0  ;;  %5982 = vmatprep.subr.bf16.mxu1 %v5981_v63 }
 0xe8f   :  { %5984 = vmatpush3.bf16.msra.mxu1 %v5981_v63  ;;  %2838 = vrot.lane.b32.xlu1 %v5266_v8, %s6593_s24  ;;  %v2618_v26 = vpop.f32.mrb[99].mxu0  ;;  %v6021_v63 = vpack.c.bf16 %v2933_v50, %v2932_v31 }
 0xe90   :  { %v5985_v0 = vpack.c.bf16 %v5266_v8, %v2618_v26  ;;  %2836 = vrot.lane.b32.xlu0 %v2618_v26, %s6593_s24  ;;  %v2934_v8 = vld [vmem:[#allocation11 + $0x30] sm:$0xff]  ;;  %v2935_v26 = vld [vmem:[#allocation11 + $0x38] sm:$0xff] }
 0xe91   :  { %6022 = vmatprep.subr.bf16.mxu0 %v6021_v63 }
 0xe92   :  { %v5269_v49 = vpop.f32.mrb[100].mxu0  ;;  %5986 = vmatprep.subr.bf16.mxu1 %v5985_v0  ;;  %6024 = vmatpush3.bf16.msra.mxu0 %v6021_v63 }
 0xe93   :  { %5988 = vmatpush3.bf16.msra.mxu1 %v5985_v0  ;;  %2842 = vrot.lane.b32.xlu1 %v5269_v49, %s6593_s24  ;;  %v2628_v44 = vpop.f32.mrb[101].mxu0  ;;  %v6025_v0 = vpack.c.bf16 %v2935_v26, %v2934_v8 }
 0xe94   :  { %v5989_v24 = vpack.c.bf16 %v5269_v49, %v2628_v44  ;;  %2840 = vrot.lane.b32.xlu0 %v2628_v44, %s6593_s24  ;;  %v2936_v49 = vld [vmem:[#allocation11 + $0x40] sm:$0xff]  ;;  %v2937_v44 = vld [vmem:[#allocation11 + $0x48] sm:$0xff] }
 0xe95   :  { %6026 = vmatprep.subr.bf16.mxu0 %v6025_v0 }
 0xe96   :  { %v5272_v20 = vpop.f32.mrb[102].mxu0  ;;  %5990 = vmatprep.subr.bf16.mxu1 %v5989_v24  ;;  %6028 = vmatpush3.bf16.msra.mxu0 %v6025_v0 }
 0xe97   :  { %5992 = vmatpush3.bf16.msra.mxu1 %v5989_v24  ;;  %2846 = vrot.lane.b32.xlu1 %v5272_v20, %s6593_s24  ;;  %v2638_v39 = vpop.f32.mrb[103].mxu0  ;;  %v6029_v24 = vpack.c.bf16 %v2937_v44, %v2936_v49 }
 0xe98   :  { %v5993_v45 = vpack.c.bf16 %v5272_v20, %v2638_v39  ;;  %2844 = vrot.lane.b32.xlu0 %v2638_v39, %s6593_s24  ;;  %v2938_v20 = vld [vmem:[#allocation11 + $0x50] sm:$0xff]  ;;  %v2939_v39 = vld [vmem:[#allocation11 + $0x58] sm:$0xff] }
 0xe99   :  { %6030 = vmatprep.subr.bf16.mxu0 %v6029_v24 }
 0xe9a   :  { %v5275_v22 = vpop.f32.mrb[104].mxu0  ;;  %5994 = vmatprep.subr.bf16.mxu1 %v5993_v45  ;;  %6032 = vmatpush3.bf16.msra.mxu0 %v6029_v24 }
 0xe9b   :  { %5996 = vmatpush3.bf16.msra.mxu1 %v5993_v45  ;;  %2850 = vrot.lane.b32.xlu1 %v5275_v22, %s6593_s24  ;;  %v2648_v62 = vpop.f32.mrb[105].mxu0  ;;  %v6033_v45 = vpack.c.bf16 %v2939_v39, %v2938_v20 }
 0xe9c   :  { %v5997_v13 = vpack.c.bf16 %v5275_v22, %v2648_v62  ;;  %2848 = vrot.lane.b32.xlu0 %v2648_v62, %s6593_s24  ;;  %v2940_v22 = vld [vmem:[#allocation11 + $0x60] sm:$0xff]  ;;  %v2941_v62 = vld [vmem:[#allocation11 + $0x68] sm:$0xff] }
 0xe9d   :  { %6034 = vmatprep.subr.bf16.mxu0 %v6033_v45 }
 0xe9e   :  { %v5278_v3 = vpop.f32.mrb[106].mxu0  ;;  %5998 = vmatprep.subr.bf16.mxu1 %v5997_v13  ;;  %6036 = vmatpush3.bf16.msra.mxu0 %v6033_v45 }
 0xe9f   :  { %6000 = vmatpush3.bf16.msra.mxu1 %v5997_v13  ;;  %2854 = vrot.lane.b32.xlu1 %v5278_v3, %s6593_s24  ;;  %v2658_v30 = vpop.f32.mrb[107].mxu0  ;;  %v6037_v13 = vpack.c.bf16 %v2941_v62, %v2940_v22 }
 0xea0   :  { %v6001_v5 = vpack.c.bf16 %v5278_v3, %v2658_v30  ;;  %2852 = vrot.lane.b32.xlu0 %v2658_v30, %s6593_s24  ;;  %v3154_v3 = vadd.f32 %v7518_v12, %v7402_v28 }
 0xea1   :  { %6038 = vmatprep.subr.bf16.mxu0 %v6037_v13 }
 0xea2   :  { %v5281_v59 = vpop.f32.mrb[108].mxu0  ;;  %6002 = vmatprep.subr.bf16.mxu1 %v6001_v5  ;;  %6040 = vmatpush3.bf16.msra.mxu0 %v6037_v13  ;;  %v3155_v30 = vadd.f32 %v7521_v25, %v3154_v3 }
 0xea3   :  { %6004 = vmatpush3.bf16.msra.mxu1 %v6001_v5  ;;  %2858 = vrot.lane.b32.xlu1 %v5281_v59, %s6593_s24  ;;  %v2668_v32 = vpop.f32.mrb[109].mxu0 }
 0xea4   :  { %v6005_v15 = vpack.c.bf16 %v5281_v59, %v2668_v32  ;;  %2856 = vrot.lane.b32.xlu0 %v2668_v32, %s6593_s24  ;;  %v3156_v5 = vadd.f32 %v7524_v48, %v3155_v30  ;;  %v2942_v59 = vld [vmem:[#allocation11 + $0x70] sm:$0xff]  ;;  %v2943_v32 = vld [vmem:[#allocation11 + $0x78] sm:$0xff] }
 0xea6   :  { %v5284_v56 = vpop.f32.mrb[110].mxu0  ;;  %6006 = vmatprep.subr.bf16.mxu1 %v6005_v15 }
 0xea7   :  { %6008 = vmatpush3.bf16.msra.mxu1 %v6005_v15  ;;  %2862 = vrot.lane.b32.xlu1 %v5284_v56, %s6593_s24  ;;  %v2678_v42 = vpop.f32.mrb[111].mxu0  ;;  %v6041_v15 = vpack.c.bf16 %v2943_v32, %v2942_v59 }
 0xea8   :  { %v6009_v6 = vpack.c.bf16 %v5284_v56, %v2678_v42  ;;  %2860 = vrot.lane.b32.xlu0 %v2678_v42, %s6593_s24  ;;  %v3157_v56 = vadd.f32 %v7527_v19, %v3156_v5 }
 0xea9   :  { %6042 = vmatprep.subr.bf16.mxu0 %v6041_v15 }
 0xeaa   :  { %6010 = vmatprep.subr.bf16.mxu1 %v6009_v6  ;;  %6044 = vmatpush3.bf16.msra.mxu0 %v6041_v15  ;;  %v3158_v42 = vadd.f32 %v7530_v35, %v3157_v56 }
 0xeab   :  { %6012 = vmatpush3.bf16.msra.mxu1 %v6009_v6 }
 0xeac   :  { %v3159_v6 = vadd.f32 %v7533_v10, %v3158_v42 }
 0xeae   :  { %5318 = vmatmul.mubr.f32.vlgmr.msra.gmra.mrb[96].mxu1 %v7518_v12  ;;  %v3160_v55 = vadd.f32 %v7536_v11, %v3159_v6 }
 0xeaf   :  { %5320 = vmatprep.mubr.f32.mxu1 %v7521_v25 }
 0xeb0   :  { %v3161_v7 = vadd.f32 %v7539_v47, %v3160_v55 }
 0xeb2   :  { %5321 = vmatmul.mubr.f32.gmra.mrb[98].mxu1 %v7524_v48  ;;  %v3162_v50 = vadd.f32 %v7542_v14, %v3161_v7 }
 0xeb3   :  { %5323 = vmatprep.mubr.f32.mxu1 %v7527_v19 }
 0xeb4   :  { %v3163_v26 = vadd.f32 %v7545_v61, %v3162_v50 }
 0xeb6   :  { %5324 = vmatmul.mubr.f32.gmra.mrb[100].mxu1 %v7530_v35  ;;  %v3164_v44 = vadd.f32 %v7548_v29, %v3163_v26 }
 0xeb7   :  { %5326 = vmatprep.mubr.f32.mxu1 %v7533_v10 }
 0xeb8   :  { %v3165_v39 = vadd.f32 %v7551_v37, %v3164_v44 }
 0xeba   :  { %5327 = vmatmul.mubr.f32.gmra.mrb[102].mxu1 %v7536_v11  ;;  %v3166_v62 = vadd.f32 %v7554_v18, %v3165_v39 }
 0xebb   :  { %5329 = vmatprep.mubr.f32.mxu1 %v7539_v47 }
 0xebc   :  { %v3167_v30 = vadd.f32 %v7557_v23, %v3166_v62 }
 0xebe   :  { %5330 = vmatmul.mubr.f32.gmra.mrb[104].mxu1 %v7542_v14  ;;  %v3168_v59 = vadd.f32 %v7560_v4, %v3167_v30 }
 0xebf   :  { %5332 = vmatprep.mubr.f32.mxu1 %v7545_v61 }
 0xec0   :  { %v3169_v32 = vrot.slane %v3168_v59, 4 }
 0xec2   :  { %5333 = vmatmul.mubr.f32.gmra.mrb[106].mxu1 %v7548_v29  ;;  %v3170_v15 = vadd.f32 %v3169_v32, %v3168_v59 }
 0xec3   :  { %5335 = vmatprep.mubr.f32.mxu1 %v7551_v37 }
 0xec4   :  { %v3171_v56 = vrot.slane %v3170_v15, 2 }
 0xec6   :  { %5336 = vmatmul.mubr.f32.gmra.mrb[108].mxu1 %v7554_v18  ;;  %v3172_v42 = vadd.f32 %v3171_v56, %v3170_v15 }
 0xec7   :  { %5338 = vmatprep.mubr.f32.mxu1 %v7557_v23 }
 0xec8   :  { %v3173_v6 = vrot.slane %v3172_v42, 1 }
 0xeca   :  { %5339 = vmatmul.mubr.f32.gmra.mrb[110].mxu1 %v7560_v4 }
 0xecb   :  { %5429 = vmatprep.mubr.f32.mxu1 %v7402_v28 }
 0xf81   :  { %v5319_v2 = vpop.f32.mrb[96].mxu1 }
 0xf82   :  { %2882 = vrot.lane.b32.xlu1 %v5319_v2, %s6594_s4  ;;  %v2753_v34 = vpop.f32.mrb[97].mxu1  ;;  %v7627_v2 = vadd.f32 %v3173_v6, %v3172_v42 }
 0xf83   :  { %2880 = vrot.lane.b32.xlu0 %v2753_v34, %s6594_s4 }
 0xf84   :  { %v3215_v55 = vmul.f32 %v7402_v28, %v7627_v2  ;;  %v3216_v34 = vmul.f32 %v7518_v12, %v7627_v2  ;;  %v3217_v7 = vmul.f32 %v7521_v25, %v7627_v2 }
 0xf85   :  { %v5322_v41 = vpop.f32.mrb[98].mxu1 }
 0xf86   :  { %2886 = vrot.lane.b32.xlu1 %v5322_v41, %s6594_s4  ;;  %v2763_v43 = vpop.f32.mrb[99].mxu1  ;;  %v2835_v41 = vpop.permute.xlu1 %2834 }
 0xf87   :  { %2884 = vrot.lane.b32.xlu0 %v2763_v43, %s6594_s4  ;;  %v2833_v43 = vpop.permute.xlu0 %2832 }
 0xf89   :  { %v5325_v31 = vpop.f32.mrb[100].mxu1 }
 0xf8a   :  { %2890 = vrot.lane.b32.xlu1 %v5325_v31, %s6594_s4  ;;  %v2773_v63 = vpop.f32.mrb[101].mxu1  ;;  %v2839_v31 = vpop.permute.xlu1 %2838 }
 0xf8b   :  { %2888 = vrot.lane.b32.xlu0 %v2773_v63, %s6594_s4  ;;  %v2837_v50 = vpop.permute.xlu0 %2836 }
 0xf8c   :  { %v2866_v32 = vadd.f32 %v2837_v50, %v7461_v27 }
 0xf8d   :  { %v5328_v8 = vpop.f32.mrb[102].mxu1 }
 0xf8e   :  { %2894 = vrot.lane.b32.xlu1 %v5328_v8, %s6594_s4  ;;  %v2783_v0 = vpop.f32.mrb[103].mxu1  ;;  %v2843_v63 = vpop.permute.xlu1 %2842 }
 0xf8f   :  { %2892 = vrot.lane.b32.xlu0 %v2783_v0, %s6594_s4  ;;  %v2841_v8 = vpop.permute.xlu0 %2840  ;;  %v2869_v27 = vadd.f32 %v2843_v63, %v7468_v36 }
 0xf90   :  { %v2868_v6 = vadd.f32 %v2841_v8, %v7471_v1 }
 0xf91   :  { %v5331_v49 = vpop.f32.mrb[104].mxu1 }
 0xf92   :  { %2898 = vrot.lane.b32.xlu1 %v5331_v49, %s6594_s4  ;;  %v2793_v24 = vpop.f32.mrb[105].mxu1  ;;  %v7650_v26 = vpop.permute.xlu1 %2846 }
 0xf93   :  { %2896 = vrot.lane.b32.xlu0 %v2793_v24, %s6594_s4  ;;  %v2845_v0 = vpop.permute.xlu0 %2844 }
 0xf95   :  { %v5334_v20 = vpop.f32.mrb[106].mxu1 }
 0xf96   :  { %2902 = vrot.lane.b32.xlu1 %v5334_v20, %s6594_s4  ;;  %v2803_v45 = vpop.f32.mrb[107].mxu1  ;;  %v7655_v49 = vpop.permute.xlu1 %2850 }
 0xf97   :  { %2900 = vrot.lane.b32.xlu0 %v2803_v45, %s6594_s4  ;;  %v2849_v44 = vpop.permute.xlu0 %2848 }
 0xf99   :  { %v5337_v22 = vpop.f32.mrb[108].mxu1 }
 0xf9a   :  { %2906 = vrot.lane.b32.xlu1 %v5337_v22, %s6594_s4  ;;  %v2813_v13 = vpop.f32.mrb[109].mxu1  ;;  %v7663_v24 = vpop.permute.xlu1 %2854 }
 0xf9b   :  { %2904 = vrot.lane.b32.xlu0 %v2813_v13, %s6594_s4  ;;  %v2853_v20 = vpop.permute.xlu0 %2852  ;;  %v2864_v13 = vadd.f32 %v2833_v43, %v7451_v21  ;;  %v2871_v43 = vadd.f32 %v7650_v26, %v7478_v51  ;;  %v2875_v51 = vadd.f32 %v7663_v24, %v7496_v17 }
 0xf9c   :  { %v2874_v63 = vadd.f32 %v2853_v20, %v7498_v58  ;;  %v6286_v20 = vld [vmem:[#allocation2] sm:$0xff] }
 0xf9d   :  { %v5340_v3 = vpop.f32.mrb[110].mxu1 }
 0xf9e   :  { %2910 = vrot.lane.b32.xlu1 %v5340_v3, %s6594_s4  ;;  %v2823_v5 = vpop.f32.mrb[111].mxu1  ;;  %v7668_v39 = vpop.permute.xlu1 %2858  ;;  %v2865_v3 = vadd.f32 %v2835_v41, %v7448_v54  ;;  %v3230_v54 = vmul.f32 %v7560_v4, %v7627_v2  ;;  %v2870_v41 = vadd.f32 %v2845_v0, %v7481_v38 }
 0xf9f   :  { %2908 = vrot.lane.b32.xlu0 %v2823_v5, %s6594_s4  ;;  %v2857_v45 = vpop.permute.xlu0 %2856 }
 0xfa0   :  { %v2876_v26 = vadd.f32 %v2857_v45, %v7506_v9 }
 0xfa2   :  { %v7676_v22 = vpop.permute.xlu1 %2862 }
 0xfa3   :  { %v7678_v62 = vpop.permute.xlu0 %2860 }
 0xfbe   :  { %3122 = vadd.xlane.f32.xlu0 %v7402_v28  ;;  %v3218_v28 = vmul.f32 %v7524_v48, %v7627_v2 }
 0xfc2   :  { %3231 = vadd.xlane.f32.xlu0 %v3215_v55  ;;  %3124 = vadd.xlane.f32.xlu1 %v7518_v12  ;;  %v3219_v12 = vmul.f32 %v7527_v19, %v7627_v2 }
 0xfc6   :  { %3233 = vadd.xlane.f32.xlu0 %v3216_v34  ;;  %3126 = vadd.xlane.f32.xlu1 %v7521_v25  ;;  %v3220_v25 = vmul.f32 %v7530_v35, %v7627_v2 }
 0xfca   :  { %3128 = vadd.xlane.f32.xlu0 %v7524_v48  ;;  %3235 = vadd.xlane.f32.xlu1 %v3217_v7  ;;  %v3221_v48 = vmul.f32 %v7533_v10, %v7627_v2 }
 0xfce   :  { %3237 = vadd.xlane.f32.xlu0 %v3218_v28  ;;  %3130 = vadd.xlane.f32.xlu1 %v7527_v19  ;;  %v3222_v19 = vmul.f32 %v7536_v11, %v7627_v2  ;;  %v2872_v28 = vadd.f32 %v2849_v44, %v7490_v60  ;;  %v2879_v44 = vadd.f32 %v7676_v22, %v7512_v46 }
 0xfd2   :  { %3132 = vadd.xlane.f32.xlu0 %v7530_v35  ;;  %3239 = vadd.xlane.f32.xlu1 %v3219_v12  ;;  %v3223_v35 = vmul.f32 %v7539_v47, %v7627_v2 }
 0xfd6   :  { %3241 = vadd.xlane.f32.xlu0 %v3220_v25  ;;  %3134 = vadd.xlane.f32.xlu1 %v7533_v10  ;;  %v3224_v10 = vmul.f32 %v7542_v14, %v7627_v2 }
 0xfda   :  { %3136 = vadd.xlane.f32.xlu0 %v7536_v11  ;;  %3243 = vadd.xlane.f32.xlu1 %v3221_v48  ;;  %v3225_v11 = vmul.f32 %v7545_v61, %v7627_v2 }
 0xfde   :  { %3245 = vadd.xlane.f32.xlu0 %v3222_v19  ;;  %3138 = vadd.xlane.f32.xlu1 %v7539_v47  ;;  %v3226_v47 = vmul.f32 %v7548_v29, %v7627_v2 }
 0xfe2   :  { %3140 = vadd.xlane.f32.xlu0 %v7542_v14  ;;  %3247 = vadd.xlane.f32.xlu1 %v3223_v35  ;;  %v3227_v14 = vmul.f32 %v7551_v37, %v7627_v2  ;;  %v2878_v35 = vadd.f32 %v7678_v62, %v7514_v40 }
 0xfe6   :  { %3249 = vadd.xlane.f32.xlu0 %v3224_v10  ;;  %3142 = vadd.xlane.f32.xlu1 %v7545_v61  ;;  %v3228_v61 = vmul.f32 %v7554_v18, %v7627_v2 }
 0xfea   :  { %3144 = vadd.xlane.f32.xlu0 %v7548_v29  ;;  %3251 = vadd.xlane.f32.xlu1 %v3225_v11 }
 0xfee   :  { %3253 = vadd.xlane.f32.xlu0 %v3226_v47  ;;  %3146 = vadd.xlane.f32.xlu1 %v7551_v37  ;;  %v3229_v37 = vmul.f32 %v7557_v23, %v7627_v2 }
 0xff2   :  { %3148 = vadd.xlane.f32.xlu0 %v7554_v18  ;;  %3255 = vadd.xlane.f32.xlu1 %v3227_v14  ;;  %v2867_v18 = vadd.f32 %v2839_v31, %v7458_v57  ;;  %v2873_v31 = vadd.f32 %v7655_v49, %v7488_v16  ;;  %v2877_v16 = vadd.f32 %v7668_v39, %v7504_v33 }
 0xff4   :  { %v2883_v29 = vpop.permute.xlu1 %2882 }
 0xff5   :  { %v2881_v30 = vpop.permute.xlu0 %2880  ;;  %v2913_v59 = vadd.f32 %v2883_v29, %v2865_v3 }
 0xff6   :  { %v2912_v5 = vadd.f32 %v2881_v30, %v2864_v13  ;;  %3257 = vadd.xlane.f32.xlu0 %v3228_v61  ;;  %3150 = vadd.xlane.f32.xlu1 %v7557_v23 }
 0xff8   :  { %5373 = vmatprep.mubr.f32.mxu0 %v2912_v5  ;;  %v2887_v15 = vpop.permute.xlu1 %2886 }
 0xff9   :  { %5374 = vmatmul.mubr.f32.vlgmr.msra.gmra.mrb[112].mxu0 %v2913_v59  ;;  %v2885_v21 = vpop.permute.xlu0 %2884  ;;  %v2915_v42 = vadd.f32 %v2887_v15, %v2867_v18 }
 0xffa   :  { %v2914_v56 = vadd.f32 %v2885_v21, %v2866_v32  ;;  %3152 = vadd.xlane.f32.xlu0 %v7560_v4  ;;  %3259 = vadd.xlane.f32.xlu1 %v3229_v37  ;;  %v3175_v37 = vlaneseq }
 0xffc   :  { %5376 = vmatprep.mubr.f32.mxu0 %v2914_v56  ;;  %v2891_v23 = vpop.permute.xlu1 %2890  ;;  %v3176_v15 = vshrl.u32 %v3175_v37, 7  ;;  %v3121_v56 = vld [vmem:[%s8012_s5] sm:$0x7]  ;;  %s6595_s5 = smov [#allocation17]  }
 0xffd   :  { %5377 = vmatmul.mubr.f32.gmra.mrb[114].mxu0 %v2915_v42  ;;  %v2889_v55 = vpop.permute.xlu0 %2888  ;;  %v2917_v57 = vadd.f32 %v2891_v23, %v2869_v27  ;;  %s3927_s6 = sshll.u32 %s6595_s5, 4  ;;  %s3928_s6 = int_to_ptr.vmem [resolvable:$true] %s3927_s6 }
 0xffe   :  { %v2916_v34 = vadd.f32 %v2889_v55, %v2868_v6  ;;  %3261 = vadd.xlane.f32.xlu0 %v3230_v54  ;;  %v3177_v21 = vsub.s32 1, %v3176_v15  ;;  %v3197_v6 = vsub.s32 0, %v3176_v15  ;;  %v3265_v23 = vsub.s32 2, %v3176_v15  ;;  %s6478_s1 = scalar_lea.vmem %s3928_s6, 2048  ;;  %p6483_p9 = scmp.lt.s32.totalorder %s3928_s6, %s3928_s6 }
 0xfff   :  { %p6479_p8 = scmp.ne.s32.totalorder %s3928_s6, %s6478_s1  ;;  %p6484_p10 = scmp.lt.s32.totalorder %s6478_s1, %s6478_s1 }
0x1000   :  { %5379 = vmatprep.mubr.f32.mxu0 %v2916_v34  ;;  %v2895_v7 = vpop.permute.xlu1 %2894  ;;  %v7714_v42 = vrot.slane %v3121_v56, %v3177_v21 }
0x1001   :  { %5380 = vmatmul.mubr.f32.gmra.mrb[116].mxu0 %v2917_v57  ;;  %v2893_v4 = vpop.permute.xlu0 %2892  ;;  %v2919_v1 = vadd.f32 %v2895_v7, %v2871_v43  ;;  %v7717_v57 = vrot.slane %v3121_v56, %v3197_v6  ;;  %v7720_v7 = vrot.slane %v3121_v56, %v3265_v23  ;;  %p6485_p11 = por %p6484_p10, %p6483_p9 }
0x1002   :  { %v2918_v2 = vadd.f32 %v2893_v4, %v2870_v41 }
0x1003   :  { %p6486_p12 = pnand %p6485_p11, %p6479_p8 }
0x1004   :  { %5382 = vmatprep.mubr.f32.mxu0 %v2918_v2  ;;  %v2899_v36 = vpop.permute.xlu1 %2898 }
0x1005   :  { %5383 = vmatmul.mubr.f32.gmra.mrb[118].mxu0 %v2919_v1  ;;  %v2897_v50 = vpop.permute.xlu0 %2896  ;;  %v2921_v38 = vadd.f32 %v2899_v36, %v2873_v31 }
0x1006   :  { %v2920_v12 = vadd.f32 %v2897_v50, %v2872_v28 }
0x1008   :  { %5385 = vmatprep.mubr.f32.mxu0 %v2920_v12  ;;  %v2903_v25 = vpop.permute.xlu1 %2902 }
0x1009   :  { %5386 = vmatmul.mubr.f32.gmra.mrb[120].mxu0 %v2921_v38  ;;  %v2901_v8 = vpop.permute.xlu0 %2900  ;;  %v2923_v60 = vadd.f32 %v2903_v25, %v2875_v51 }
0x100a   :  { %v2922_v48 = vadd.f32 %v2901_v8, %v2874_v63 }
0x100c   :  { %5388 = vmatprep.mubr.f32.mxu0 %v2922_v48  ;;  %v2907_v0 = vpop.permute.xlu1 %2906 }
0x100d   :  { %5389 = vmatmul.mubr.f32.gmra.mrb[122].mxu0 %v2923_v60  ;;  %v2905_v19 = vpop.permute.xlu0 %2904  ;;  %v2925_v58 = vadd.f32 %v2907_v0, %v2877_v16 }
0x100e   :  { %v2924_v49 = vadd.f32 %v2905_v19, %v2876_v26 }
0x1010   :  { %5391 = vmatprep.mubr.f32.mxu0 %v2924_v49  ;;  %v2911_v17 = vpop.permute.xlu1 %2910 }
0x1011   :  { %5392 = vmatmul.mubr.f32.gmra.mrb[124].mxu0 %v2925_v58  ;;  %v2909_v10 = vpop.permute.xlu0 %2908  ;;  %v2927_v24 = vadd.f32 %v2911_v17, %v2879_v44 }
0x1012   :  { %v2926_v9 = vadd.f32 %v2909_v10, %v2878_v35 }
0x1014   :  { %5394 = vmatprep.mubr.f32.mxu0 %v2926_v9 }
0x1015   :  { %5395 = vmatmul.mubr.f32.gmra.mrb[126].mxu0 %v2927_v24 }
0x1016   :  { %5485 = vmatprep.mubr.f32.mxu0 %v6286_v20 }
0x104b   :  { %v3123_v33 = vpop.xlane.xlu0 %3122 }
0x104c   :  { %v3179_v41 = vmul.f32 %v7714_v42, %v3123_v33 }
0x104e   :  { %v3199_v28 = vadd.f32 %v7717_v57, %v3179_v41 }
0x104f   :  { %v3232_v11 = vpop.xlane.xlu0 %3231  ;;  %v3125_v47 = vpop.xlane.xlu1 %3124 }
0x1050   :  { %v3180_v55 = vmul.f32 %v7714_v42, %v3125_v47  ;;  %v3267_v36 = vmul.f32 %v7720_v7, %v3232_v11 }
0x1052   :  { %v3200_v4 = vadd.f32 %v7717_v57, %v3180_v55  ;;  %v3283_v8 = vadd.f32 %v3267_v36, %v3199_v28 }
0x1053   :  { %v3234_v39 = vpop.xlane.xlu0 %3233  ;;  %v3127_v14 = vpop.xlane.xlu1 %3126 }
0x1054   :  { %v3268_v2 = vmul.f32 %v7720_v7, %v3234_v39  ;;  %v3181_v31 = vmul.f32 %v7714_v42, %v3127_v14  ;;  %v3299_v24 = vadd.f32 1e-06, %v3283_v8 }
0x1056   :  { %v3284_v38 = vadd.f32 %v3268_v2, %v3200_v4  ;;  %v3201_v48 = vadd.f32 %v7717_v57, %v3181_v31 }
0x1057   :  { %v3129_v45 = vpop.xlane.xlu0 %3128  ;;  %v3236_v62 = vpop.xlane.xlu1 %3235 }
0x1058   :  { %v3182_v1 = vmul.f32 %v7714_v42, %v3129_v45  ;;  %v3269_v60 = vmul.f32 %v7720_v7, %v3236_v62  ;;  %v3300_v35 = vadd.f32 1e-06, %v3284_v38 }
0x105a   :  { %v3202_v63 = vadd.f32 %v7717_v57, %v3182_v1  ;;  %v3285_v20 = vadd.f32 %v3269_v60, %v3201_v48  ;;  %6222 = vrcp.f32 %v3300_v35 }
0x105b   :  { %v3238_v40 = vpop.xlane.xlu0 %3237  ;;  %v3131_v13 = vpop.xlane.xlu1 %3130  ;;  %6224 = vrcp.f32 %v3299_v24 }
0x105c   :  { %v3183_v50 = vmul.f32 %v7714_v42, %v3131_v13  ;;  %v3270_v25 = vmul.f32 %v7720_v7, %v3238_v40 }
0x105e   :  { %v3203_v16 = vadd.f32 %v7717_v57, %v3183_v50  ;;  %v3286_v17 = vadd.f32 %v3270_v25, %v3202_v63 }
0x105f   :  { %v3133_v61 = vpop.xlane.xlu0 %3132  ;;  %v3240_v46 = vpop.xlane.xlu1 %3239 }
0x1060   :  { %v3184_v51 = vmul.f32 %v7714_v42, %v3133_v61  ;;  %v3271_v19 = vmul.f32 %v7720_v7, %v3240_v46  ;;  %v3302_v13 = vadd.f32 1e-06, %v3286_v17  ;;  %v3301_v46 = vadd.f32 1e-06, %v3285_v20 }
0x1062   :  { %v3204_v44 = vadd.f32 %v7717_v57, %v3184_v51  ;;  %v3287_v39 = vadd.f32 %v3271_v19, %v3203_v16  ;;  %6226 = vrcp.f32 %v3302_v13  ;;  %v8051_v19 = vld [vmem:[#allocation30_spill] sm:$0xff] }
0x1063   :  { %v3242_v29 = vpop.xlane.xlu0 %3241  ;;  %v3135_v3 = vpop.xlane.xlu1 %3134  ;;  %6228 = vrcp.f32 %v3301_v46 }
0x1064   :  { %v3185_v26 = vmul.f32 %v7714_v42, %v3135_v3  ;;  %v3272_v10 = vmul.f32 %v7720_v7, %v3242_v29  ;;  %v3303_v3 = vadd.f32 1e-06, %v3287_v39  ;;  %v6223_v38 = vpop.eup %6222 }
0x1065   :  { %v6225_v25 = vpop.eup %6224 }
0x1066   :  { %v3205_v33 = vadd.f32 %v7717_v57, %v3185_v26  ;;  %v3288_v29 = vadd.f32 %v3272_v10, %v3204_v44  ;;  %6230 = vrcp.f32 %v3303_v3  ;;  %v8052_v10 = vld [vmem:[#allocation31_spill] sm:$0xff] }
0x1067   :  { %v3137_v22 = vpop.xlane.xlu0 %3136  ;;  %v3244_v5 = vpop.xlane.xlu1 %3243 }
0x1068   :  { %v3186_v49 = vmul.f32 %v7714_v42, %v3137_v22  ;;  %v3273_v11 = vmul.f32 %v7720_v7, %v3244_v5 }
0x106a   :  { %v3206_v47 = vadd.f32 %v7717_v57, %v3186_v49  ;;  %v3289_v22 = vadd.f32 %v3273_v11, %v3205_v33 }
0x106b   :  { %v3246_v30 = vpop.xlane.xlu0 %3245  ;;  %v3139_v32 = vpop.xlane.xlu1 %3138 }
0x106c   :  { %v3187_v58 = vmul.f32 %v7714_v42, %v3139_v32  ;;  %v3274_v45 = vmul.f32 %v7720_v7, %v3246_v30  ;;  %v6227_v44 = vpop.eup %6226 }
0x106d   :  { %v6229_v39 = vpop.eup %6228 }
0x106e   :  { %v3207_v14 = vadd.f32 %v7717_v57, %v3187_v58  ;;  %v3290_v5 = vadd.f32 %v3274_v45, %v3206_v47 }
0x106f   :  { %v3141_v59 = vpop.xlane.xlu0 %3140  ;;  %v3248_v54 = vpop.xlane.xlu1 %3247 }
0x1070   :  { %v3188_v40 = vmul.f32 %v7714_v42, %v3141_v59  ;;  %v3275_v62 = vmul.f32 %v7720_v7, %v3248_v54  ;;  %v3304_v59 = vadd.f32 1e-06, %v3288_v29  ;;  %v3305_v54 = vadd.f32 1e-06, %v3289_v22  ;;  %v6231_v45 = vpop.eup %6230  ;;  %v8053_v29 = vld [vmem:[#allocation32_spill] sm:$0xff] }
0x1071   :  { %v3306_v23 = vadd.f32 1e-06, %v3290_v5 }
0x1072   :  { %v3208_v32 = vadd.f32 %v7717_v57, %v3188_v40  ;;  %v3291_v15 = vadd.f32 %v3275_v62, %v3207_v14  ;;  %6232 = vrcp.f32 %v3304_v59 }
0x1073   :  { %v3250_v18 = vpop.xlane.xlu0 %3249  ;;  %v3143_v34 = vpop.xlane.xlu1 %3142  ;;  %6234 = vrcp.f32 %v3305_v54 }
0x1074   :  { %v3276_v30 = vmul.f32 %v7720_v7, %v3250_v18  ;;  %v3189_v21 = vmul.f32 %v7714_v42, %v3143_v34  ;;  %v3307_v55 = vadd.f32 1e-06, %v3291_v15  ;;  %6236 = vrcp.f32 %v3306_v23 }
0x1076   :  { %v3292_v41 = vadd.f32 %v3276_v30, %v3208_v32  ;;  %v3209_v4 = vadd.f32 %v7717_v57, %v3189_v21  ;;  %6238 = vrcp.f32 %v3307_v55  ;;  %v8054_v32 = vld [vmem:[#allocation33_spill] sm:$0xff] }
0x1077   :  { %v3145_v27 = vpop.xlane.xlu0 %3144  ;;  %v3252_v12 = vpop.xlane.xlu1 %3251 }
0x1078   :  { %v3190_v56 = vmul.f32 %v7714_v42, %v3145_v27  ;;  %v3277_v2 = vmul.f32 %v7720_v7, %v3252_v12  ;;  %v3308_v51 = vadd.f32 1e-06, %v3292_v41  ;;  %v8055_v41 = vld [vmem:[#allocation34_spill] sm:$0xff] }
0x107a   :  { %v3210_v18 = vadd.f32 %v7717_v57, %v3190_v56  ;;  %6240 = vrcp.f32 %v3308_v51 }
0x107b   :  { %v7722_v43 = vpop.xlane.xlu0 %3253  ;;  %v3147_v9 = vpop.xlane.xlu1 %3146 }
0x107c   :  { %v3278_v34 = vmul.f32 %v7720_v7, %v7722_v43  ;;  %v3191_v31 = vmul.f32 %v7714_v42, %v3147_v9  ;;  %v3293_v43 = vadd.f32 %v3277_v2, %v3209_v4 }
0x107e   :  { %v3294_v60 = vadd.f32 %v3278_v34, %v3210_v18  ;;  %v3309_v14 = vadd.f32 1e-06, %v3293_v43  ;;  %v8058_v43 = vld [vmem:[#allocation37_spill] sm:$0xff] }
0x107f   :  { %v3149_v0 = vpop.xlane.xlu0 %3148  ;;  %v3256_v37 = vpop.xlane.xlu1 %3255 }
0x1080   :  { %v3192_v27 = vmul.f32 %v7714_v42, %v3149_v0  ;;  %v3279_v58 = vmul.f32 %v7720_v7, %v3256_v37  ;;  %v3310_v40 = vadd.f32 1e-06, %v3294_v60  ;;  %v6233_v37 = vpop.eup %6232 }
0x1081   :  { %v6235_v59 = vpop.eup %6234 }
0x1082   :  { %v6237_v54 = vpop.eup %6236  ;;  %6242 = vrcp.f32 %v3310_v40 }
0x1083   :  { %v3258_v61 = vpop.xlane.xlu0 %3257  ;;  %v3151_v28 = vpop.xlane.xlu1 %3150  ;;  %6244 = vrcp.f32 %v3309_v14  ;;  %v8062_v14 = vld [vmem:[#allocation41_spill] sm:$0xff] }
0x1084   :  { %v3280_v16 = vmul.f32 %v7720_v7, %v3258_v61  ;;  %v3193_v17 = vmul.f32 %v7714_v42, %v3151_v28 }
0x1086   :  { %v3213_v22 = vadd.f32 %v7717_v57, %v3193_v17 }
0x1087   :  { %v3153_v6 = vpop.xlane.xlu0 %3152  ;;  %v3260_v33 = vpop.xlane.xlu1 %3259 }
0x1088   :  { %v3194_v63 = vmul.f32 %v7714_v42, %v3153_v6  ;;  %v3281_v5 = vmul.f32 %v7720_v7, %v3260_v33  ;;  %v8061_v33 = vld [vmem:[#allocation40_spill] sm:$0xff] }
0x108a   :  { %v3214_v20 = vadd.f32 %v7717_v57, %v3194_v63  ;;  %v3297_v2 = vadd.f32 %v3281_v5, %v3213_v22  ;;  %v8057_v63 = vld [vmem:[#allocation36_spill] sm:$0xff] }
0x108b   :  { %v3262_v48 = vpop.xlane.xlu0 %3261 }
0x108c   :  { %v3282_v11 = vmul.f32 %v7720_v7, %v3262_v48  ;;  %v6239_v7 = vpop.eup %6238 }
0x108e   :  { %v3298_v21 = vadd.f32 %v3282_v11, %v3214_v20 }
0x1090   :  { %v3314_v34 = vadd.f32 1e-06, %v3298_v21 }
0x10cc   :  { %v5375_v1 = vpop.f32.mrb[112].mxu0 }
0x10cd   :  { %v3090_v36 = vmul.f32 %v5375_v1, %v6996_v52  ;;  %v3010_v50 = vpop.f32.mrb[113].mxu0  ;;  %v3212_v52 = vadd.f32 %v7717_v57, %v3192_v27  ;;  %v8056_v1 = vld [vmem:[#allocation35_spill] sm:$0xff] }
0x10ce   :  { %v3089_v12 = vmul.f32 %v3010_v50, %v6998_v53  ;;  %v3211_v53 = vadd.f32 %v7717_v57, %v3191_v31 }
0x10cf   :  { %3106 = vst [vmem:[#allocation19 + $0x8] sm:$0xff] %v3090_v36  ;;  %v7764_v8 = vmul.f32 %v6223_v38, %v3090_v36  ;;  %v3296_v42 = vadd.f32 %v3280_v16, %v3212_v52  ;;  %v6241_v38 = vpop.eup %6240 }
0x10d0   :  { %3105 = vst [vmem:[#allocation19] sm:$0xff] %v3089_v12  ;;  %v7767_v26 = vmul.f32 %v6225_v25, %v3089_v12  ;;  %v5378_v0 = vpop.f32.mrb[114].mxu0  ;;  %v3295_v13 = vadd.f32 %v3279_v58, %v3211_v53  ;;  %v3313_v12 = vadd.f32 1e-06, %v3297_v2  ;;  %v8059_v53 = vld [vmem:[#allocation38_spill] sm:$0xff]  ;;  %v6243_v58 = vpop.eup %6242  ;;  %v7850_v2 = vld [vmem:[#allocation2 + $0x30] sm:$0xff] }
0x10d1   :  { %v3092_v49 = vmul.f32 %v5378_v0, %v8051_v19  ;;  %v3020_v35 = vpop.f32.mrb[115].mxu0  ;;  %v3312_v6 = vadd.f32 1e-06, %v3296_v42 }
0x10d2   :  { %v3091_v9 = vmul.f32 %v3020_v35, %v8052_v10  ;;  %v6045_v24 = vpack.c.bf16 %v7764_v8, %v7767_v26  ;;  %v3311_v55 = vadd.f32 1e-06, %v3295_v13  ;;  %v8060_v35 = vld [vmem:[#allocation39_spill] sm:$0xff]  ;;  %v6245_v10 = vpop.eup %6244 }
0x10d3   :  { %3108 = vst [vmem:[#allocation19 + $0x18] sm:$0xff] %v3092_v49  ;;  %v7779_v47 = vmul.f32 %v6227_v44, %v3092_v49  ;;  %6246 = vrcp.f32 %v3312_v6 }
0x10d4   :  { %3107 = vst [vmem:[#allocation19 + $0x10] sm:$0xff] %v3091_v9  ;;  %v7781_v62 = vmul.f32 %v6229_v39, %v3091_v9  ;;  %v5381_v61 = vpop.f32.mrb[116].mxu0  ;;  %6046 = vmatprep.subr.bf16.mxu1 %v6045_v24  ;;  %6248 = vrcp.f32 %v3311_v55  ;;  %v7841_v55 = vld [vmem:[#allocation2 + $0x18] sm:$0xff] }
0x10d5   :  { %v3094_v46 = vmul.f32 %v5381_v61, %v8053_v29  ;;  %v3030_v3 = vpop.f32.mrb[117].mxu0  ;;  %6048 = vmatpush3.bf16.msra.mxu1 %v6045_v24  ;;  %6250 = vrcp.f32 %v3314_v34  ;;  %v7856_v34 = vld [vmem:[#allocation2 + $0x40] sm:$0xff] }
0x10d6   :  { %v3093_v15 = vmul.f32 %v3030_v3, %v8054_v32  ;;  %v6049_v30 = vpack.c.bf16 %v7779_v47, %v7781_v62  ;;  %6252 = vrcp.f32 %v3313_v12  ;;  %v8063_v3 = vld [vmem:[#allocation42_spill] sm:$0xff]  ;;  %v8064_v32 = vld [vmem:[#allocation43_spill] sm:$0xff]  ;;  %v7874_v12 = vld [vmem:[#allocation2 + $0x70] sm:$0xff] }
0x10d7   :  { %3110 = vst [vmem:[#allocation19 + $0x28] sm:$0xff] %v3094_v46  ;;  %v7789_v56 = vmul.f32 %v6233_v37, %v3094_v46 }
0x10d8   :  { %3109 = vst [vmem:[#allocation19 + $0x20] sm:$0xff] %v3093_v15  ;;  %v7791_v57 = vmul.f32 %v6231_v45, %v3093_v15  ;;  %v5384_v23 = vpop.f32.mrb[118].mxu0  ;;  %6050 = vmatprep.subr.bf16.mxu1 %v6049_v30 }
0x10d9   :  { %v3096_v4 = vmul.f32 %v5384_v23, %v8055_v41  ;;  %v3040_v18 = vpop.f32.mrb[119].mxu0  ;;  %6052 = vmatpush3.bf16.msra.mxu1 %v6049_v30  ;;  %v7835_v23 = vld [vmem:[#allocation2 + $0x8] sm:$0xff]  ;;  %v7844_v41 = vld [vmem:[#allocation2 + $0x20] sm:$0xff] }
0x10da   :  { %v3095_v27 = vmul.f32 %v3040_v18, %v8056_v1  ;;  %v6053_v28 = vpack.c.bf16 %v7789_v56, %v7791_v57  ;;  %v7853_v18 = vld [vmem:[#allocation2 + $0x38] sm:$0xff]  ;;  %v7859_v1 = vld [vmem:[#allocation2 + $0x48] sm:$0xff] }
0x10db   :  { %3112 = vst [vmem:[#allocation19 + $0x38] sm:$0xff] %v3096_v4  ;;  %v7797_v36 = vmul.f32 %v6237_v54, %v3096_v4  ;;  %v7847_v4 = vld [vmem:[#allocation2 + $0x28] sm:$0xff] }
0x10dc   :  { %3111 = vst [vmem:[#allocation19 + $0x30] sm:$0xff] %v3095_v27  ;;  %v7799_v31 = vmul.f32 %v6235_v59, %v3095_v27  ;;  %v5387_v50 = vpop.f32.mrb[120].mxu0  ;;  %6054 = vmatprep.subr.bf16.mxu1 %v6053_v28  ;;  %v7862_v27 = vld [vmem:[#allocation2 + $0x50] sm:$0xff] }
0x10dd   :  { %v3098_v25 = vmul.f32 %v5387_v50, %v8057_v63  ;;  %v3050_v51 = vpop.f32.mrb[121].mxu0  ;;  %6056 = vmatpush3.bf16.msra.mxu1 %v6053_v28  ;;  %v6247_v45 = vpop.eup %6246  ;;  %v7865_v28 = vld [vmem:[#allocation2 + $0x58] sm:$0xff]  ;;  %v7868_v50 = vld [vmem:[#allocation2 + $0x60] sm:$0xff] }
0x10de   :  { %v3097_v48 = vmul.f32 %v3050_v51, %v8058_v43  ;;  %v6057_v60 = vpack.c.bf16 %v7797_v36, %v7799_v31  ;;  %v6249_v61 = vpop.eup %6248  ;;  %v7877_v63 = vld [vmem:[#allocation2 + $0x78] sm:$0xff] }
0x10df   :  { %3114 = vst [vmem:[#allocation19 + $0x48] sm:$0xff] %v3098_v25  ;;  %v7805_v52 = vmul.f32 %v6241_v38, %v3098_v25  ;;  %v6251_v29 = vpop.eup %6250  ;;  %v7871_v38 = vld [vmem:[#allocation2 + $0x68] sm:$0xff] }
0x10e0   :  { %3113 = vst [vmem:[#allocation19 + $0x40] sm:$0xff] %v3097_v48  ;;  %v7807_v0 = vmul.f32 %v6239_v7, %v3097_v48  ;;  %v5390_v16 = vpop.f32.mrb[122].mxu0  ;;  %6058 = vmatprep.subr.bf16.mxu1 %v6057_v60  ;;  %v6253_v21 = vpop.eup %6252  ;;  %v7838_v7 = vld [vmem:[#allocation2 + $0x10] sm:$0xff] }
0x10e1   :  { %v3100_v19 = vmul.f32 %v5390_v16, %v8059_v53  ;;  %v3060_v49 = vpop.f32.mrb[123].mxu0  ;;  %6060 = vmatpush3.bf16.msra.mxu1 %v6057_v60 }
0x10e2   :  { %v3099_v17 = vmul.f32 %v3060_v49, %v8060_v35  ;;  %v6061_v44 = vpack.c.bf16 %v7805_v52, %v7807_v0 }
0x10e3   :  { %3116 = vst [vmem:[#allocation19 + $0x58] sm:$0xff] %v3100_v19  ;;  %v7813_v9 = vmul.f32 %v6243_v58, %v3100_v19 }
0x10e4   :  { %3115 = vst [vmem:[#allocation19 + $0x50] sm:$0xff] %v3099_v17  ;;  %v7815_v24 = vmul.f32 %v6245_v10, %v3099_v17  ;;  %v5393_v20 = vpop.f32.mrb[124].mxu0  ;;  %6062 = vmatprep.subr.bf16.mxu1 %v6061_v44 }
0x10e5   :  { %v3102_v11 = vmul.f32 %v5393_v20, %v8061_v33  ;;  %v3070_v39 = vpop.f32.mrb[125].mxu0  ;;  %6064 = vmatpush3.bf16.msra.mxu1 %v6061_v44 }
0x10e6   :  { %v3101_v40 = vmul.f32 %v3070_v39, %v8062_v14  ;;  %v6065_v42 = vpack.c.bf16 %v7813_v9, %v7815_v24 }
0x10e7   :  { %3118 = vst [vmem:[#allocation19 + $0x68] sm:$0xff] %v3102_v11  ;;  %v7821_v13 = vmul.f32 %v6247_v45, %v3102_v11 }
0x10e8   :  { %3117 = vst [vmem:[#allocation19 + $0x60] sm:$0xff] %v3101_v40  ;;  %v7823_v46 = vmul.f32 %v6249_v61, %v3101_v40  ;;  %v5396_v22 = vpop.f32.mrb[126].mxu0  ;;  %6066 = vmatprep.subr.bf16.mxu1 %v6065_v42 }
0x10e9   :  { %v3104_v5 = vmul.f32 %v5396_v22, %v8063_v3  ;;  %v3080_v37 = vpop.f32.mrb[127].mxu0  ;;  %6068 = vmatpush3.bf16.msra.mxu1 %v6065_v42  ;;  %v3733_v22 = vld [vmem:[#allocation8] sm:$0xff]  ;;  %v3734_v3 = vld [vmem:[#allocation8 + $0x8] sm:$0xff] }
0x10ea   :  { %v3103_v15 = vmul.f32 %v3080_v37, %v8064_v32  ;;  %v6069_v30 = vpack.c.bf16 %v7821_v13, %v7823_v46  ;;  %v6109_v37 = vpack.c.bf16 %v3734_v3, %v3733_v22  ;;  %v3736_v32 = vld [vmem:[#allocation8 + $0x18] sm:$0xff] }
0x10eb   :  { %3120 = vst [vmem:[#allocation19 + $0x78] sm:$0xff] %v3104_v5  ;;  %v7829_v59 = vmul.f32 %v6251_v29, %v3104_v5  ;;  %v3735_v5 = vld [vmem:[#allocation8 + $0x10] sm:$0xff] }
0x10ec   :  { %3119 = vst [vmem:[#allocation19 + $0x70] sm:$0xff] %v3103_v15  ;;  %v7831_v54 = vmul.f32 %v6253_v21, %v3103_v15  ;;  %6070 = vmatprep.subr.bf16.mxu1 %v6069_v30  ;;  %v6113_v15 = vpack.c.bf16 %v3736_v32, %v3735_v5  ;;  %v3738_v21 = vld [vmem:[#allocation8 + $0x28] sm:$0xff] }
0x10ed   :  { %6072 = vmatpush3.bf16.msra.mxu1 %v6069_v30  ;;  %v3737_v30 = vld [vmem:[#allocation8 + $0x20] sm:$0xff] }
0x10ee   :  { %v6073_v6 = vpack.c.bf16 %v7829_v59, %v7831_v54 }
0x10f0   :  { %6074 = vmatprep.subr.bf16.mxu1 %v6073_v6 }
0x10f1   :  { %6076 = vmatpush3.bf16.msra.mxu1 %v6073_v6  ;;  %v6117_v6 = vpack.c.bf16 %v3738_v21, %v3737_v30 }
0x10f2   :  { %6110 = vmatprep.subr.bf16.mxu1 %v6109_v37 }
0x10f4   :  { %5430 = vmatmul.mubr.f32.vlgmr.msra.gmra.mrb[112].mxu1 %v7835_v23 }
0x10f5   :  { %5432 = vmatprep.mubr.f32.mxu1 %v7838_v7  ;;  %6112 = vmatpush3.bf16.msra.mxu1 %v6109_v37 }
0x10f6   :  { %6114 = vmatprep.subr.bf16.mxu1 %v6113_v15 }
0x10f8   :  { %5433 = vmatmul.mubr.f32.gmra.mrb[114].mxu1 %v7841_v55 }
0x10f9   :  { %5435 = vmatprep.mubr.f32.mxu1 %v7844_v41  ;;  %6116 = vmatpush3.bf16.msra.mxu1 %v6113_v15 }
0x10fa   :  { %6118 = vmatprep.subr.bf16.mxu1 %v6117_v6 }
0x10fc   :  { %5436 = vmatmul.mubr.f32.gmra.mrb[116].mxu1 %v7847_v4 }
0x10fd   :  { %5438 = vmatprep.mubr.f32.mxu1 %v7850_v2  ;;  %6120 = vmatpush3.bf16.msra.mxu1 %v6117_v6 }
0x1100   :  { %5439 = vmatmul.mubr.f32.gmra.mrb[118].mxu1 %v7853_v18 }
0x1101   :  { %5441 = vmatprep.mubr.f32.mxu1 %v7856_v34 }
0x1104   :  { %5442 = vmatmul.mubr.f32.gmra.mrb[120].mxu1 %v7859_v1 }
0x1105   :  { %5444 = vmatprep.mubr.f32.mxu1 %v7862_v27 }
0x1108   :  { %5445 = vmatmul.mubr.f32.gmra.mrb[122].mxu1 %v7865_v28 }
0x1109   :  { %5447 = vmatprep.mubr.f32.mxu1 %v7868_v50 }
0x110c   :  { %5448 = vmatmul.mubr.f32.gmra.mrb[124].mxu1 %v7871_v38 }
0x110d   :  { %5450 = vmatprep.mubr.f32.mxu1 %v7874_v12 }
0x1110   :  { %5451 = vmatmul.mubr.f32.gmra.mrb[126].mxu1 %v7877_v63 }
0x11c7   :  { %v5431_v25 = vpop.f32.mrb[112].mxu1 }
0x11c8   :  { %3639 = vrot.lane.b32.xlu0 %v5431_v25, %s6593_s24  ;;  %v3413_v51 = vpop.f32.mrb[113].mxu1 }
0x11c9   :  { %v6077_v43 = vpack.c.bf16 %v5431_v25, %v3413_v51  ;;  %3637 = vrot.lane.b32.xlu1 %v3413_v51, %s6593_s24 }
0x11cb   :  { %v5434_v48 = vpop.f32.mrb[114].mxu1  ;;  %6078 = vmatprep.subr.bf16.mxu0 %v6077_v43 }
0x11cc   :  { %v3423_v60 = vpop.f32.mrb[115].mxu1  ;;  %6080 = vmatpush3.bf16.msra.mxu0 %v6077_v43 }
0x11cd   :  { %v6081_v16 = vpack.c.bf16 %v5434_v48, %v3423_v60  ;;  %3643 = vrot.lane.b32.xlu1 %v5434_v48, %s6593_s24  ;;  %3641 = vrot.lane.b32.xlu0 %v3423_v60, %s6593_s24 }
0x11cf   :  { %v5437_v53 = vpop.f32.mrb[116].mxu1  ;;  %6082 = vmatprep.subr.bf16.mxu0 %v6081_v16 }
0x11d0   :  { %v3433_v19 = vpop.f32.mrb[117].mxu1  ;;  %6084 = vmatpush3.bf16.msra.mxu0 %v6081_v16 }
0x11d1   :  { %v6085_v49 = vpack.c.bf16 %v5437_v53, %v3433_v19  ;;  %3647 = vrot.lane.b32.xlu1 %v5437_v53, %s6593_s24  ;;  %3645 = vrot.lane.b32.xlu0 %v3433_v19, %s6593_s24 }
0x11d3   :  { %v5440_v58 = vpop.f32.mrb[118].mxu1  ;;  %6086 = vmatprep.subr.bf16.mxu0 %v6085_v49 }
0x11d4   :  { %v3443_v35 = vpop.f32.mrb[119].mxu1  ;;  %6088 = vmatpush3.bf16.msra.mxu0 %v6085_v49 }
0x11d5   :  { %v6089_v17 = vpack.c.bf16 %v5440_v58, %v3443_v35  ;;  %3651 = vrot.lane.b32.xlu1 %v5440_v58, %s6593_s24  ;;  %3649 = vrot.lane.b32.xlu0 %v3443_v35, %s6593_s24 }
0x11d7   :  { %v5443_v44 = vpop.f32.mrb[120].mxu1  ;;  %6090 = vmatprep.subr.bf16.mxu0 %v6089_v17 }
0x11d8   :  { %v3453_v10 = vpop.f32.mrb[121].mxu1  ;;  %6092 = vmatpush3.bf16.msra.mxu0 %v6089_v17 }
0x11d9   :  { %v6093_v20 = vpack.c.bf16 %v5443_v44, %v3453_v10  ;;  %3655 = vrot.lane.b32.xlu1 %v5443_v44, %s6593_s24  ;;  %3653 = vrot.lane.b32.xlu0 %v3453_v10, %s6593_s24 }
0x11db   :  { %v5446_v33 = vpop.f32.mrb[122].mxu1  ;;  %6094 = vmatprep.subr.bf16.mxu0 %v6093_v20 }
0x11dc   :  { %v3463_v11 = vpop.f32.mrb[123].mxu1  ;;  %6096 = vmatpush3.bf16.msra.mxu0 %v6093_v20 }
0x11dd   :  { %v6097_v39 = vpack.c.bf16 %v5446_v33, %v3463_v11  ;;  %3659 = vrot.lane.b32.xlu1 %v5446_v33, %s6593_s24  ;;  %3657 = vrot.lane.b32.xlu0 %v3463_v11, %s6593_s24 }
0x11df   :  { %v5449_v45 = vpop.f32.mrb[124].mxu1  ;;  %6098 = vmatprep.subr.bf16.mxu0 %v6097_v39 }
0x11e0   :  { %v3473_v14 = vpop.f32.mrb[125].mxu1  ;;  %6100 = vmatpush3.bf16.msra.mxu0 %v6097_v39 }
0x11e1   :  { %v6101_v40 = vpack.c.bf16 %v5449_v45, %v3473_v14  ;;  %3663 = vrot.lane.b32.xlu1 %v5449_v45, %s6593_s24  ;;  %3661 = vrot.lane.b32.xlu0 %v3473_v14, %s6593_s24 }
0x11e3   :  { %v7894_v42 = vpop.f32.mrb[126].mxu1  ;;  %6102 = vmatprep.subr.bf16.mxu0 %v6101_v40 }
0x11e4   :  { %v3483_v61 = vpop.f32.mrb[127].mxu1  ;;  %6104 = vmatpush3.bf16.msra.mxu0 %v6101_v40 }
0x11e5   :  { %v6105_v29 = vpack.c.bf16 %v7894_v42, %v3483_v61  ;;  %3665 = vrot.lane.b32.xlu0 %v3483_v61, %s6593_s24 }
0x11e7   :  { %6106 = vmatprep.subr.bf16.mxu0 %v6105_v29 }
0x11e8   :  { %6108 = vmatpush3.bf16.msra.mxu0 %v6105_v29 }
0x11eb   :  { %5486 = vmatmul.mubr.f32.vlgmr.msra.gmra.mrb[128].mxu0 %v7835_v23  ;;  %v3739_v23 = vld [vmem:[#allocation8 + $0x30] sm:$0xff] }
0x11ec   :  { %5488 = vmatprep.mubr.f32.mxu0 %v7838_v7  ;;  %v3740_v7 = vld [vmem:[#allocation8 + $0x38] sm:$0xff] }
0x11ef   :  { %5489 = vmatmul.mubr.f32.gmra.mrb[130].mxu0 %v7841_v55  ;;  %v6121_v55 = vpack.c.bf16 %v3740_v7, %v3739_v23 }
0x11f0   :  { %5491 = vmatprep.mubr.f32.mxu0 %v7844_v41  ;;  %v3741_v41 = vld [vmem:[#allocation8 + $0x40] sm:$0xff] }
0x11f1   :  { %6122 = vmatprep.subr.bf16.mxu1 %v6121_v55 }
0x11f2   :  { %6124 = vmatpush3.bf16.msra.mxu1 %v6121_v55 }
0x11f3   :  { %5492 = vmatmul.mubr.f32.gmra.mrb[132].mxu0 %v7847_v4  ;;  %v3742_v4 = vld [vmem:[#allocation8 + $0x48] sm:$0xff] }
0x11f4   :  { %5494 = vmatprep.mubr.f32.mxu0 %v7850_v2  ;;  %v6125_v2 = vpack.c.bf16 %v3742_v4, %v3741_v41 }
0x11f6   :  { %6126 = vmatprep.subr.bf16.mxu1 %v6125_v2 }
0x11f7   :  { %5495 = vmatmul.mubr.f32.gmra.mrb[134].mxu0 %v7853_v18  ;;  %v3743_v18 = vld [vmem:[#allocation8 + $0x50] sm:$0xff]  ;;  %6128 = vmatpush3.bf16.msra.mxu1 %v6125_v2 }
0x11f8   :  { %5497 = vmatprep.mubr.f32.mxu0 %v7856_v34  ;;  %v3744_v34 = vld [vmem:[#allocation8 + $0x58] sm:$0xff] }
0x11fb   :  { %5498 = vmatmul.mubr.f32.gmra.mrb[136].mxu0 %v7859_v1  ;;  %v6129_v1 = vpack.c.bf16 %v3744_v34, %v3743_v18 }
0x11fc   :  { %5500 = vmatprep.mubr.f32.mxu0 %v7862_v27  ;;  %v3745_v27 = vld [vmem:[#allocation8 + $0x60] sm:$0xff] }
0x11fd   :  { %6130 = vmatprep.subr.bf16.mxu1 %v6129_v1 }
0x11fe   :  { %6132 = vmatpush3.bf16.msra.mxu1 %v6129_v1 }
0x11ff   :  { %5501 = vmatmul.mubr.f32.gmra.mrb[138].mxu0 %v7865_v28  ;;  %v3746_v28 = vld [vmem:[#allocation8 + $0x68] sm:$0xff] }
0x1200   :  { %5503 = vmatprep.mubr.f32.mxu0 %v7868_v50  ;;  %v6133_v50 = vpack.c.bf16 %v3746_v28, %v3745_v27 }
0x1202   :  { %6134 = vmatprep.subr.bf16.mxu1 %v6133_v50 }
0x1203   :  { %5504 = vmatmul.mubr.f32.gmra.mrb[140].mxu0 %v7871_v38  ;;  %6136 = vmatpush3.bf16.msra.mxu1 %v6133_v50  ;;  %v3747_v38 = vld [vmem:[#allocation8 + $0x70] sm:$0xff] }
0x1204   :  { %5506 = vmatprep.mubr.f32.mxu0 %v7874_v12  ;;  %v3748_v12 = vld [vmem:[#allocation8 + $0x78] sm:$0xff] }
0x1207   :  { %5507 = vmatmul.mubr.f32.gmra.mrb[142].mxu0 %v7877_v63  ;;  %v6137_v63 = vpack.c.bf16 %v3748_v12, %v3747_v38 }
0x1209   :  { %6138 = vmatprep.subr.bf16.mxu1 %v6137_v63 }
0x120a   :  { %6140 = vmatpush3.bf16.msra.mxu1 %v6137_v63 }
0x123a   :  { %v3640_v11 = vpop.permute.xlu0 %3639 }
0x123b   :  { %v3638_v39 = vpop.permute.xlu1 %3637  ;;  %v3670_v23 = vadd.f32 %v3640_v11, %v7764_v8 }
0x123c   :  { %v3669_v6 = vadd.f32 %v3638_v39, %v7767_v26 }
0x123f   :  { %v3642_v45 = vpop.permute.xlu0 %3641  ;;  %v3644_v14 = vpop.permute.xlu1 %3643 }
0x1240   :  { %v3671_v7 = vadd.f32 %v3642_v45, %v7781_v62  ;;  %v3672_v27 = vadd.f32 %v3644_v14, %v7779_v47 }
0x1243   :  { %v3646_v40 = vpop.permute.xlu0 %3645 }
0x1244   :  { %v3673_v28 = vadd.f32 %v3646_v40, %v7791_v57 }
0x1247   :  { %v3650_v61 = vpop.permute.xlu0 %3649 }
0x1248   :  { %v3675_v12 = vadd.f32 %v3650_v61, %v7799_v31 }
0x124b   :  { %v3654_v22 = vpop.permute.xlu0 %3653 }
0x124c   :  { %v3677_v47 = vadd.f32 %v3654_v22, %v7807_v0 }
0x124f   :  { %v3658_v5 = vpop.permute.xlu0 %3657 }
0x1250   :  { %v3679_v31 = vadd.f32 %v3658_v5, %v7815_v24 }
0x1253   :  { %v3662_v32 = vpop.permute.xlu0 %3661 }
0x1254   :  { %v3681_v0 = vadd.f32 %v3662_v32, %v7823_v46 }
0x1257   :  { %v3666_v21 = vpop.permute.xlu0 %3665 }
0x1258   :  { %v3683_v24 = vadd.f32 %v3666_v21, %v7831_v54 }
0x12be   :  { %v5487_v25 = vpop.f32.mrb[128].mxu0 }
0x12bf   :  { %3687 = vrot.lane.b32.xlu1 %v5487_v25, %s6594_s4  ;;  %v3558_v51 = vpop.f32.mrb[129].mxu0 }
0x12c2   :  { %v5490_v43 = vpop.f32.mrb[130].mxu0 }
0x12c3   :  { %3685 = vrot.lane.b32.xlu1 %v3558_v51, %s6594_s4  ;;  %v3568_v48 = vpop.f32.mrb[131].mxu0 }
0x12c4   :  { %3689 = vrot.lane.b32.xlu0 %v3568_v48, %s6594_s4 }
0x12c6   :  { %v5493_v60 = vpop.f32.mrb[132].mxu0 }
0x12c7   :  { %3667 = vrot.lane.b32.xlu1 %v7894_v42, %s6593_s24  ;;  %v3578_v16 = vpop.f32.mrb[133].mxu0  ;;  %v3648_v42 = vpop.permute.xlu1 %3647 }
0x12c8   :  { %3693 = vrot.lane.b32.xlu0 %v3578_v16, %s6594_s4  ;;  %v3674_v62 = vadd.f32 %v3648_v42, %v7789_v56 }
0x12ca   :  { %v5496_v53 = vpop.f32.mrb[134].mxu0 }
0x12cb   :  { %3691 = vrot.lane.b32.xlu1 %v5490_v43, %s6594_s4  ;;  %v3588_v19 = vpop.f32.mrb[135].mxu0  ;;  %v3652_v29 = vpop.permute.xlu1 %3651 }
0x12cc   :  { %3697 = vrot.lane.b32.xlu0 %v3588_v19, %s6594_s4  ;;  %v3676_v48 = vadd.f32 %v3652_v29, %v7797_v36 }
0x12ce   :  { %v5499_v49 = vpop.f32.mrb[136].mxu0 }
0x12cf   :  { %3695 = vrot.lane.b32.xlu1 %v5493_v60, %s6594_s4  ;;  %v3598_v58 = vpop.f32.mrb[137].mxu0  ;;  %v3656_v3 = vpop.permute.xlu1 %3655 }
0x12d0   :  { %3701 = vrot.lane.b32.xlu0 %v3598_v58, %s6594_s4  ;;  %v3678_v56 = vadd.f32 %v3656_v3, %v7805_v52 }
0x12d2   :  { %v5502_v35 = vpop.f32.mrb[138].mxu0 }
0x12d3   :  { %3699 = vrot.lane.b32.xlu1 %v5496_v53, %s6594_s4  ;;  %v3608_v17 = vpop.f32.mrb[139].mxu0  ;;  %v3660_v37 = vpop.permute.xlu1 %3659 }
0x12d4   :  { %3705 = vrot.lane.b32.xlu0 %v3608_v17, %s6594_s4  ;;  %v3680_v36 = vadd.f32 %v3660_v37, %v7813_v9 }
0x12d6   :  { %v5505_v44 = vpop.f32.mrb[140].mxu0 }
0x12d7   :  { %3703 = vrot.lane.b32.xlu1 %v5499_v49, %s6594_s4  ;;  %v3618_v10 = vpop.f32.mrb[141].mxu0  ;;  %v3664_v15 = vpop.permute.xlu1 %3663 }
0x12d8   :  { %3709 = vrot.lane.b32.xlu0 %v3618_v10, %s6594_s4 }
0x12da   :  { %v5508_v20 = vpop.f32.mrb[142].mxu0 }
0x12db   :  { %3707 = vrot.lane.b32.xlu1 %v5502_v35, %s6594_s4  ;;  %v3628_v33 = vpop.f32.mrb[143].mxu0 }
0x12dc   :  { %3713 = vrot.lane.b32.xlu0 %v3628_v33, %s6594_s4 }
0x12df   :  { %3711 = vrot.lane.b32.xlu1 %v5505_v44, %s6594_s4 }
0x12e3   :  { %3715 = vrot.lane.b32.xlu1 %v5508_v20, %s6594_s4  ;;  %v3682_v20 = vadd.f32 %v3664_v15, %v7821_v13 }
0x1331   :  { %v3688_v30 = vpop.permute.xlu1 %3687 }
0x1332   :  { %v3718_v2 = vadd.f32 %v3688_v30, %v3670_v23 }
0x1335   :  { %v3686_v55 = vpop.permute.xlu1 %3685 }
0x1336   :  { %v3717_v41 = vadd.f32 %v3686_v55, %v3669_v6  ;;  %v3690_v4 = vpop.permute.xlu0 %3689 }
0x1337   :  { %v3719_v18 = vadd.f32 %v3690_v4, %v3671_v7 }
0x1338   :  { %5541 = vmatprep.mubr.f32.mxu1 %v3717_v41 }
0x1339   :  { %5542 = vmatmul.mubr.f32.vlgmr.msra.gmra.mrb[128].mxu1 %v3718_v2  ;;  %v3668_v34 = vpop.permute.xlu1 %3667 }
0x133a   :  { %5544 = vmatprep.mubr.f32.mxu1 %v3719_v18  ;;  %v3694_v1 = vpop.permute.xlu0 %3693  ;;  %v3684_v45 = vadd.f32 %v3668_v34, %v7829_v59 }
0x133b   :  { %v3721_v8 = vadd.f32 %v3694_v1, %v3673_v28 }
0x133d   :  { %v3692_v50 = vpop.permute.xlu1 %3691 }
0x133e   :  { %v3720_v26 = vadd.f32 %v3692_v50, %v3672_v27  ;;  %v3698_v38 = vpop.permute.xlu0 %3697 }
0x133f   :  { %v3723_v43 = vadd.f32 %v3698_v38, %v3675_v12 }
0x1340   :  { %5545 = vmatmul.mubr.f32.gmra.mrb[130].mxu1 %v3720_v26 }
0x1341   :  { %v3696_v63 = vpop.permute.xlu1 %3695  ;;  %5547 = vmatprep.mubr.f32.mxu1 %v3721_v8 }
0x1342   :  { %v3722_v25 = vadd.f32 %v3696_v63, %v3674_v62  ;;  %v3702_v51 = vpop.permute.xlu0 %3701 }
0x1343   :  { %v3725_v53 = vadd.f32 %v3702_v51, %v3677_v47 }
0x1344   :  { %5548 = vmatmul.mubr.f32.gmra.mrb[132].mxu1 %v3722_v25 }
0x1345   :  { %v3700_v57 = vpop.permute.xlu1 %3699  ;;  %5550 = vmatprep.mubr.f32.mxu1 %v3723_v43 }
0x1346   :  { %v3724_v60 = vadd.f32 %v3700_v57, %v3676_v48  ;;  %v3706_v16 = vpop.permute.xlu0 %3705 }
0x1347   :  { %v3727_v35 = vadd.f32 %v3706_v16, %v3679_v31 }
0x1348   :  { %5551 = vmatmul.mubr.f32.gmra.mrb[134].mxu1 %v3724_v60 }
0x1349   :  { %v3704_v19 = vpop.permute.xlu1 %3703  ;;  %5553 = vmatprep.mubr.f32.mxu1 %v3725_v53 }
0x134a   :  { %v3726_v49 = vadd.f32 %v3704_v19, %v3678_v56  ;;  %v3710_v58 = vpop.permute.xlu0 %3709 }
0x134b   :  { %v3729_v10 = vadd.f32 %v3710_v58, %v3681_v0 }
0x134c   :  { %5554 = vmatmul.mubr.f32.gmra.mrb[136].mxu1 %v3726_v49 }
0x134d   :  { %v3708_v17 = vpop.permute.xlu1 %3707  ;;  %5556 = vmatprep.mubr.f32.mxu1 %v3727_v35 }
0x134e   :  { %v3728_v44 = vadd.f32 %v3708_v17, %v3680_v36  ;;  %v3714_v52 = vpop.permute.xlu0 %3713 }
0x134f   :  { %v3731_v39 = vadd.f32 %v3714_v52, %v3683_v24 }
0x1350   :  { %5557 = vmatmul.mubr.f32.gmra.mrb[138].mxu1 %v3728_v44 }
0x1351   :  { %v3712_v33 = vpop.permute.xlu1 %3711  ;;  %5559 = vmatprep.mubr.f32.mxu1 %v3729_v10 }
0x1352   :  { %v3730_v11 = vadd.f32 %v3712_v33, %v3682_v20 }
0x1354   :  { %5560 = vmatmul.mubr.f32.gmra.mrb[140].mxu1 %v3730_v11 }
0x1355   :  { %v3716_v9 = vpop.permute.xlu1 %3715  ;;  %5562 = vmatprep.mubr.f32.mxu1 %v3731_v39 }
0x1356   :  { %v3732_v46 = vadd.f32 %v3716_v9, %v3684_v45 }
0x1358   :  { %5563 = vmatmul.mubr.f32.gmra.mrb[142].mxu1 %v3732_v46 }
0x1359   :  { %6489 = shalt.err (!%p6486_p12)
}
0x135a   :  { %s6490_s2 = scalar_lea.hbm %s8020_s13, 2048 }
0x135b   :  { %p6491_p13 = scmp.ne.s32.totalorder %s8020_s13, %s6490_s2  ;;  %p6494_p0 = scmp.lt.u32.totalorder %s6490_s2, %s8020_s13 }
0x135d   :  { %p6496_p1 = pnand %p6494_p0, %p6491_p13 }
0x135f   :  { %6499 = shalt.err (!%p6496_p1)
}
0x1360   :  { %3933 = dma.vmem_to_hbm [thread:$0]  %s3928_s6, 2048, %s8020_s13, [#allocation18], %s6584_s30, %s6584_s30, %s6585_s16  }
0x1361   :  { %s6500_s10 = scalar_lea.vmem %s3916_s3, 2048  ;;  %p6505_p3 = scmp.lt.s32.totalorder %s3916_s3, %s3916_s3 }
0x1362   :  { %p6501_p2 = scmp.ne.s32.totalorder %s3916_s3, %s6500_s10  ;;  %p6506_p4 = scmp.lt.s32.totalorder %s6500_s10, %s6500_s10 }
0x1364   :  { %p6507_p5 = por %p6506_p4, %p6505_p3 }
0x1366   :  { %p6508_p6 = pnand %p6507_p5, %p6501_p2 }
0x1368   :  { %6511 = shalt.err (!%p6508_p6)
}
0x1369   :  { %s6512_s25 = scalar_lea.hbm %s8019_s12, 2048 }
0x136a   :  { %p6513_p7 = scmp.ne.s32.totalorder %s8019_s12, %s6512_s25  ;;  %p6516_p8 = scmp.lt.u32.totalorder %s6512_s25, %s8019_s12 }
0x136c   :  { %p6518_p9 = pnand %p6516_p8, %p6513_p7 }
0x136e   :  { %6521 = shalt.err (!%p6518_p9)
}
0x136f   :  { %3921 = dma.vmem_to_hbm [thread:$0]  %s3916_s3, 2048, %s8019_s12, [#allocation4], %s6584_s30, %s6584_s30, %s6585_s16  }
0x1370   :  { %s6597_s11 = smov [#allocation19]  }
0x1371   :  { %s3939_s27 = sshll.u32 %s6597_s11, 4  ;;  %s3940_s27 = int_to_ptr.vmem [resolvable:$true] %s3939_s27 }
0x1372   :  { %s6522_s5 = scalar_lea.vmem %s3940_s27, 2048  ;;  %p6527_p11 = scmp.lt.s32.totalorder %s3940_s27, %s3940_s27 }
0x1373   :  { %p6523_p10 = scmp.ne.s32.totalorder %s3940_s27, %s6522_s5  ;;  %p6528_p12 = scmp.lt.s32.totalorder %s6522_s5, %s6522_s5 }
0x1375   :  { %p6529_p13 = por %p6528_p12, %p6527_p11 }
0x1377   :  { %p6530_p0 = pnand %p6529_p13, %p6523_p10 }
0x1379   :  { %6533 = shalt.err (!%p6530_p0)
}
0x137a   :  { %s6534_s1 = scalar_lea.hbm %s8021_s14, 2048 }
0x137b   :  { %p6535_p1 = scmp.ne.s32.totalorder %s8021_s14, %s6534_s1  ;;  %p6538_p2 = scmp.lt.u32.totalorder %s6534_s1, %s8021_s14 }
0x137d   :  { %p6540_p3 = pnand %p6538_p2, %p6535_p1 }
0x137f   :  { %6543 = shalt.err (!%p6540_p3)
}
0x1380   :  { %3945 = dma.vmem_to_hbm [thread:$0]  %s3940_s27, 2048, %s8021_s14, [#allocation18], %s6584_s30, %s6584_s30, %s6585_s16  }
0x1381   :  { %s6598_s14 = smov [#allocation20]  }
0x1382   :  { %s3951_s18 = sshll.u32 %s6598_s14, 4  ;;  %s3952_s18 = int_to_ptr.vmem [resolvable:$true] %s3951_s18 }
0x1383   :  { %s6544_s23 = scalar_lea.vmem %s3952_s18, 2048  ;;  %p6549_p5 = scmp.lt.s32.totalorder %s3952_s18, %s3952_s18 }
0x1384   :  { %p6545_p4 = scmp.ne.s32.totalorder %s3952_s18, %s6544_s23  ;;  %p6550_p6 = scmp.lt.s32.totalorder %s6544_s23, %s6544_s23 }
0x1386   :  { %p6551_p7 = por %p6550_p6, %p6549_p5 }
0x1388   :  { %p6552_p8 = pnand %p6551_p7, %p6545_p4 }
0x140c   :  { %v5543_v13 = vpop.f32.mrb[128].mxu1 }
0x140d   :  { %3895 = vst [vmem:[#allocation20 + $0x8] sm:$0xff] %v5543_v13  ;;  %v3815_v59 = vpop.f32.mrb[129].mxu1 }
0x140e   :  { %3894 = vst [vmem:[#allocation20] sm:$0xff] %v3815_v59 }
0x1413   :  { %v5546_v54 = vpop.f32.mrb[130].mxu1 }
0x1414   :  { %3897 = vst [vmem:[#allocation20 + $0x18] sm:$0xff] %v5546_v54  ;;  %v3825_v14 = vpop.f32.mrb[131].mxu1 }
0x1415   :  { %3896 = vst [vmem:[#allocation20 + $0x10] sm:$0xff] %v3825_v14 }
0x1417   :  { %v5549_v40 = vpop.f32.mrb[132].mxu1 }
0x1418   :  { %3899 = vst [vmem:[#allocation20 + $0x28] sm:$0xff] %v5549_v40  ;;  %v3835_v42 = vpop.f32.mrb[133].mxu1 }
0x1419   :  { %3898 = vst [vmem:[#allocation20 + $0x20] sm:$0xff] %v3835_v42 }
0x141b   :  { %v5552_v61 = vpop.f32.mrb[134].mxu1 }
0x141c   :  { %3901 = vst [vmem:[#allocation20 + $0x38] sm:$0xff] %v5552_v61  ;;  %v3845_v29 = vpop.f32.mrb[135].mxu1 }
0x141d   :  { %3900 = vst [vmem:[#allocation20 + $0x30] sm:$0xff] %v3845_v29 }
0x141f   :  { %v5555_v22 = vpop.f32.mrb[136].mxu1 }
0x1420   :  { %3903 = vst [vmem:[#allocation20 + $0x48] sm:$0xff] %v5555_v22  ;;  %v3855_v3 = vpop.f32.mrb[137].mxu1 }
0x1421   :  { %3902 = vst [vmem:[#allocation20 + $0x40] sm:$0xff] %v3855_v3 }
0x1423   :  { %v5558_v5 = vpop.f32.mrb[138].mxu1 }
0x1424   :  { %3905 = vst [vmem:[#allocation20 + $0x58] sm:$0xff] %v5558_v5  ;;  %v3865_v37 = vpop.f32.mrb[139].mxu1 }
0x1425   :  { %3904 = vst [vmem:[#allocation20 + $0x50] sm:$0xff] %v3865_v37 }
0x1427   :  { %v5561_v32 = vpop.f32.mrb[140].mxu1 }
0x1428   :  { %3907 = vst [vmem:[#allocation20 + $0x68] sm:$0xff] %v5561_v32  ;;  %v3875_v15 = vpop.f32.mrb[141].mxu1 }
0x1429   :  { %3906 = vst [vmem:[#allocation20 + $0x60] sm:$0xff] %v3875_v15 }
0x142b   :  { %v5564_v30 = vpop.f32.mrb[142].mxu1 }
0x142c   :  { %3909 = vst [vmem:[#allocation20 + $0x78] sm:$0xff] %v5564_v30  ;;  %v3885_v21 = vpop.f32.mrb[143].mxu1 }
0x142d   :  { %3908 = vst [vmem:[#allocation20 + $0x70] sm:$0xff] %v3885_v21 }
0x142e   :  { %6555 = shalt.err (!%p6552_p8)
}
0x142f   :  { %s6556_s22 = scalar_lea.hbm %s8022_s15, 2048 }
0x1430   :  { %p6557_p9 = scmp.ne.s32.totalorder %s8022_s15, %s6556_s22  ;;  %p6560_p10 = scmp.lt.u32.totalorder %s6556_s22, %s8022_s15 }
0x1432   :  { %p6562_p11 = pnand %p6560_p10, %p6557_p9 }
0x1434   :  { %6565 = shalt.err (!%p6562_p11)
}
0x1435   :  { %3957 = dma.vmem_to_hbm [thread:$0]  %s3952_s18, 2048, %s8022_s15, [#allocation21], %s6584_s30, %s6584_s30, %s6585_s16  }
0x1436   :  { %6576 = dma.done.wait [#allocation4], 2048  }
0x1437   :  { %6577 = vsyncadd [#allocation4], 4294965248 }
0x1438   :  { %6578 = dma.done.wait [#allocation18], 4096  }
0x1439   :  { %6579 = vsyncadd [#allocation18], 4294963200 }
0x143a   :  { %6580 = dma.done.wait [#allocation21], 2048  }
0x143b   :  { %6581 = vsyncadd [#allocation21], 4294965248 }
0x143c   :  { %3970 = vsyncpa [#allocation3], 1 }
0x143d   :  { %3971 = vsyncpa [#allocation6], 1 }
0x143e   :  { %3972 = vsyncpa [#allocation9], 1 }
0x143f   :  { %3973 = vsyncpa [#allocation12], 1 }
0x1440   :  { %3974 = vsyncpa [#allocation15], 1 }
0x1441   :  { %3975 = vsyncpa [#allocation4], 1 }
0x1442   :  { %3976 = vsyncpa [#allocation18], 1 }
0x1443   :  { %3977 = vsyncpa [#allocation21], 1 }

</bundles_post_ra>
